<compile_context>
chip_gen: v6e
topology: v6e:2x2x1
jax: 0.10.0
libtpu: 0.0.40
codegen_flags: <defaults>
</compile_context>

<pallas_src>
import math

import numpy as np
import jax
import jax.numpy as jnp
from jax.experimental import pallas as pl
from jax.experimental.pallas import tpu as pltpu

INV_SQRT2 = 1.0 / math.sqrt(2.0)
BN_EPS = 1e-5


# ----------------------------- in-kernel math ------------------------------
def _erf(x):
    # Abramowitz & Stegun 7.1.26 (max abs err ~1.5e-7), odd extension.
    a1, a2, a3, a4, a5 = 0.254829592, -0.284496736, 1.421413741, -1.453152027, 1.061405429
    z = jnp.abs(x)
    d = 1.0 + 0.3275911 * z
    t = pl.reciprocal(d, approx=True)     # EUP reciprocal ...
    t = t * (2.0 - d * t)                 # ... + one Newton step for accuracy
    poly = t * (a1 + t * (a2 + t * (a3 + t * (a4 + t * a5))))
    y = 1.0 - poly * jnp.exp(-z * z)
    return jnp.where(x < 0, -y, y)


def _gelu(x):
    # PyTorch nn.GELU() default (approximate='none'): 0.5*x*(1+erf(x/sqrt(2)))
    return 0.5 * x * (1.0 + _erf(x * INV_SQRT2))


# ------------------------------ fused kernel --------------------------------
def _mnist_kernel(x_ref,
                  w1_ref, b1_ref,
                  w2_ref, b2_ref, s2_ref, t2_ref,
                  r1_ref, se1_ref, so1_ref,
                  w3_ref, b3_ref, s4_ref, t4_ref,
                  r2_ref, se2_ref, so2_ref,
                  w4_ref, b4_ref,
                  w5_ref, b5_ref,
                  fcw_ref, fcb_ref,
                  o_ref):
    def conv(h, w_ref, b_ref, kh, ho):
        # h: (Hin, Win*Cin) f32; w_ref: (kh, Win*Cin, Wo*Cout) bf16 banded.
        acc = jnp.dot(h[0:ho, :].astype(jnp.bfloat16), w_ref[0],
                      preferred_element_type=jnp.float32)
        for di in range(1, kh):
            acc = acc + jnp.dot(h[di:di + ho, :].astype(jnp.bfloat16), w_ref[di],
                                preferred_element_type=jnp.float32)
        return acc + b_ref[...]

    def pool(h, r_ref, se_ref, so_ref):
        # 2x2 max pool on (H, W*C): row-pair max, then exact 0/1 selection
        # matmuls for even/odd column blocks and row decimation (kept f32).
        rm = jnp.maximum(h[:-1, :], h[1:, :])
        a = jnp.dot(rm, se_ref[...], preferred_element_type=jnp.float32)
        b = jnp.dot(rm, so_ref[...], preferred_element_type=jnp.float32)
        return jnp.dot(r_ref[...], jnp.maximum(a, b),
                       preferred_element_type=jnp.float32)

    x = x_ref[0]                                            # (28, 28) f32
    h = _gelu(conv(x, w1_ref, b1_ref, 3, 26))               # (26, 208)  conv1+GELU (BN1 folded into conv2)
    h = _gelu(conv(h, w2_ref, b2_ref, 3, 24))               # (24, 384)  conv2+GELU
    h = h * s2_ref[...] + t2_ref[...]                       # BN2 affine
    h = _gelu(pool(h, r1_ref, se1_ref, so1_ref))            # (12, 192)  pool+GELU (BN3 folded into conv3)
    h = _gelu(conv(h, w3_ref, b3_ref, 3, 10))               # (10, 320)  conv3+GELU
    h = h * s4_ref[...] + t4_ref[...]                       # BN4 affine
    h = _gelu(pool(h, r2_ref, se2_ref, so2_ref))            # (5, 160)   pool+GELU (BN5 folded into conv4)
    h = _gelu(conv(h, w4_ref, b4_ref, 3, 3))                # (3, 96)    conv4+GELU (BN6 folded into conv5)
    h = conv(h, w5_ref, b5_ref, 2, 2)                       # (2, 64)    conv5
    # TODO(synk): Dropout2d(0.4) is implemented as eval-mode identity only.

    logits = (jnp.dot(h[0:1, :].astype(jnp.bfloat16), fcw_ref[0],
                      preferred_element_type=jnp.float32)
              + jnp.dot(h[1:2, :].astype(jnp.bfloat16), fcw_ref[1],
                        preferred_element_type=jnp.float32)
              + fcb_ref[...])                               # (1, 10)
    m = jnp.max(logits, axis=-1, keepdims=True)
    z = logits - m
    lse = jnp.log(jnp.sum(jnp.exp(z), axis=-1, keepdims=True))
    o_ref[0] = z - lse


# --------------------- host-side (one-time) parameter prep ------------------
def _np(x):
    return np.asarray(x, dtype=np.float32)


def _bn_scale_shift(bn):
    scale = _np(bn["gamma"]) / np.sqrt(_np(bn["var"]) + BN_EPS)
    shift = _np(bn["beta"]) - _np(bn["mean"]) * scale
    return scale, shift


def _fold_bn_into_conv(w, b, scale, shift):
    # conv applied to (scale*x + shift) per input channel.
    w = _np(w)
    b = _np(b)
    w_f = w * scale[None, :, None, None]
    b_f = b + np.einsum("oikl,i->o", w, shift)
    return w_f, b_f


def _banded(w_oikk, w_in):
    # Banded matrices for the (H, W*C) layout: out = sum_di x[di:di+Ho,:] @ W_di
    cout, cin, kh, kw = w_oikk.shape
    w_out = w_in - kw + 1
    out = np.zeros((kh, w_in * cin, w_out * cout), np.float32)
    for di in range(kh):
        for dj in range(kw):
            blk = w_oikk[:, :, di, dj].T                    # (cin, cout)
            for wo in range(w_out):
                out[di, (wo + dj) * cin:(wo + dj + 1) * cin,
                    wo * cout:(wo + 1) * cout] = blk
    return out


def _row(v, w_out):
    # per-channel vector tiled to the lane layout [wo*C + c]
    return np.tile(_np(v), w_out)[None, :]


def _pool_select(h_in, w_in, c):
    hp, wp = h_in // 2, w_in // 2
    r = np.zeros((hp, h_in - 1), np.float32)
    r[np.arange(hp), 2 * np.arange(hp)] = 1.0               # select rows 0,2,4,...
    se = np.zeros((w_in * c, wp * c), np.float32)
    so = np.zeros((w_in * c, wp * c), np.float32)
    eye = np.eye(c, dtype=np.float32)
    for wo in range(wp):
        se[(2 * wo) * c:(2 * wo + 1) * c, wo * c:(wo + 1) * c] = eye
        so[(2 * wo + 1) * c:(2 * wo + 2) * c, wo * c:(wo + 1) * c] = eye
    return r, se, so


def prepare_params(params):
    """Fold BN into following convs, build banded conv weights, pool selection
    matrices and the permuted FC weights.  Runs once on the host (not jitted)."""
    s1, t1 = _bn_scale_shift(params["bn1"])
    s2, t2 = _bn_scale_shift(params["bn2"])
    s3, t3 = _bn_scale_shift(params["bn3"])
    s4, t4 = _bn_scale_shift(params["bn4"])
    s5, t5 = _bn_scale_shift(params["bn5"])
    s6, t6 = _bn_scale_shift(params["bn6"])

    w1, b1 = _np(params["conv1_w"]), _np(params["conv1_b"])
    w2, b2 = _fold_bn_into_conv(params["conv2_w"], params["conv2_b"], s1, t1)
    w3, b3 = _fold_bn_into_conv(params["conv3_w"], params["conv3_b"], s3, t3)
    w4, b4 = _fold_bn_into_conv(params["conv4_w"], params["conv4_b"], s5, t5)
    w5, b5 = _fold_bn_into_conv(params["conv5_w"], params["conv5_b"], s6, t6)

    r1, se1, so1 = _pool_select(24, 24, 16)
    r2, se2, so2 = _pool_select(10, 10, 32)

    # FC: PyTorch Flatten of NCHW (N,32,2,2) -> flat index c*4 + h*2 + w; our
    # conv5 activation layout is (h, w*32 + c): one (64, 10) block per h.
    fc_w = _np(params["fc_w"])                              # (10, 128)
    fcw = np.zeros((2, 64, 10), np.float32)
    for h in range(2):
        for w in range(2):
            for c in range(32):
                fcw[h, w * 32 + c, :] = fc_w[:, c * 4 + h * 2 + w]
    fcb = _np(params["fc_b"])[None, :]

    bf = jnp.bfloat16
    return dict(
        w1=jnp.asarray(_banded(w1, 28), bf), b1=jnp.asarray(_row(b1, 26)),
        w2=jnp.asarray(_banded(w2, 26), bf), b2=jnp.asarray(_row(b2, 24)),
        s2=jnp.asarray(_row(s2, 24)), t2=jnp.asarray(_row(t2, 24)),
        r1=jnp.asarray(r1), se1=jnp.asarray(se1), so1=jnp.asarray(so1),
        w3=jnp.asarray(_banded(w3, 12), bf), b3=jnp.asarray(_row(b3, 10)),
        s4=jnp.asarray(_row(s4, 10)), t4=jnp.asarray(_row(t4, 10)),
        r2=jnp.asarray(r2), se2=jnp.asarray(se2), so2=jnp.asarray(so2),
        w4=jnp.asarray(_banded(w4, 5), bf), b4=jnp.asarray(_row(b4, 3)),
        w5=jnp.asarray(_banded(w5, 3), bf), b5=jnp.asarray(_row(b5, 2)),
        fcw=jnp.asarray(fcw, bf), fcb=jnp.asarray(fcb),
    )


# ------------------------------ forward wrapper ------------------------------
def mnist_net_forward(prepped, x_nchw):
    n = x_nchw.shape[0]
    x = x_nchw.reshape(n, 28, 28).astype(jnp.float32)       # C=1 -> (H, W) per image
    p = prepped
    args = (x,
            p["w1"], p["b1"],
            p["w2"], p["b2"], p["s2"], p["t2"],
            p["r1"], p["se1"], p["so1"],
            p["w3"], p["b3"], p["s4"], p["t4"],
            p["r2"], p["se2"], p["so2"],
            p["w4"], p["b4"],
            p["w5"], p["b5"],
            p["fcw"], p["fcb"])
    vmem = pl.BlockSpec(memory_space=pltpu.MemorySpace.VMEM)
    in_specs = [pl.BlockSpec((1, 28, 28), lambda i: (i, 0, 0))] + [vmem] * (len(args) - 1)
    out = pl.pallas_call(
        _mnist_kernel,
        out_shape=jax.ShapeDtypeStruct((n, 1, 10), jnp.float32),
        grid=(n,),
        in_specs=in_specs,
        out_specs=pl.BlockSpec((1, 1, 10), lambda i: (i, 0, 0)),
        compiler_params=pltpu.CompilerParams(dimension_semantics=("parallel",)),
    )(*args)
    return out.reshape(n, 10)


# ------------------------------ parameter init ------------------------------
def init_params(key):
    keys = iter(jax.random.split(key, 40))
    nxt = lambda: next(keys)
    p = {}
    conv_defs = [("conv1", 1, 8, 3), ("conv2", 8, 16, 3), ("conv3", 16, 32, 3),
                 ("conv4", 32, 32, 3), ("conv5", 32, 32, 2)]
    for name, cin, cout, k in conv_defs:
        bound = 1.0 / math.sqrt(cin * k * k)
        p[f"{name}_w"] = jax.random.uniform(nxt(), (cout, cin, k, k), jnp.float32, -bound, bound)
        p[f"{name}_b"] = jax.random.uniform(nxt(), (cout,), jnp.float32, -bound, bound)
    bn_defs = [("bn1", 8), ("bn2", 16), ("bn3", 16), ("bn4", 32), ("bn5", 32), ("bn6", 32)]
    for name, c in bn_defs:
        p[name] = {
            "gamma": jax.random.uniform(nxt(), (c,), jnp.float32, 0.8, 1.2),
            "beta": 0.1 * jax.random.normal(nxt(), (c,), jnp.float32),
            "mean": 0.1 * jax.random.normal(nxt(), (c,), jnp.float32),
            "var": jax.random.uniform(nxt(), (c,), jnp.float32, 0.5, 1.5),
        }
    bound = 1.0 / math.sqrt(32 * 2 * 2)
    p["fc_w"] = jax.random.uniform(nxt(), (10, 32 * 2 * 2), jnp.float32, -bound, bound)
    p["fc_b"] = jax.random.uniform(nxt(), (10,), jnp.float32, -bound, bound)
    return p


if __name__ == "__main__":
    key = jax.random.PRNGKey(0)
    k_params, k_x = jax.random.split(key)
    params = init_params(k_params)
    prepped = prepare_params(params)            # one-time host-side prep
    # The 32*2*2 flatten in the module implies 28x28 single-channel input.
    x = jax.random.normal(k_x, (2, 1, 28, 28), jnp.float32)

    fwd = jax.jit(mnist_net_forward)
    out = jax.block_until_ready(fwd(prepped, x))

    assert out.shape == (2, 10), out.shape
    # log_softmax rows must exponentiate-and-sum to 1.
    assert bool(jnp.allclose(jnp.sum(jnp.exp(out), axis=1), 1.0, atol=1e-4))
    print("KERNEL_OK")
</pallas_src>

<mosaic_0001>
module attributes {stable_mosaic.version = 11 : i64} {
  func.func @_mnist_kernel(%arg0: i32, %arg1: memref<1x28x28xf32, #tpu.memory_space<vmem>>, %arg2: memref<3x28x208xbf16, #tpu.memory_space<vmem>>, %arg3: memref<1x208xf32, #tpu.memory_space<vmem>>, %arg4: memref<3x208x384xbf16, #tpu.memory_space<vmem>>, %arg5: memref<1x384xf32, #tpu.memory_space<vmem>>, %arg6: memref<1x384xf32, #tpu.memory_space<vmem>>, %arg7: memref<1x384xf32, #tpu.memory_space<vmem>>, %arg8: memref<12x23xf32, #tpu.memory_space<vmem>>, %arg9: memref<384x192xf32, #tpu.memory_space<vmem>>, %arg10: memref<384x192xf32, #tpu.memory_space<vmem>>, %arg11: memref<3x192x320xbf16, #tpu.memory_space<vmem>>, %arg12: memref<1x320xf32, #tpu.memory_space<vmem>>, %arg13: memref<1x320xf32, #tpu.memory_space<vmem>>, %arg14: memref<1x320xf32, #tpu.memory_space<vmem>>, %arg15: memref<5x9xf32, #tpu.memory_space<vmem>>, %arg16: memref<320x160xf32, #tpu.memory_space<vmem>>, %arg17: memref<320x160xf32, #tpu.memory_space<vmem>>, %arg18: memref<3x160x96xbf16, #tpu.memory_space<vmem>>, %arg19: memref<1x96xf32, #tpu.memory_space<vmem>>, %arg20: memref<2x96x64xbf16, #tpu.memory_space<vmem>>, %arg21: memref<1x64xf32, #tpu.memory_space<vmem>>, %arg22: memref<2x64x10xbf16, #tpu.memory_space<vmem>>, %arg23: memref<1x10xf32, #tpu.memory_space<vmem>>, %arg24: memref<1x1x10xf32, #tpu.memory_space<vmem>>) attributes {dimension_semantics = [#tpu.dimension_semantics<parallel>], iteration_bounds = array<i64: 2>, scalar_prefetch = 0 : i64, scratch_operands = 0 : i64, tpu.core_type = #tpu.core_type<tc>, window_params = [{transform_indices = @transform_0, window_bounds = array<i64: 1, 28, 28>}, {pipeline_mode = #tpu.pipeline_mode<synchronous>, transform_indices = @transform_1, window_bounds = array<i64: 3, 28, 208>}, {pipeline_mode = #tpu.pipeline_mode<synchronous>, transform_indices = @transform_2, window_bounds = array<i64: 1, 208>}, {pipeline_mode = #tpu.pipeline_mode<synchronous>, transform_indices = @transform_3, window_bounds = array<i64: 3, 208, 384>}, {pipeline_mode = #tpu.pipeline_mode<synchronous>, transform_indices = @transform_4, window_bounds = array<i64: 1, 384>}, {pipeline_mode = #tpu.pipeline_mode<synchronous>, transform_indices = @transform_5, window_bounds = array<i64: 1, 384>}, {pipeline_mode = #tpu.pipeline_mode<synchronous>, transform_indices = @transform_6, window_bounds = array<i64: 1, 384>}, {pipeline_mode = #tpu.pipeline_mode<synchronous>, transform_indices = @transform_7, window_bounds = array<i64: 12, 23>}, {pipeline_mode = #tpu.pipeline_mode<synchronous>, transform_indices = @transform_8, window_bounds = array<i64: 384, 192>}, {pipeline_mode = #tpu.pipeline_mode<synchronous>, transform_indices = @transform_9, window_bounds = array<i64: 384, 192>}, {pipeline_mode = #tpu.pipeline_mode<synchronous>, transform_indices = @transform_10, window_bounds = array<i64: 3, 192, 320>}, {pipeline_mode = #tpu.pipeline_mode<synchronous>, transform_indices = @transform_11, window_bounds = array<i64: 1, 320>}, {pipeline_mode = #tpu.pipeline_mode<synchronous>, transform_indices = @transform_12, window_bounds = array<i64: 1, 320>}, {pipeline_mode = #tpu.pipeline_mode<synchronous>, transform_indices = @transform_13, window_bounds = array<i64: 1, 320>}, {pipeline_mode = #tpu.pipeline_mode<synchronous>, transform_indices = @transform_14, window_bounds = array<i64: 5, 9>}, {pipeline_mode = #tpu.pipeline_mode<synchronous>, transform_indices = @transform_15, window_bounds = array<i64: 320, 160>}, {pipeline_mode = #tpu.pipeline_mode<synchronous>, transform_indices = @transform_16, window_bounds = array<i64: 320, 160>}, {pipeline_mode = #tpu.pipeline_mode<synchronous>, transform_indices = @transform_17, window_bounds = array<i64: 3, 160, 96>}, {pipeline_mode = #tpu.pipeline_mode<synchronous>, transform_indices = @transform_18, window_bounds = array<i64: 1, 96>}, {pipeline_mode = #tpu.pipeline_mode<synchronous>, transform_indices = @transform_19, window_bounds = array<i64: 2, 96, 64>}, {pipeline_mode = #tpu.pipeline_mode<synchronous>, transform_indices = @transform_20, window_bounds = array<i64: 1, 64>}, {pipeline_mode = #tpu.pipeline_mode<synchronous>, transform_indices = @transform_21, window_bounds = array<i64: 2, 64, 10>}, {pipeline_mode = #tpu.pipeline_mode<synchronous>, transform_indices = @transform_22, window_bounds = array<i64: 1, 10>}, {transform_indices = @transform_23, window_bounds = array<i64: 1, 1, 10>}]} {
    %c0 = arith.constant 0 : index
    %c0_0 = arith.constant 0 : index
    %c0_1 = arith.constant 0 : index
    %0 = vector.load %arg1[%c0, %c0_0, %c0_1] : memref<1x28x28xf32, #tpu.memory_space<vmem>>, vector<1x28x28xf32>
    %1 = vector.shape_cast %0 : vector<1x28x28xf32> to vector<28x28xf32>
    %2 = vector.extract_strided_slice %1 {offsets = [0, 0], sizes = [26, 28], strides = [1, 1]} : vector<28x28xf32> to vector<26x28xf32>
    %3 = arith.truncf %2 : vector<26x28xf32> to vector<26x28xbf16>
    %c0_2 = arith.constant 0 : index
    %c0_3 = arith.constant 0 : index
    %c0_4 = arith.constant 0 : index
    %4 = vector.load %arg2[%c0_2, %c0_3, %c0_4] : memref<3x28x208xbf16, #tpu.memory_space<vmem>>, vector<1x28x208xbf16>
    %5 = vector.shape_cast %4 : vector<1x28x208xbf16> to vector<28x208xbf16>
    %cst = arith.constant dense<0.000000e+00> : vector<26x208xf32>
    %6 = tpu.matmul %3, %5, %cst {dimension_numbers = #tpu.dot_dimension_numbers<[1], [0], [0], [1], [0, 0, 1, 1], [], []>} : vector<26x28xbf16>, vector<28x208xbf16>, vector<26x208xf32> -> vector<26x208xf32>
    %7 = vector.extract_strided_slice %1 {offsets = [1, 0], sizes = [26, 28], strides = [1, 1]} : vector<28x28xf32> to vector<26x28xf32>
    %8 = arith.truncf %7 : vector<26x28xf32> to vector<26x28xbf16>
    %c1 = arith.constant 1 : index
    %c0_5 = arith.constant 0 : index
    %c0_6 = arith.constant 0 : index
    %9 = vector.load %arg2[%c1, %c0_5, %c0_6] : memref<3x28x208xbf16, #tpu.memory_space<vmem>>, vector<1x28x208xbf16>
    %10 = vector.shape_cast %9 : vector<1x28x208xbf16> to vector<28x208xbf16>
    %cst_7 = arith.constant dense<0.000000e+00> : vector<26x208xf32>
    %11 = tpu.matmul %8, %10, %cst_7 {dimension_numbers = #tpu.dot_dimension_numbers<[1], [0], [0], [1], [0, 0, 1, 1], [], []>} : vector<26x28xbf16>, vector<28x208xbf16>, vector<26x208xf32> -> vector<26x208xf32>
    %12 = arith.addf %6, %11 : vector<26x208xf32>
    %13 = vector.extract_strided_slice %1 {offsets = [2, 0], sizes = [26, 28], strides = [1, 1]} : vector<28x28xf32> to vector<26x28xf32>
    %14 = arith.truncf %13 : vector<26x28xf32> to vector<26x28xbf16>
    %c2 = arith.constant 2 : index
    %c0_8 = arith.constant 0 : index
    %c0_9 = arith.constant 0 : index
    %15 = vector.load %arg2[%c2, %c0_8, %c0_9] : memref<3x28x208xbf16, #tpu.memory_space<vmem>>, vector<1x28x208xbf16>
    %16 = vector.shape_cast %15 : vector<1x28x208xbf16> to vector<28x208xbf16>
    %cst_10 = arith.constant dense<0.000000e+00> : vector<26x208xf32>
    %17 = tpu.matmul %14, %16, %cst_10 {dimension_numbers = #tpu.dot_dimension_numbers<[1], [0], [0], [1], [0, 0, 1, 1], [], []>} : vector<26x28xbf16>, vector<28x208xbf16>, vector<26x208xf32> -> vector<26x208xf32>
    %18 = arith.addf %12, %17 : vector<26x208xf32>
    %c0_11 = arith.constant 0 : index
    %c0_12 = arith.constant 0 : index
    %19 = vector.load %arg3[%c0_11, %c0_12] : memref<1x208xf32, #tpu.memory_space<vmem>>, vector<1x208xf32>
    %20 = vector.broadcast %19 : vector<1x208xf32> to vector<26x208xf32>
    %21 = arith.addf %18, %20 : vector<26x208xf32>
    %cst_13 = arith.constant 5.000000e-01 : f32
    %22 = vector.broadcast %cst_13 : f32 to vector<26x208xf32>
    %23 = arith.mulf %22, %21 : vector<26x208xf32>
    %cst_14 = arith.constant 0.707106769 : f32
    %24 = vector.broadcast %cst_14 : f32 to vector<26x208xf32>
    %25 = arith.mulf %21, %24 : vector<26x208xf32>
    %26 = math.absf %25 : vector<26x208xf32>
    %cst_15 = arith.constant 0.327591091 : f32
    %27 = vector.broadcast %cst_15 : f32 to vector<26x208xf32>
    %28 = arith.mulf %27, %26 : vector<26x208xf32>
    %cst_16 = arith.constant 1.000000e+00 : f32
    %29 = vector.broadcast %cst_16 : f32 to vector<26x208xf32>
    %30 = arith.addf %29, %28 : vector<26x208xf32>
    %31 = tpu.reciprocal %30 {approx = true} : vector<26x208xf32> -> vector<26x208xf32>
    %32 = arith.mulf %30, %31 : vector<26x208xf32>
    %cst_17 = arith.constant 2.000000e+00 : f32
    %33 = vector.broadcast %cst_17 : f32 to vector<26x208xf32>
    %34 = arith.subf %33, %32 : vector<26x208xf32>
    %35 = arith.mulf %31, %34 : vector<26x208xf32>
    %cst_18 = arith.constant 1.06140542 : f32
    %36 = vector.broadcast %cst_18 : f32 to vector<26x208xf32>
    %37 = arith.mulf %35, %36 : vector<26x208xf32>
    %cst_19 = arith.constant -1.45315206 : f32
    %38 = vector.broadcast %cst_19 : f32 to vector<26x208xf32>
    %39 = arith.addf %38, %37 : vector<26x208xf32>
    %40 = arith.mulf %35, %39 : vector<26x208xf32>
    %cst_20 = arith.constant 1.42141378 : f32
    %41 = vector.broadcast %cst_20 : f32 to vector<26x208xf32>
    %42 = arith.addf %41, %40 : vector<26x208xf32>
    %43 = arith.mulf %35, %42 : vector<26x208xf32>
    %cst_21 = arith.constant -0.284496725 : f32
    %44 = vector.broadcast %cst_21 : f32 to vector<26x208xf32>
    %45 = arith.addf %44, %43 : vector<26x208xf32>
    %46 = arith.mulf %35, %45 : vector<26x208xf32>
    %cst_22 = arith.constant 0.254829586 : f32
    %47 = vector.broadcast %cst_22 : f32 to vector<26x208xf32>
    %48 = arith.addf %47, %46 : vector<26x208xf32>
    %49 = arith.mulf %35, %48 : vector<26x208xf32>
    %cst_23 = arith.constant 0.000000e+00 : f32
    %50 = vector.broadcast %cst_23 : f32 to vector<26x208xf32>
    %51 = arith.subf %50, %26 : vector<26x208xf32>
    %52 = arith.mulf %51, %26 : vector<26x208xf32>
    %53 = math.exp %52 : vector<26x208xf32>
    %54 = arith.mulf %49, %53 : vector<26x208xf32>
    %cst_24 = arith.constant 1.000000e+00 : f32
    %55 = vector.broadcast %cst_24 : f32 to vector<26x208xf32>
    %56 = arith.subf %55, %54 : vector<26x208xf32>
    %cst_25 = arith.constant 0.000000e+00 : f32
    %57 = vector.broadcast %cst_25 : f32 to vector<26x208xf32>
    %58 = arith.cmpf olt, %25, %57 : vector<26x208xf32>
    %cst_26 = arith.constant 0.000000e+00 : f32
    %59 = vector.broadcast %cst_26 : f32 to vector<26x208xf32>
    %60 = arith.subf %59, %56 : vector<26x208xf32>
    %61 = arith.select %58, %60, %56 : vector<26x208xi1>, vector<26x208xf32>
    %cst_27 = arith.constant 1.000000e+00 : f32
    %62 = vector.broadcast %cst_27 : f32 to vector<26x208xf32>
    %63 = arith.addf %62, %61 : vector<26x208xf32>
    %64 = arith.mulf %23, %63 : vector<26x208xf32>
    %65 = vector.extract_strided_slice %64 {offsets = [0, 0], sizes = [24, 208], strides = [1, 1]} : vector<26x208xf32> to vector<24x208xf32>
    %66 = arith.truncf %65 : vector<24x208xf32> to vector<24x208xbf16>
    %c0_28 = arith.constant 0 : index
    %c0_29 = arith.constant 0 : index
    %c0_30 = arith.constant 0 : index
    %67 = vector.load %arg4[%c0_28, %c0_29, %c0_30] : memref<3x208x384xbf16, #tpu.memory_space<vmem>>, vector<1x208x384xbf16>
    %68 = vector.shape_cast %67 : vector<1x208x384xbf16> to vector<208x384xbf16>
    %cst_31 = arith.constant dense<0.000000e+00> : vector<24x384xf32>
    %69 = tpu.matmul %66, %68, %cst_31 {dimension_numbers = #tpu.dot_dimension_numbers<[1], [0], [0], [1], [0, 0, 1, 1], [], []>} : vector<24x208xbf16>, vector<208x384xbf16>, vector<24x384xf32> -> vector<24x384xf32>
    %70 = vector.extract_strided_slice %64 {offsets = [1, 0], sizes = [24, 208], strides = [1, 1]} : vector<26x208xf32> to vector<24x208xf32>
    %71 = arith.truncf %70 : vector<24x208xf32> to vector<24x208xbf16>
    %c1_32 = arith.constant 1 : index
    %c0_33 = arith.constant 0 : index
    %c0_34 = arith.constant 0 : index
    %72 = vector.load %arg4[%c1_32, %c0_33, %c0_34] : memref<3x208x384xbf16, #tpu.memory_space<vmem>>, vector<1x208x384xbf16>
    %73 = vector.shape_cast %72 : vector<1x208x384xbf16> to vector<208x384xbf16>
    %cst_35 = arith.constant dense<0.000000e+00> : vector<24x384xf32>
    %74 = tpu.matmul %71, %73, %cst_35 {dimension_numbers = #tpu.dot_dimension_numbers<[1], [0], [0], [1], [0, 0, 1, 1], [], []>} : vector<24x208xbf16>, vector<208x384xbf16>, vector<24x384xf32> -> vector<24x384xf32>
    %75 = arith.addf %69, %74 : vector<24x384xf32>
    %76 = vector.extract_strided_slice %64 {offsets = [2, 0], sizes = [24, 208], strides = [1, 1]} : vector<26x208xf32> to vector<24x208xf32>
    %77 = arith.truncf %76 : vector<24x208xf32> to vector<24x208xbf16>
    %c2_36 = arith.constant 2 : index
    %c0_37 = arith.constant 0 : index
    %c0_38 = arith.constant 0 : index
    %78 = vector.load %arg4[%c2_36, %c0_37, %c0_38] : memref<3x208x384xbf16, #tpu.memory_space<vmem>>, vector<1x208x384xbf16>
    %79 = vector.shape_cast %78 : vector<1x208x384xbf16> to vector<208x384xbf16>
    %cst_39 = arith.constant dense<0.000000e+00> : vector<24x384xf32>
    %80 = tpu.matmul %77, %79, %cst_39 {dimension_numbers = #tpu.dot_dimension_numbers<[1], [0], [0], [1], [0, 0, 1, 1], [], []>} : vector<24x208xbf16>, vector<208x384xbf16>, vector<24x384xf32> -> vector<24x384xf32>
    %81 = arith.addf %75, %80 : vector<24x384xf32>
    %c0_40 = arith.constant 0 : index
    %c0_41 = arith.constant 0 : index
    %82 = vector.load %arg5[%c0_40, %c0_41] : memref<1x384xf32, #tpu.memory_space<vmem>>, vector<1x384xf32>
    %83 = vector.broadcast %82 : vector<1x384xf32> to vector<24x384xf32>
    %84 = arith.addf %81, %83 : vector<24x384xf32>
    %cst_42 = arith.constant 5.000000e-01 : f32
    %85 = vector.broadcast %cst_42 : f32 to vector<24x384xf32>
    %86 = arith.mulf %85, %84 : vector<24x384xf32>
    %cst_43 = arith.constant 0.707106769 : f32
    %87 = vector.broadcast %cst_43 : f32 to vector<24x384xf32>
    %88 = arith.mulf %84, %87 : vector<24x384xf32>
    %89 = math.absf %88 : vector<24x384xf32>
    %cst_44 = arith.constant 0.327591091 : f32
    %90 = vector.broadcast %cst_44 : f32 to vector<24x384xf32>
    %91 = arith.mulf %90, %89 : vector<24x384xf32>
    %cst_45 = arith.constant 1.000000e+00 : f32
    %92 = vector.broadcast %cst_45 : f32 to vector<24x384xf32>
    %93 = arith.addf %92, %91 : vector<24x384xf32>
    %94 = tpu.reciprocal %93 {approx = true} : vector<24x384xf32> -> vector<24x384xf32>
    %95 = arith.mulf %93, %94 : vector<24x384xf32>
    %cst_46 = arith.constant 2.000000e+00 : f32
    %96 = vector.broadcast %cst_46 : f32 to vector<24x384xf32>
    %97 = arith.subf %96, %95 : vector<24x384xf32>
    %98 = arith.mulf %94, %97 : vector<24x384xf32>
    %cst_47 = arith.constant 1.06140542 : f32
    %99 = vector.broadcast %cst_47 : f32 to vector<24x384xf32>
    %100 = arith.mulf %98, %99 : vector<24x384xf32>
    %cst_48 = arith.constant -1.45315206 : f32
    %101 = vector.broadcast %cst_48 : f32 to vector<24x384xf32>
    %102 = arith.addf %101, %100 : vector<24x384xf32>
    %103 = arith.mulf %98, %102 : vector<24x384xf32>
    %cst_49 = arith.constant 1.42141378 : f32
    %104 = vector.broadcast %cst_49 : f32 to vector<24x384xf32>
    %105 = arith.addf %104, %103 : vector<24x384xf32>
    %106 = arith.mulf %98, %105 : vector<24x384xf32>
    %cst_50 = arith.constant -0.284496725 : f32
    %107 = vector.broadcast %cst_50 : f32 to vector<24x384xf32>
    %108 = arith.addf %107, %106 : vector<24x384xf32>
    %109 = arith.mulf %98, %108 : vector<24x384xf32>
    %cst_51 = arith.constant 0.254829586 : f32
    %110 = vector.broadcast %cst_51 : f32 to vector<24x384xf32>
    %111 = arith.addf %110, %109 : vector<24x384xf32>
    %112 = arith.mulf %98, %111 : vector<24x384xf32>
    %cst_52 = arith.constant 0.000000e+00 : f32
    %113 = vector.broadcast %cst_52 : f32 to vector<24x384xf32>
    %114 = arith.subf %113, %89 : vector<24x384xf32>
    %115 = arith.mulf %114, %89 : vector<24x384xf32>
    %116 = math.exp %115 : vector<24x384xf32>
    %117 = arith.mulf %112, %116 : vector<24x384xf32>
    %cst_53 = arith.constant 1.000000e+00 : f32
    %118 = vector.broadcast %cst_53 : f32 to vector<24x384xf32>
    %119 = arith.subf %118, %117 : vector<24x384xf32>
    %cst_54 = arith.constant 0.000000e+00 : f32
    %120 = vector.broadcast %cst_54 : f32 to vector<24x384xf32>
    %121 = arith.cmpf olt, %88, %120 : vector<24x384xf32>
    %cst_55 = arith.constant 0.000000e+00 : f32
    %122 = vector.broadcast %cst_55 : f32 to vector<24x384xf32>
    %123 = arith.subf %122, %119 : vector<24x384xf32>
    %124 = arith.select %121, %123, %119 : vector<24x384xi1>, vector<24x384xf32>
    %cst_56 = arith.constant 1.000000e+00 : f32
    %125 = vector.broadcast %cst_56 : f32 to vector<24x384xf32>
    %126 = arith.addf %125, %124 : vector<24x384xf32>
    %127 = arith.mulf %86, %126 : vector<24x384xf32>
    %c0_57 = arith.constant 0 : index
    %c0_58 = arith.constant 0 : index
    %128 = vector.load %arg6[%c0_57, %c0_58] : memref<1x384xf32, #tpu.memory_space<vmem>>, vector<1x384xf32>
    %129 = vector.broadcast %128 : vector<1x384xf32> to vector<24x384xf32>
    %130 = arith.mulf %127, %129 : vector<24x384xf32>
    %c0_59 = arith.constant 0 : index
    %c0_60 = arith.constant 0 : index
    %131 = vector.load %arg7[%c0_59, %c0_60] : memref<1x384xf32, #tpu.memory_space<vmem>>, vector<1x384xf32>
    %132 = vector.broadcast %131 : vector<1x384xf32> to vector<24x384xf32>
    %133 = arith.addf %130, %132 : vector<24x384xf32>
    %134 = vector.extract_strided_slice %133 {offsets = [0, 0], sizes = [23, 384], strides = [1, 1]} : vector<24x384xf32> to vector<23x384xf32>
    %135 = vector.extract_strided_slice %133 {offsets = [1, 0], sizes = [23, 384], strides = [1, 1]} : vector<24x384xf32> to vector<23x384xf32>
    %136 = arith.maximumf %134, %135 : vector<23x384xf32>
    %c0_61 = arith.constant 0 : index
    %c0_62 = arith.constant 0 : index
    %137 = vector.load %arg9[%c0_61, %c0_62] : memref<384x192xf32, #tpu.memory_space<vmem>>, vector<384x192xf32>
    %cst_63 = arith.constant dense<0.000000e+00> : vector<23x192xf32>
    %138 = tpu.matmul %136, %137, %cst_63 {dimension_numbers = #tpu.dot_dimension_numbers<[1], [0], [0], [1], [0, 0, 1, 1], [], []>} : vector<23x384xf32>, vector<384x192xf32>, vector<23x192xf32> -> vector<23x192xf32>
    %c0_64 = arith.constant 0 : index
    %c0_65 = arith.constant 0 : index
    %139 = vector.load %arg10[%c0_64, %c0_65] : memref<384x192xf32, #tpu.memory_space<vmem>>, vector<384x192xf32>
    %cst_66 = arith.constant dense<0.000000e+00> : vector<23x192xf32>
    %140 = tpu.matmul %136, %139, %cst_66 {dimension_numbers = #tpu.dot_dimension_numbers<[1], [0], [0], [1], [0, 0, 1, 1], [], []>} : vector<23x384xf32>, vector<384x192xf32>, vector<23x192xf32> -> vector<23x192xf32>
    %c0_67 = arith.constant 0 : index
    %c0_68 = arith.constant 0 : index
    %141 = vector.load %arg8[%c0_67, %c0_68] : memref<12x23xf32, #tpu.memory_space<vmem>>, vector<12x23xf32>
    %142 = arith.maximumf %138, %140 : vector<23x192xf32>
    %cst_69 = arith.constant dense<0.000000e+00> : vector<12x192xf32>
    %143 = tpu.matmul %141, %142, %cst_69 {dimension_numbers = #tpu.dot_dimension_numbers<[1], [0], [0], [1], [0, 0, 1, 1], [], []>} : vector<12x23xf32>, vector<23x192xf32>, vector<12x192xf32> -> vector<12x192xf32>
    %cst_70 = arith.constant 5.000000e-01 : f32
    %144 = vector.broadcast %cst_70 : f32 to vector<12x192xf32>
    %145 = arith.mulf %144, %143 : vector<12x192xf32>
    %cst_71 = arith.constant 0.707106769 : f32
    %146 = vector.broadcast %cst_71 : f32 to vector<12x192xf32>
    %147 = arith.mulf %143, %146 : vector<12x192xf32>
    %148 = math.absf %147 : vector<12x192xf32>
    %cst_72 = arith.constant 0.327591091 : f32
    %149 = vector.broadcast %cst_72 : f32 to vector<12x192xf32>
    %150 = arith.mulf %149, %148 : vector<12x192xf32>
    %cst_73 = arith.constant 1.000000e+00 : f32
    %151 = vector.broadcast %cst_73 : f32 to vector<12x192xf32>
    %152 = arith.addf %151, %150 : vector<12x192xf32>
    %153 = tpu.reciprocal %152 {approx = true} : vector<12x192xf32> -> vector<12x192xf32>
    %154 = arith.mulf %152, %153 : vector<12x192xf32>
    %cst_74 = arith.constant 2.000000e+00 : f32
    %155 = vector.broadcast %cst_74 : f32 to vector<12x192xf32>
    %156 = arith.subf %155, %154 : vector<12x192xf32>
    %157 = arith.mulf %153, %156 : vector<12x192xf32>
    %cst_75 = arith.constant 1.06140542 : f32
    %158 = vector.broadcast %cst_75 : f32 to vector<12x192xf32>
    %159 = arith.mulf %157, %158 : vector<12x192xf32>
    %cst_76 = arith.constant -1.45315206 : f32
    %160 = vector.broadcast %cst_76 : f32 to vector<12x192xf32>
    %161 = arith.addf %160, %159 : vector<12x192xf32>
    %162 = arith.mulf %157, %161 : vector<12x192xf32>
    %cst_77 = arith.constant 1.42141378 : f32
    %163 = vector.broadcast %cst_77 : f32 to vector<12x192xf32>
    %164 = arith.addf %163, %162 : vector<12x192xf32>
    %165 = arith.mulf %157, %164 : vector<12x192xf32>
    %cst_78 = arith.constant -0.284496725 : f32
    %166 = vector.broadcast %cst_78 : f32 to vector<12x192xf32>
    %167 = arith.addf %166, %165 : vector<12x192xf32>
    %168 = arith.mulf %157, %167 : vector<12x192xf32>
    %cst_79 = arith.constant 0.254829586 : f32
    %169 = vector.broadcast %cst_79 : f32 to vector<12x192xf32>
    %170 = arith.addf %169, %168 : vector<12x192xf32>
    %171 = arith.mulf %157, %170 : vector<12x192xf32>
    %cst_80 = arith.constant 0.000000e+00 : f32
    %172 = vector.broadcast %cst_80 : f32 to vector<12x192xf32>
    %173 = arith.subf %172, %148 : vector<12x192xf32>
    %174 = arith.mulf %173, %148 : vector<12x192xf32>
    %175 = math.exp %174 : vector<12x192xf32>
    %176 = arith.mulf %171, %175 : vector<12x192xf32>
    %cst_81 = arith.constant 1.000000e+00 : f32
    %177 = vector.broadcast %cst_81 : f32 to vector<12x192xf32>
    %178 = arith.subf %177, %176 : vector<12x192xf32>
    %cst_82 = arith.constant 0.000000e+00 : f32
    %179 = vector.broadcast %cst_82 : f32 to vector<12x192xf32>
    %180 = arith.cmpf olt, %147, %179 : vector<12x192xf32>
    %cst_83 = arith.constant 0.000000e+00 : f32
    %181 = vector.broadcast %cst_83 : f32 to vector<12x192xf32>
    %182 = arith.subf %181, %178 : vector<12x192xf32>
    %183 = arith.select %180, %182, %178 : vector<12x192xi1>, vector<12x192xf32>
    %cst_84 = arith.constant 1.000000e+00 : f32
    %184 = vector.broadcast %cst_84 : f32 to vector<12x192xf32>
    %185 = arith.addf %184, %183 : vector<12x192xf32>
    %186 = arith.mulf %145, %185 : vector<12x192xf32>
    %187 = vector.extract_strided_slice %186 {offsets = [0, 0], sizes = [10, 192], strides = [1, 1]} : vector<12x192xf32> to vector<10x192xf32>
    %188 = arith.truncf %187 : vector<10x192xf32> to vector<10x192xbf16>
    %c0_85 = arith.constant 0 : index
    %c0_86 = arith.constant 0 : index
    %c0_87 = arith.constant 0 : index
    %189 = vector.load %arg11[%c0_85, %c0_86, %c0_87] : memref<3x192x320xbf16, #tpu.memory_space<vmem>>, vector<1x192x320xbf16>
    %190 = vector.shape_cast %189 : vector<1x192x320xbf16> to vector<192x320xbf16>
    %cst_88 = arith.constant dense<0.000000e+00> : vector<10x320xf32>
    %191 = tpu.matmul %188, %190, %cst_88 {dimension_numbers = #tpu.dot_dimension_numbers<[1], [0], [0], [1], [0, 0, 1, 1], [], []>} : vector<10x192xbf16>, vector<192x320xbf16>, vector<10x320xf32> -> vector<10x320xf32>
    %192 = vector.extract_strided_slice %186 {offsets = [1, 0], sizes = [10, 192], strides = [1, 1]} : vector<12x192xf32> to vector<10x192xf32>
    %193 = arith.truncf %192 : vector<10x192xf32> to vector<10x192xbf16>
    %c1_89 = arith.constant 1 : index
    %c0_90 = arith.constant 0 : index
    %c0_91 = arith.constant 0 : index
    %194 = vector.load %arg11[%c1_89, %c0_90, %c0_91] : memref<3x192x320xbf16, #tpu.memory_space<vmem>>, vector<1x192x320xbf16>
    %195 = vector.shape_cast %194 : vector<1x192x320xbf16> to vector<192x320xbf16>
    %cst_92 = arith.constant dense<0.000000e+00> : vector<10x320xf32>
    %196 = tpu.matmul %193, %195, %cst_92 {dimension_numbers = #tpu.dot_dimension_numbers<[1], [0], [0], [1], [0, 0, 1, 1], [], []>} : vector<10x192xbf16>, vector<192x320xbf16>, vector<10x320xf32> -> vector<10x320xf32>
    %197 = arith.addf %191, %196 : vector<10x320xf32>
    %198 = vector.extract_strided_slice %186 {offsets = [2, 0], sizes = [10, 192], strides = [1, 1]} : vector<12x192xf32> to vector<10x192xf32>
    %199 = arith.truncf %198 : vector<10x192xf32> to vector<10x192xbf16>
    %c2_93 = arith.constant 2 : index
    %c0_94 = arith.constant 0 : index
    %c0_95 = arith.constant 0 : index
    %200 = vector.load %arg11[%c2_93, %c0_94, %c0_95] : memref<3x192x320xbf16, #tpu.memory_space<vmem>>, vector<1x192x320xbf16>
    %201 = vector.shape_cast %200 : vector<1x192x320xbf16> to vector<192x320xbf16>
    %cst_96 = arith.constant dense<0.000000e+00> : vector<10x320xf32>
    %202 = tpu.matmul %199, %201, %cst_96 {dimension_numbers = #tpu.dot_dimension_numbers<[1], [0], [0], [1], [0, 0, 1, 1], [], []>} : vector<10x192xbf16>, vector<192x320xbf16>, vector<10x320xf32> -> vector<10x320xf32>
    %203 = arith.addf %197, %202 : vector<10x320xf32>
    %c0_97 = arith.constant 0 : index
    %c0_98 = arith.constant 0 : index
    %204 = vector.load %arg12[%c0_97, %c0_98] : memref<1x320xf32, #tpu.memory_space<vmem>>, vector<1x320xf32>
    %205 = vector.broadcast %204 : vector<1x320xf32> to vector<10x320xf32>
    %206 = arith.addf %203, %205 : vector<10x320xf32>
    %cst_99 = arith.constant 5.000000e-01 : f32
    %207 = vector.broadcast %cst_99 : f32 to vector<10x320xf32>
    %208 = arith.mulf %207, %206 : vector<10x320xf32>
    %cst_100 = arith.constant 0.707106769 : f32
    %209 = vector.broadcast %cst_100 : f32 to vector<10x320xf32>
    %210 = arith.mulf %206, %209 : vector<10x320xf32>
    %211 = math.absf %210 : vector<10x320xf32>
    %cst_101 = arith.constant 0.327591091 : f32
    %212 = vector.broadcast %cst_101 : f32 to vector<10x320xf32>
    %213 = arith.mulf %212, %211 : vector<10x320xf32>
    %cst_102 = arith.constant 1.000000e+00 : f32
    %214 = vector.broadcast %cst_102 : f32 to vector<10x320xf32>
    %215 = arith.addf %214, %213 : vector<10x320xf32>
    %216 = tpu.reciprocal %215 {approx = true} : vector<10x320xf32> -> vector<10x320xf32>
    %217 = arith.mulf %215, %216 : vector<10x320xf32>
    %cst_103 = arith.constant 2.000000e+00 : f32
    %218 = vector.broadcast %cst_103 : f32 to vector<10x320xf32>
    %219 = arith.subf %218, %217 : vector<10x320xf32>
    %220 = arith.mulf %216, %219 : vector<10x320xf32>
    %cst_104 = arith.constant 1.06140542 : f32
    %221 = vector.broadcast %cst_104 : f32 to vector<10x320xf32>
    %222 = arith.mulf %220, %221 : vector<10x320xf32>
    %cst_105 = arith.constant -1.45315206 : f32
    %223 = vector.broadcast %cst_105 : f32 to vector<10x320xf32>
    %224 = arith.addf %223, %222 : vector<10x320xf32>
    %225 = arith.mulf %220, %224 : vector<10x320xf32>
    %cst_106 = arith.constant 1.42141378 : f32
    %226 = vector.broadcast %cst_106 : f32 to vector<10x320xf32>
    %227 = arith.addf %226, %225 : vector<10x320xf32>
    %228 = arith.mulf %220, %227 : vector<10x320xf32>
    %cst_107 = arith.constant -0.284496725 : f32
    %229 = vector.broadcast %cst_107 : f32 to vector<10x320xf32>
    %230 = arith.addf %229, %228 : vector<10x320xf32>
    %231 = arith.mulf %220, %230 : vector<10x320xf32>
    %cst_108 = arith.constant 0.254829586 : f32
    %232 = vector.broadcast %cst_108 : f32 to vector<10x320xf32>
    %233 = arith.addf %232, %231 : vector<10x320xf32>
    %234 = arith.mulf %220, %233 : vector<10x320xf32>
    %cst_109 = arith.constant 0.000000e+00 : f32
    %235 = vector.broadcast %cst_109 : f32 to vector<10x320xf32>
    %236 = arith.subf %235, %211 : vector<10x320xf32>
    %237 = arith.mulf %236, %211 : vector<10x320xf32>
    %238 = math.exp %237 : vector<10x320xf32>
    %239 = arith.mulf %234, %238 : vector<10x320xf32>
    %cst_110 = arith.constant 1.000000e+00 : f32
    %240 = vector.broadcast %cst_110 : f32 to vector<10x320xf32>
    %241 = arith.subf %240, %239 : vector<10x320xf32>
    %cst_111 = arith.constant 0.000000e+00 : f32
    %242 = vector.broadcast %cst_111 : f32 to vector<10x320xf32>
    %243 = arith.cmpf olt, %210, %242 : vector<10x320xf32>
    %cst_112 = arith.constant 0.000000e+00 : f32
    %244 = vector.broadcast %cst_112 : f32 to vector<10x320xf32>
    %245 = arith.subf %244, %241 : vector<10x320xf32>
    %246 = arith.select %243, %245, %241 : vector<10x320xi1>, vector<10x320xf32>
    %cst_113 = arith.constant 1.000000e+00 : f32
    %247 = vector.broadcast %cst_113 : f32 to vector<10x320xf32>
    %248 = arith.addf %247, %246 : vector<10x320xf32>
    %249 = arith.mulf %208, %248 : vector<10x320xf32>
    %c0_114 = arith.constant 0 : index
    %c0_115 = arith.constant 0 : index
    %250 = vector.load %arg13[%c0_114, %c0_115] : memref<1x320xf32, #tpu.memory_space<vmem>>, vector<1x320xf32>
    %251 = vector.broadcast %250 : vector<1x320xf32> to vector<10x320xf32>
    %252 = arith.mulf %249, %251 : vector<10x320xf32>
    %c0_116 = arith.constant 0 : index
    %c0_117 = arith.constant 0 : index
    %253 = vector.load %arg14[%c0_116, %c0_117] : memref<1x320xf32, #tpu.memory_space<vmem>>, vector<1x320xf32>
    %254 = vector.broadcast %253 : vector<1x320xf32> to vector<10x320xf32>
    %255 = arith.addf %252, %254 : vector<10x320xf32>
    %256 = vector.extract_strided_slice %255 {offsets = [0, 0], sizes = [9, 320], strides = [1, 1]} : vector<10x320xf32> to vector<9x320xf32>
    %257 = vector.extract_strided_slice %255 {offsets = [1, 0], sizes = [9, 320], strides = [1, 1]} : vector<10x320xf32> to vector<9x320xf32>
    %258 = arith.maximumf %256, %257 : vector<9x320xf32>
    %c0_118 = arith.constant 0 : index
    %c0_119 = arith.constant 0 : index
    %259 = vector.load %arg16[%c0_118, %c0_119] : memref<320x160xf32, #tpu.memory_space<vmem>>, vector<320x160xf32>
    %cst_120 = arith.constant dense<0.000000e+00> : vector<9x160xf32>
    %260 = tpu.matmul %258, %259, %cst_120 {dimension_numbers = #tpu.dot_dimension_numbers<[1], [0], [0], [1], [0, 0, 1, 1], [], []>} : vector<9x320xf32>, vector<320x160xf32>, vector<9x160xf32> -> vector<9x160xf32>
    %c0_121 = arith.constant 0 : index
    %c0_122 = arith.constant 0 : index
    %261 = vector.load %arg17[%c0_121, %c0_122] : memref<320x160xf32, #tpu.memory_space<vmem>>, vector<320x160xf32>
    %cst_123 = arith.constant dense<0.000000e+00> : vector<9x160xf32>
    %262 = tpu.matmul %258, %261, %cst_123 {dimension_numbers = #tpu.dot_dimension_numbers<[1], [0], [0], [1], [0, 0, 1, 1], [], []>} : vector<9x320xf32>, vector<320x160xf32>, vector<9x160xf32> -> vector<9x160xf32>
    %c0_124 = arith.constant 0 : index
    %c0_125 = arith.constant 0 : index
    %263 = vector.load %arg15[%c0_124, %c0_125] : memref<5x9xf32, #tpu.memory_space<vmem>>, vector<5x9xf32>
    %264 = arith.maximumf %260, %262 : vector<9x160xf32>
    %cst_126 = arith.constant dense<0.000000e+00> : vector<5x160xf32>
    %265 = tpu.matmul %263, %264, %cst_126 {dimension_numbers = #tpu.dot_dimension_numbers<[1], [0], [0], [1], [0, 0, 1, 1], [], []>} : vector<5x9xf32>, vector<9x160xf32>, vector<5x160xf32> -> vector<5x160xf32>
    %cst_127 = arith.constant 5.000000e-01 : f32
    %266 = vector.broadcast %cst_127 : f32 to vector<5x160xf32>
    %267 = arith.mulf %266, %265 : vector<5x160xf32>
    %cst_128 = arith.constant 0.707106769 : f32
    %268 = vector.broadcast %cst_128 : f32 to vector<5x160xf32>
    %269 = arith.mulf %265, %268 : vector<5x160xf32>
    %270 = math.absf %269 : vector<5x160xf32>
    %cst_129 = arith.constant 0.327591091 : f32
    %271 = vector.broadcast %cst_129 : f32 to vector<5x160xf32>
    %272 = arith.mulf %271, %270 : vector<5x160xf32>
    %cst_130 = arith.constant 1.000000e+00 : f32
    %273 = vector.broadcast %cst_130 : f32 to vector<5x160xf32>
    %274 = arith.addf %273, %272 : vector<5x160xf32>
    %275 = tpu.reciprocal %274 {approx = true} : vector<5x160xf32> -> vector<5x160xf32>
    %276 = arith.mulf %274, %275 : vector<5x160xf32>
    %cst_131 = arith.constant 2.000000e+00 : f32
    %277 = vector.broadcast %cst_131 : f32 to vector<5x160xf32>
    %278 = arith.subf %277, %276 : vector<5x160xf32>
    %279 = arith.mulf %275, %278 : vector<5x160xf32>
    %cst_132 = arith.constant 1.06140542 : f32
    %280 = vector.broadcast %cst_132 : f32 to vector<5x160xf32>
    %281 = arith.mulf %279, %280 : vector<5x160xf32>
    %cst_133 = arith.constant -1.45315206 : f32
    %282 = vector.broadcast %cst_133 : f32 to vector<5x160xf32>
    %283 = arith.addf %282, %281 : vector<5x160xf32>
    %284 = arith.mulf %279, %283 : vector<5x160xf32>
    %cst_134 = arith.constant 1.42141378 : f32
    %285 = vector.broadcast %cst_134 : f32 to vector<5x160xf32>
    %286 = arith.addf %285, %284 : vector<5x160xf32>
    %287 = arith.mulf %279, %286 : vector<5x160xf32>
    %cst_135 = arith.constant -0.284496725 : f32
    %288 = vector.broadcast %cst_135 : f32 to vector<5x160xf32>
    %289 = arith.addf %288, %287 : vector<5x160xf32>
    %290 = arith.mulf %279, %289 : vector<5x160xf32>
    %cst_136 = arith.constant 0.254829586 : f32
    %291 = vector.broadcast %cst_136 : f32 to vector<5x160xf32>
    %292 = arith.addf %291, %290 : vector<5x160xf32>
    %293 = arith.mulf %279, %292 : vector<5x160xf32>
    %cst_137 = arith.constant 0.000000e+00 : f32
    %294 = vector.broadcast %cst_137 : f32 to vector<5x160xf32>
    %295 = arith.subf %294, %270 : vector<5x160xf32>
    %296 = arith.mulf %295, %270 : vector<5x160xf32>
    %297 = math.exp %296 : vector<5x160xf32>
    %298 = arith.mulf %293, %297 : vector<5x160xf32>
    %cst_138 = arith.constant 1.000000e+00 : f32
    %299 = vector.broadcast %cst_138 : f32 to vector<5x160xf32>
    %300 = arith.subf %299, %298 : vector<5x160xf32>
    %cst_139 = arith.constant 0.000000e+00 : f32
    %301 = vector.broadcast %cst_139 : f32 to vector<5x160xf32>
    %302 = arith.cmpf olt, %269, %301 : vector<5x160xf32>
    %cst_140 = arith.constant 0.000000e+00 : f32
    %303 = vector.broadcast %cst_140 : f32 to vector<5x160xf32>
    %304 = arith.subf %303, %300 : vector<5x160xf32>
    %305 = arith.select %302, %304, %300 : vector<5x160xi1>, vector<5x160xf32>
    %cst_141 = arith.constant 1.000000e+00 : f32
    %306 = vector.broadcast %cst_141 : f32 to vector<5x160xf32>
    %307 = arith.addf %306, %305 : vector<5x160xf32>
    %308 = arith.mulf %267, %307 : vector<5x160xf32>
    %309 = vector.extract_strided_slice %308 {offsets = [0, 0], sizes = [3, 160], strides = [1, 1]} : vector<5x160xf32> to vector<3x160xf32>
    %310 = arith.truncf %309 : vector<3x160xf32> to vector<3x160xbf16>
    %c0_142 = arith.constant 0 : index
    %c0_143 = arith.constant 0 : index
    %c0_144 = arith.constant 0 : index
    %311 = vector.load %arg18[%c0_142, %c0_143, %c0_144] : memref<3x160x96xbf16, #tpu.memory_space<vmem>>, vector<1x160x96xbf16>
    %312 = vector.shape_cast %311 : vector<1x160x96xbf16> to vector<160x96xbf16>
    %cst_145 = arith.constant dense<0.000000e+00> : vector<3x96xf32>
    %313 = tpu.matmul %310, %312, %cst_145 {dimension_numbers = #tpu.dot_dimension_numbers<[1], [0], [0], [1], [0, 0, 1, 1], [], []>} : vector<3x160xbf16>, vector<160x96xbf16>, vector<3x96xf32> -> vector<3x96xf32>
    %314 = vector.extract_strided_slice %308 {offsets = [1, 0], sizes = [3, 160], strides = [1, 1]} : vector<5x160xf32> to vector<3x160xf32>
    %315 = arith.truncf %314 : vector<3x160xf32> to vector<3x160xbf16>
    %c1_146 = arith.constant 1 : index
    %c0_147 = arith.constant 0 : index
    %c0_148 = arith.constant 0 : index
    %316 = vector.load %arg18[%c1_146, %c0_147, %c0_148] : memref<3x160x96xbf16, #tpu.memory_space<vmem>>, vector<1x160x96xbf16>
    %317 = vector.shape_cast %316 : vector<1x160x96xbf16> to vector<160x96xbf16>
    %cst_149 = arith.constant dense<0.000000e+00> : vector<3x96xf32>
    %318 = tpu.matmul %315, %317, %cst_149 {dimension_numbers = #tpu.dot_dimension_numbers<[1], [0], [0], [1], [0, 0, 1, 1], [], []>} : vector<3x160xbf16>, vector<160x96xbf16>, vector<3x96xf32> -> vector<3x96xf32>
    %319 = arith.addf %313, %318 : vector<3x96xf32>
    %320 = vector.extract_strided_slice %308 {offsets = [2, 0], sizes = [3, 160], strides = [1, 1]} : vector<5x160xf32> to vector<3x160xf32>
    %321 = arith.truncf %320 : vector<3x160xf32> to vector<3x160xbf16>
    %c2_150 = arith.constant 2 : index
    %c0_151 = arith.constant 0 : index
    %c0_152 = arith.constant 0 : index
    %322 = vector.load %arg18[%c2_150, %c0_151, %c0_152] : memref<3x160x96xbf16, #tpu.memory_space<vmem>>, vector<1x160x96xbf16>
    %323 = vector.shape_cast %322 : vector<1x160x96xbf16> to vector<160x96xbf16>
    %cst_153 = arith.constant dense<0.000000e+00> : vector<3x96xf32>
    %324 = tpu.matmul %321, %323, %cst_153 {dimension_numbers = #tpu.dot_dimension_numbers<[1], [0], [0], [1], [0, 0, 1, 1], [], []>} : vector<3x160xbf16>, vector<160x96xbf16>, vector<3x96xf32> -> vector<3x96xf32>
    %325 = arith.addf %319, %324 : vector<3x96xf32>
    %c0_154 = arith.constant 0 : index
    %c0_155 = arith.constant 0 : index
    %326 = vector.load %arg19[%c0_154, %c0_155] : memref<1x96xf32, #tpu.memory_space<vmem>>, vector<1x96xf32>
    %327 = vector.broadcast %326 : vector<1x96xf32> to vector<3x96xf32>
    %328 = arith.addf %325, %327 : vector<3x96xf32>
    %cst_156 = arith.constant 5.000000e-01 : f32
    %329 = vector.broadcast %cst_156 : f32 to vector<3x96xf32>
    %330 = arith.mulf %329, %328 : vector<3x96xf32>
    %cst_157 = arith.constant 0.707106769 : f32
    %331 = vector.broadcast %cst_157 : f32 to vector<3x96xf32>
    %332 = arith.mulf %328, %331 : vector<3x96xf32>
    %333 = math.absf %332 : vector<3x96xf32>
    %cst_158 = arith.constant 0.327591091 : f32
    %334 = vector.broadcast %cst_158 : f32 to vector<3x96xf32>
    %335 = arith.mulf %334, %333 : vector<3x96xf32>
    %cst_159 = arith.constant 1.000000e+00 : f32
    %336 = vector.broadcast %cst_159 : f32 to vector<3x96xf32>
    %337 = arith.addf %336, %335 : vector<3x96xf32>
    %338 = tpu.reciprocal %337 {approx = true} : vector<3x96xf32> -> vector<3x96xf32>
    %339 = arith.mulf %337, %338 : vector<3x96xf32>
    %cst_160 = arith.constant 2.000000e+00 : f32
    %340 = vector.broadcast %cst_160 : f32 to vector<3x96xf32>
    %341 = arith.subf %340, %339 : vector<3x96xf32>
    %342 = arith.mulf %338, %341 : vector<3x96xf32>
    %cst_161 = arith.constant 1.06140542 : f32
    %343 = vector.broadcast %cst_161 : f32 to vector<3x96xf32>
    %344 = arith.mulf %342, %343 : vector<3x96xf32>
    %cst_162 = arith.constant -1.45315206 : f32
    %345 = vector.broadcast %cst_162 : f32 to vector<3x96xf32>
    %346 = arith.addf %345, %344 : vector<3x96xf32>
    %347 = arith.mulf %342, %346 : vector<3x96xf32>
    %cst_163 = arith.constant 1.42141378 : f32
    %348 = vector.broadcast %cst_163 : f32 to vector<3x96xf32>
    %349 = arith.addf %348, %347 : vector<3x96xf32>
    %350 = arith.mulf %342, %349 : vector<3x96xf32>
    %cst_164 = arith.constant -0.284496725 : f32
    %351 = vector.broadcast %cst_164 : f32 to vector<3x96xf32>
    %352 = arith.addf %351, %350 : vector<3x96xf32>
    %353 = arith.mulf %342, %352 : vector<3x96xf32>
    %cst_165 = arith.constant 0.254829586 : f32
    %354 = vector.broadcast %cst_165 : f32 to vector<3x96xf32>
    %355 = arith.addf %354, %353 : vector<3x96xf32>
    %356 = arith.mulf %342, %355 : vector<3x96xf32>
    %cst_166 = arith.constant 0.000000e+00 : f32
    %357 = vector.broadcast %cst_166 : f32 to vector<3x96xf32>
    %358 = arith.subf %357, %333 : vector<3x96xf32>
    %359 = arith.mulf %358, %333 : vector<3x96xf32>
    %360 = math.exp %359 : vector<3x96xf32>
    %361 = arith.mulf %356, %360 : vector<3x96xf32>
    %cst_167 = arith.constant 1.000000e+00 : f32
    %362 = vector.broadcast %cst_167 : f32 to vector<3x96xf32>
    %363 = arith.subf %362, %361 : vector<3x96xf32>
    %cst_168 = arith.constant 0.000000e+00 : f32
    %364 = vector.broadcast %cst_168 : f32 to vector<3x96xf32>
    %365 = arith.cmpf olt, %332, %364 : vector<3x96xf32>
    %cst_169 = arith.constant 0.000000e+00 : f32
    %366 = vector.broadcast %cst_169 : f32 to vector<3x96xf32>
    %367 = arith.subf %366, %363 : vector<3x96xf32>
    %368 = arith.select %365, %367, %363 : vector<3x96xi1>, vector<3x96xf32>
    %cst_170 = arith.constant 1.000000e+00 : f32
    %369 = vector.broadcast %cst_170 : f32 to vector<3x96xf32>
    %370 = arith.addf %369, %368 : vector<3x96xf32>
    %371 = arith.mulf %330, %370 : vector<3x96xf32>
    %372 = vector.extract_strided_slice %371 {offsets = [0, 0], sizes = [2, 96], strides = [1, 1]} : vector<3x96xf32> to vector<2x96xf32>
    %373 = arith.truncf %372 : vector<2x96xf32> to vector<2x96xbf16>
    %c0_171 = arith.constant 0 : index
    %c0_172 = arith.constant 0 : index
    %c0_173 = arith.constant 0 : index
    %374 = vector.load %arg20[%c0_171, %c0_172, %c0_173] : memref<2x96x64xbf16, #tpu.memory_space<vmem>>, vector<1x96x64xbf16>
    %375 = vector.shape_cast %374 : vector<1x96x64xbf16> to vector<96x64xbf16>
    %cst_174 = arith.constant dense<0.000000e+00> : vector<2x64xf32>
    %376 = tpu.matmul %373, %375, %cst_174 {dimension_numbers = #tpu.dot_dimension_numbers<[1], [0], [0], [1], [0, 0, 1, 1], [], []>} : vector<2x96xbf16>, vector<96x64xbf16>, vector<2x64xf32> -> vector<2x64xf32>
    %377 = vector.extract_strided_slice %371 {offsets = [1, 0], sizes = [2, 96], strides = [1, 1]} : vector<3x96xf32> to vector<2x96xf32>
    %378 = arith.truncf %377 : vector<2x96xf32> to vector<2x96xbf16>
    %c1_175 = arith.constant 1 : index
    %c0_176 = arith.constant 0 : index
    %c0_177 = arith.constant 0 : index
    %379 = vector.load %arg20[%c1_175, %c0_176, %c0_177] : memref<2x96x64xbf16, #tpu.memory_space<vmem>>, vector<1x96x64xbf16>
    %380 = vector.shape_cast %379 : vector<1x96x64xbf16> to vector<96x64xbf16>
    %cst_178 = arith.constant dense<0.000000e+00> : vector<2x64xf32>
    %381 = tpu.matmul %378, %380, %cst_178 {dimension_numbers = #tpu.dot_dimension_numbers<[1], [0], [0], [1], [0, 0, 1, 1], [], []>} : vector<2x96xbf16>, vector<96x64xbf16>, vector<2x64xf32> -> vector<2x64xf32>
    %382 = arith.addf %376, %381 : vector<2x64xf32>
    %c0_179 = arith.constant 0 : index
    %c0_180 = arith.constant 0 : index
    %383 = vector.load %arg21[%c0_179, %c0_180] : memref<1x64xf32, #tpu.memory_space<vmem>>, vector<1x64xf32>
    %384 = vector.broadcast %383 : vector<1x64xf32> to vector<2x64xf32>
    %385 = arith.addf %382, %384 : vector<2x64xf32>
    %386 = vector.extract_strided_slice %385 {offsets = [0, 0], sizes = [1, 64], strides = [1, 1]} : vector<2x64xf32> to vector<1x64xf32>
    %387 = arith.truncf %386 : vector<1x64xf32> to vector<1x64xbf16>
    %c0_181 = arith.constant 0 : index
    %c0_182 = arith.constant 0 : index
    %c0_183 = arith.constant 0 : index
    %388 = vector.load %arg22[%c0_181, %c0_182, %c0_183] : memref<2x64x10xbf16, #tpu.memory_space<vmem>>, vector<1x64x10xbf16>
    %389 = vector.shape_cast %388 : vector<1x64x10xbf16> to vector<64x10xbf16>
    %cst_184 = arith.constant dense<0.000000e+00> : vector<1x10xf32>
    %390 = tpu.matmul %387, %389, %cst_184 {dimension_numbers = #tpu.dot_dimension_numbers<[1], [0], [0], [1], [0, 0, 1, 1], [], []>} : vector<1x64xbf16>, vector<64x10xbf16>, vector<1x10xf32> -> vector<1x10xf32>
    %391 = vector.extract_strided_slice %385 {offsets = [1, 0], sizes = [1, 64], strides = [1, 1]} : vector<2x64xf32> to vector<1x64xf32>
    %392 = arith.truncf %391 : vector<1x64xf32> to vector<1x64xbf16>
    %c1_185 = arith.constant 1 : index
    %c0_186 = arith.constant 0 : index
    %c0_187 = arith.constant 0 : index
    %393 = vector.load %arg22[%c1_185, %c0_186, %c0_187] : memref<2x64x10xbf16, #tpu.memory_space<vmem>>, vector<1x64x10xbf16>
    %394 = vector.shape_cast %393 : vector<1x64x10xbf16> to vector<64x10xbf16>
    %cst_188 = arith.constant dense<0.000000e+00> : vector<1x10xf32>
    %395 = tpu.matmul %392, %394, %cst_188 {dimension_numbers = #tpu.dot_dimension_numbers<[1], [0], [0], [1], [0, 0, 1, 1], [], []>} : vector<1x64xbf16>, vector<64x10xbf16>, vector<1x10xf32> -> vector<1x10xf32>
    %396 = arith.addf %390, %395 : vector<1x10xf32>
    %c0_189 = arith.constant 0 : index
    %c0_190 = arith.constant 0 : index
    %397 = vector.load %arg23[%c0_189, %c0_190] : memref<1x10xf32, #tpu.memory_space<vmem>>, vector<1x10xf32>
    %398 = arith.addf %396, %397 : vector<1x10xf32>
    %cst_191 = arith.constant dense<0xFF800000> : vector<1xf32>
    %399 = vector.multi_reduction <maximumf>, %398, %cst_191 [1] : vector<1x10xf32> to vector<1xf32>
    %400 = vector.shape_cast %399 : vector<1xf32> to vector<1x1xf32>
    %401 = vector.broadcast %400 : vector<1x1xf32> to vector<1x10xf32>
    %402 = arith.subf %398, %401 : vector<1x10xf32>
    %403 = math.exp %402 : vector<1x10xf32>
    %cst_192 = arith.constant dense<0.000000e+00> : vector<1xf32>
    %404 = vector.multi_reduction <add>, %403, %cst_192 [1] : vector<1x10xf32> to vector<1xf32>
    %405 = vector.shape_cast %404 : vector<1xf32> to vector<1x1xf32>
    %406 = math.log %405 : vector<1x1xf32>
    %407 = vector.broadcast %406 : vector<1x1xf32> to vector<1x10xf32>
    %408 = arith.subf %402, %407 : vector<1x10xf32>
    %c0_193 = arith.constant 0 : index
    %c0_194 = arith.constant 0 : index
    %c0_195 = arith.constant 0 : index
    %409 = vector.load %arg24[%c0_193, %c0_194, %c0_195] : memref<1x1x10xf32, #tpu.memory_space<vmem>>, vector<1x1x10xf32>
    %410 = vector.shape_cast %409 : vector<1x1x10xf32> to vector<1x10xf32>
    %411 = vector.shape_cast %408 : vector<1x10xf32> to vector<1x1x10xf32>
    tpu.vector_store %arg24[%c0_193, %c0_194, %c0_195], %411 {strides = array<i32>} : memref<1x1x10xf32, #tpu.memory_space<vmem>>, vector<1x1x10xf32>,
    return
  }
  func.func @transform_0(%arg0: i32) -> (i32, i32, i32) {
    %c0_i32 = arith.constant 0 : i32
    %c0_i32_0 = arith.constant 0 : i32
    %c0_i32_1 = arith.constant 0 : i32
    return %arg0, %c0_i32, %c0_i32_0 : i32, i32, i32
  }
  func.func @transform_1(%arg0: i32) -> (i32, i32, i32) {
    %c0_i32 = arith.constant 0 : i32
    %c0_i32_0 = arith.constant 0 : i32
    %c0_i32_1 = arith.constant 0 : i32
    %c0_i32_2 = arith.constant 0 : i32
    return %c0_i32, %c0_i32_0, %c0_i32_1 : i32, i32, i32
  }
  func.func @transform_2(%arg0: i32) -> (i32, i32) {
    %c0_i32 = arith.constant 0 : i32
    %c0_i32_0 = arith.constant 0 : i32
    %c0_i32_1 = arith.constant 0 : i32
    return %c0_i32, %c0_i32_0 : i32, i32
  }
  func.func @transform_3(%arg0: i32) -> (i32, i32, i32) {
    %c0_i32 = arith.constant 0 : i32
    %c0_i32_0 = arith.constant 0 : i32
    %c0_i32_1 = arith.constant 0 : i32
    %c0_i32_2 = arith.constant 0 : i32
    return %c0_i32, %c0_i32_0, %c0_i32_1 : i32, i32, i32
  }
  func.func @transform_4(%arg0: i32) -> (i32, i32) {
    %c0_i32 = arith.constant 0 : i32
    %c0_i32_0 = arith.constant 0 : i32
    %c0_i32_1 = arith.constant 0 : i32
    return %c0_i32, %c0_i32_0 : i32, i32
  }
  func.func @transform_5(%arg0: i32) -> (i32, i32) {
    %c0_i32 = arith.constant 0 : i32
    %c0_i32_0 = arith.constant 0 : i32
    %c0_i32_1 = arith.constant 0 : i32
    return %c0_i32, %c0_i32_0 : i32, i32
  }
  func.func @transform_6(%arg0: i32) -> (i32, i32) {
    %c0_i32 = arith.constant 0 : i32
    %c0_i32_0 = arith.constant 0 : i32
    %c0_i32_1 = arith.constant 0 : i32
    return %c0_i32, %c0_i32_0 : i32, i32
  }
  func.func @transform_7(%arg0: i32) -> (i32, i32) {
    %c0_i32 = arith.constant 0 : i32
    %c0_i32_0 = arith.constant 0 : i32
    %c0_i32_1 = arith.constant 0 : i32
    return %c0_i32, %c0_i32_0 : i32, i32
  }
  func.func @transform_8(%arg0: i32) -> (i32, i32) {
    %c0_i32 = arith.constant 0 : i32
    %c0_i32_0 = arith.constant 0 : i32
    %c0_i32_1 = arith.constant 0 : i32
    return %c0_i32, %c0_i32_0 : i32, i32
  }
  func.func @transform_9(%arg0: i32) -> (i32, i32) {
    %c0_i32 = arith.constant 0 : i32
    %c0_i32_0 = arith.constant 0 : i32
    %c0_i32_1 = arith.constant 0 : i32
    return %c0_i32, %c0_i32_0 : i32, i32
  }
  func.func @transform_10(%arg0: i32) -> (i32, i32, i32) {
    %c0_i32 = arith.constant 0 : i32
    %c0_i32_0 = arith.constant 0 : i32
    %c0_i32_1 = arith.constant 0 : i32
    %c0_i32_2 = arith.constant 0 : i32
    return %c0_i32, %c0_i32_0, %c0_i32_1 : i32, i32, i32
  }
  func.func @transform_11(%arg0: i32) -> (i32, i32) {
    %c0_i32 = arith.constant 0 : i32
    %c0_i32_0 = arith.constant 0 : i32
    %c0_i32_1 = arith.constant 0 : i32
    return %c0_i32, %c0_i32_0 : i32, i32
  }
  func.func @transform_12(%arg0: i32) -> (i32, i32) {
    %c0_i32 = arith.constant 0 : i32
    %c0_i32_0 = arith.constant 0 : i32
    %c0_i32_1 = arith.constant 0 : i32
    return %c0_i32, %c0_i32_0 : i32, i32
  }
  func.func @transform_13(%arg0: i32) -> (i32, i32) {
    %c0_i32 = arith.constant 0 : i32
    %c0_i32_0 = arith.constant 0 : i32
    %c0_i32_1 = arith.constant 0 : i32
    return %c0_i32, %c0_i32_0 : i32, i32
  }
  func.func @transform_14(%arg0: i32) -> (i32, i32) {
    %c0_i32 = arith.constant 0 : i32
    %c0_i32_0 = arith.constant 0 : i32
    %c0_i32_1 = arith.constant 0 : i32
    return %c0_i32, %c0_i32_0 : i32, i32
  }
  func.func @transform_15(%arg0: i32) -> (i32, i32) {
    %c0_i32 = arith.constant 0 : i32
    %c0_i32_0 = arith.constant 0 : i32
    %c0_i32_1 = arith.constant 0 : i32
    return %c0_i32, %c0_i32_0 : i32, i32
  }
  func.func @transform_16(%arg0: i32) -> (i32, i32) {
    %c0_i32 = arith.constant 0 : i32
    %c0_i32_0 = arith.constant 0 : i32
    %c0_i32_1 = arith.constant 0 : i32
    return %c0_i32, %c0_i32_0 : i32, i32
  }
  func.func @transform_17(%arg0: i32) -> (i32, i32, i32) {
    %c0_i32 = arith.constant 0 : i32
    %c0_i32_0 = arith.constant 0 : i32
    %c0_i32_1 = arith.constant 0 : i32
    %c0_i32_2 = arith.constant 0 : i32
    return %c0_i32, %c0_i32_0, %c0_i32_1 : i32, i32, i32
  }
  func.func @transform_18(%arg0: i32) -> (i32, i32) {
    %c0_i32 = arith.constant 0 : i32
    %c0_i32_0 = arith.constant 0 : i32
    %c0_i32_1 = arith.constant 0 : i32
    return %c0_i32, %c0_i32_0 : i32, i32
  }
  func.func @transform_19(%arg0: i32) -> (i32, i32, i32) {
    %c0_i32 = arith.constant 0 : i32
    %c0_i32_0 = arith.constant 0 : i32
    %c0_i32_1 = arith.constant 0 : i32
    %c0_i32_2 = arith.constant 0 : i32
    return %c0_i32, %c0_i32_0, %c0_i32_1 : i32, i32, i32
  }
  func.func @transform_20(%arg0: i32) -> (i32, i32) {
    %c0_i32 = arith.constant 0 : i32
    %c0_i32_0 = arith.constant 0 : i32
    %c0_i32_1 = arith.constant 0 : i32
    return %c0_i32, %c0_i32_0 : i32, i32
  }
  func.func @transform_21(%arg0: i32) -> (i32, i32, i32) {
    %c0_i32 = arith.constant 0 : i32
    %c0_i32_0 = arith.constant 0 : i32
    %c0_i32_1 = arith.constant 0 : i32
    %c0_i32_2 = arith.constant 0 : i32
    return %c0_i32, %c0_i32_0, %c0_i32_1 : i32, i32, i32
  }
  func.func @transform_22(%arg0: i32) -> (i32, i32) {
    %c0_i32 = arith.constant 0 : i32
    %c0_i32_0 = arith.constant 0 : i32
    %c0_i32_1 = arith.constant 0 : i32
    return %c0_i32, %c0_i32_0 : i32, i32
  }
  func.func @transform_23(%arg0: i32) -> (i32, i32, i32) {
    %c0_i32 = arith.constant 0 : i32
    %c0_i32_0 = arith.constant 0 : i32
    %c0_i32_1 = arith.constant 0 : i32
    return %arg0, %c0_i32, %c0_i32_0 : i32, i32, i32
  }
}

</mosaic_0001>

<bundles_post_ra>
// kernel: mnist_net_forward.1
= control target key start
LH: loop header
LB: loop body
LE: loop exit
PB: predicated region body
PF: predicated region fallthrough
CT: control target
= control target key end

     0   :  { %s10736_s0 = inlined_call_operand.vmem [shape: f32[2,28,28], index: 0, kind: input, shape index: {}]   ;;  %s10737_s1 = inlined_call_operand.vmem [shape: bf16[3,28,208], index: 1, kind: input, shape index: {}]   ;;  %s10738_s2 = inlined_call_operand.vmem [shape: f32[1,208], index: 2, kind: input, shape index: {}]   ;;  %s10739_s3 = inlined_call_operand.vmem [shape: bf16[3,208,384], index: 3, kind: input, shape index: {}]   ;;  %s10740_s4 = inlined_call_operand.vmem [shape: f32[1,384], index: 4, kind: input, shape index: {}]   ;;  %s10741_s5 = inlined_call_operand.vmem [shape: f32[1,384], index: 5, kind: input, shape index: {}]   ;;  %s10742_s6 = inlined_call_operand.vmem [shape: f32[1,384], index: 6, kind: input, shape index: {}]   ;;  %s10743_s7 = inlined_call_operand.vmem [shape: f32[12,23], index: 7, kind: input, shape index: {}]   ;;  %s10744_s8 = inlined_call_operand.vmem [shape: f32[384,192], index: 8, kind: input, shape index: {}]   ;;  %s10745_s9 = inlined_call_operand.vmem [shape: f32[384,192], index: 9, kind: input, shape index: {}]   ;;  %s10746_s10 = inlined_call_operand.vmem [shape: bf16[3,192,320], index: 10, kind: input, shape index: {}]   ;;  %s10747_s11 = inlined_call_operand.vmem [shape: f32[1,320], index: 11, kind: input, shape index: {}]   ;;  %s10748_s12 = inlined_call_operand.vmem [shape: f32[1,320], index: 12, kind: input, shape index: {}]   ;;  %s10749_s13 = inlined_call_operand.vmem [shape: f32[1,320], index: 13, kind: input, shape index: {}]   ;;  %s10750_s14 = inlined_call_operand.vmem [shape: f32[5,9], index: 14, kind: input, shape index: {}]   ;;  %s10751_s15 = inlined_call_operand.vmem [shape: f32[320,160], index: 15, kind: input, shape index: {}]   ;;  %s10752_s16 = inlined_call_operand.vmem [shape: f32[320,160], index: 16, kind: input, shape index: {}]   ;;  %s10753_s17 = inlined_call_operand.vmem [shape: bf16[3,160,96], index: 17, kind: input, shape index: {}]   ;;  %s10754_s18 = inlined_call_operand.vmem [shape: f32[1,96], index: 18, kind: input, shape index: {}]   ;;  %s10755_s19 = inlined_call_operand.vmem [shape: bf16[2,96,64], index: 19, kind: input, shape index: {}]   ;;  %s10756_s20 = inlined_call_operand.vmem [shape: f32[1,64], index: 20, kind: input, shape index: {}]   ;;  %s10757_s21 = inlined_call_operand.vmem [shape: bf16[2,64,10], index: 21, kind: input, shape index: {}]   ;;  %s10758_s22 = inlined_call_operand.vmem [shape: f32[1,10], index: 22, kind: input, shape index: {}]   ;;  %s10759_s23 = inlined_call_operand.hbm [shape: f32[2,1,10], index: 23, kind: output, shape index: {}]  }
   0x1   :  { %10773 = sst [smem:[#allocation11_spill]] %s10736_s0 }
   0x2   :  { %10774 = sst [smem:[#allocation12_spill]] %s10737_s1 }
   0x3   :  { %10775 = sst [smem:[#allocation13_spill]] %s10738_s2 }
   0x4   :  { %10776 = sst [smem:[#allocation14_spill]] %s10739_s3 }
   0x5   :  { %10777 = sst [smem:[#allocation15_spill]] %s10740_s4 }
   0x6   :  { %10778 = sst [smem:[#allocation16_spill]] %s10741_s5 }
   0x7   :  { %10779 = sst [smem:[#allocation17_spill]] %s10742_s6 }
   0x8   :  { %10780 = sst [smem:[#allocation18_spill]] %s10743_s7 }
   0x9   :  { %10781 = sst [smem:[#allocation19_spill]] %s10744_s8 }
   0xa   :  { %10782 = sst [smem:[#allocation20_spill]] %s10745_s9 }
   0xb   :  { %10783 = sst [smem:[#allocation21_spill]] %s10759_s23 }
   0xc   :  { %28 = vsyncpa [#allocation3], 0 }
   0xd   :  { %30 = vsyncpa [#allocation3 + $0x1], 0  ;;  %s7716_s4 = smov 0   ;;  %s7718_s30 = smov 0  }
   0xe   :  { %s7720_s24 = smov 0   ;;  %s7722_s25 = smov 0  }
   0xf LB: > { %10784 = sst [smem:[#allocation5_spill]] %s7578_s4  ;;  %s7737_s5 = sadd.s32 4294967295, %s7590_s25   ;;  %s7590_s25 = sphi %s7722_s25, %s10808_s25   ;;  %s7586_s24 = sphi %s7720_s24, %s10810_s24   ;;  %s7582_s30 = sphi %s7718_s30, %s10812_s30   ;;  %s7578_s4 = sphi %s7716_s4, %s10811_s4  }
  0x10   : > { %10785 = sst [smem:[#allocation6_spill]] %s7586_s24  ;;  %s6304_s1 = sadd.s32 4294967294, %s7590_s25  }
  0x11   : > { %10786 = sst [smem:[#allocation7_spill]] %s7590_s25  ;;  %s7741_s26 = sadd.s32 1, %s7590_s25  }
  0x12   : > { %10787 = sst [smem:[#allocation8_spill]] %s7741_s26  ;;  %s531_s2 = sadd.s32 1, %s7586_s24 }
  0x13   : > { %s528_s6 = ssub.s32 %s7590_s25, %s7741_s26  ;;  %p541_p0 = scmp.ne.s32.totalorder %s7586_s24, %s7582_s30 }
  0x14   : > { %p529_p1 = scmp.eq.s32.totalorder %s528_s6, 0  ;;  %p542_p2 = scmp.eq.s32.totalorder %s7737_s5, 1 }
  0x15   : > { %p547_p3 = scmp.ne.s32.totalorder %s7582_s30, %s7578_s4  ;;  %p548_p4 = scmp.eq.s32.totalorder %s6304_s1, 1 }
  0x16   : > { %s7752_s27 = scalar_select %p529_p1, %s7586_s24, %s531_s2  }
  0x17   : > { %p7754_p5 = por %p542_p2, %p541_p0  ;;  %p7758_p6 = por %p548_p4, %p547_p3 }
  0x18   : > { %10788 = sst [smem:[#allocation9_spill]] %s7752_s27  ;;  %p6307_p7 = scmp.ge.s32.totalorder %s7590_s25, 1 }
  0x19   : > { %s10790_s28 = scalar_select %p7758_p6, 1, 0 }
  0x1a   : > { %p640_p8 = scmp.lt.s32.totalorder %s7590_s25, 3 }
  0x1b   : > { %10791 = sst [smem:[#allocation10_spill]] %s10790_s28 }
  0x1c   : > { %p641_p9 = pnand %p6307_p7, %p640_p8 }
  0x1d   : > { %s10792_s0 = sld [smem:[#allocation12_spill]] (!%p641_p9)  ;;  %p703_p10 = scmp.lt.s32.totalorder (!%p641_p9), %s7737_s5, 1 }
  0x1e   : > { %644 = sbr.rel (%p641_p9) target bundleno = 3224 (0xc98), region = 112  ;;  %s10793_s25 = sld [smem:[#allocation11_spill]] (!%p641_p9) }
  0x1f   : > { %s10795_s24 = sld [smem:[#allocation13_spill]] (!%p641_p9)  ;;  %s6912_s28 = sshll.u32 (!%p641_p9), %s7737_s5, 4 }
  0x20   : > { %s10796_s8 = sld [smem:[#allocation19_spill]] (!%p641_p9) }
  0x21   : > { %s10797_s9 = sld [smem:[#allocation20_spill]] (!%p641_p9) }
  0x22   : > { %s10798_s26 = sld [smem:[#allocation15_spill]] (!%p641_p9) }
  0x23   : > { %v7038_v0 = vld [vmem:[%s10792_s0 + $0x34] ss:$8 sps:$4 sm:$0x3f]   ;;  %vm765_vm0 = vcmask 1045504   ;;  %v10770_v3 = vmov 0   ;;  %s704_s29 = scalar_select %p703_p10, %s7737_s5, 1 }
  0x24   : > { %6318 = vmatprep.subr.msk.bf16.mxu0 %vm765_vm0, %v7038_v0  ;;  %v7040_v1 = vld [vmem:[%s10792_s0 + $0x14] ss:$8 sps:$4 sm:$0x3f]   ;;  %v7042_v2 = vld [vmem:[%s10792_s0 + $0x30] ss:$8 sps:$4 sm:$0x3f]   ;;  %804 = vmatprep.mubr.bf16.mxu0 %v10770_v3 }
  0x25   : > { %v7043_v4 = vld [vmem:[%s10792_s0 + $0x10] ss:$8 sps:$4 sm:$0x3f]   ;;  %v7044_v5 = vld [vmem:[%s10792_s0 + $0x24] ss:$8 sps:$4 sm:$0xff]   ;;  %885 = vmatprep.mubr.bf16.mxu1 %v10770_v3  ;;  %6325 = vmatprep.subr.msk.bf16.mxu1 %vm765_vm0, %v7040_v1  ;;  %v767_v6 = vsel %vm765_vm0, %v7042_v2, 0 }
  0x26   : > { %v7046_v7 = vld [vmem:[%s10792_s0 + $0x4] ss:$8 sps:$4 sm:$0xff]   ;;  %785 = vmatpush1.bf16.msra.mxu0 %v767_v6  ;;  %v848_v8 = vsel %vm765_vm0, %v7043_v4, 0  ;;  %v7048_v9 = vld [vmem:[%s10792_s0 + $0x20] ss:$8 sps:$4 sm:$0xff]   ;;  %s6915_s27 = sshll.u32 %s704_s29, 5 }
  0x27   : > { %866 = vmatpush1.bf16.msra.mxu1 %v848_v8  ;;  %786 = vmatprep.subr.bf16.mxu0 %v7044_v5  ;;  %v7049_v10 = vld [vmem:[%s10792_s0] ss:$8 sps:$4 sm:$0xff]   ;;  %v7050_v11 = vld [vmem:[%s10792_s0 + $0x54] ss:$8 sps:$4 sm:$0x3f]   ;;  %s707_s23 = scalar_lea.vmem %s10793_s25, %s6915_s27  ;;  %vm758_vm1 = vcmask 228352  }
  0x28   : > { %867 = vmatprep.subr.bf16.mxu1 %v7046_v7  ;;  %v709_v12 = vld [vmem:[%s707_s23] sm:$0xff]  ;;  %v710_v13 = vld [vmem:[%s707_s23 + $0x8] sm:$0xff]  ;;  %v711_v14 = vld [vmem:[%s707_s23 + $0x10] sm:$0xff]  ;;  %vm724_vm2 = vsmask.f32 7424  ;;  %vm913_vm3 = vcmask 1046528  }
  0x29   : > { %v712_v15 = vld [vmem:[%s707_s23 + $0x18] sm:$0xf]  ;;  %v713_v16 = vpack.c.bf16 %v710_v13, %v709_v12  ;;  %v7055_v24 = vld [vmem:[%s10792_s0 + $0x44] ss:$8 sps:$4 sm:$0xff]   ;;  %v7053_v28 = vld [vmem:[%s10792_s0 + $0x40] ss:$8 sps:$4 sm:$0xff]  }
  0x2a   : > { %787 = vmatpush1.bf16.msra.mxu0 %v7048_v9  ;;  %v714_v17 = vpack.c.bf16 %v712_v15, %v711_v14  ;;  %v7052_v18 = vld [vmem:[%s10792_s0 + $0x50] ss:$8 sps:$4 sm:$0x3f]   ;;  %s10794_s29 = sld [smem:[#allocation14_spill]]  ;;  %v1010_v14 = vlaneseq  ;;  %vm1611_vm12 = vcmask 654336   ;;  %s7595_s0 = smov [#allocation2]  }
  0x2b   : > { %868 = vmatpush1.bf16.msra.mxu1 %v7049_v10  ;;  %6336 = vmatprep.subr.msk.bf16.mxu0 %vm765_vm0, %v7050_v11  ;;  %v726_v19 = vshrl.u32 %v713_v16, 16  ;;  %v728_v20 = vshll.u32 %v713_v16, 16  ;;  %v942_v26 = vsel %vm765_vm0, %v7052_v18, 0  ;;  %v914_v31 = vrot.slane %v713_v16, 1  ;;  %s10799_s23 = sld [smem:[#allocation16_spill]] }
  0x2c   : > { %v733_v21 = vshll.u32 %v714_v17, 16  ;;  %v737_v29 = vshrl.u32 %v714_v17, 16  ;;  %v915_v32 = vrot.slane %v714_v17, 1  ;;  %v7959_v18 = vshrl.u32 %v1010_v14, 7  ;;  %s10800_s6 = sld [smem:[#allocation17_spill]] }
  0x2d   : > { %v730_v22 = vrot.slane %v728_v20, 1  ;;  %s10804_s1 = sld [smem:[#allocation21_spill]] }
  0x2e   : > { %6326 = vmatmul.mubr.msk.bf16.vlgmr.msra.gmra.mxu1 %vm758_vm1, %v713_v16  ;;  %v735_v23 = vrot.slane %v733_v21, 1  ;;  %v916_v33 = vsel %vm913_vm3, %v914_v31, %v915_v32 }
  0x2f   : > { %895 = vmatprep.mubr.bf16.mxu1 %v10770_v3  ;;  %v731_v25 = vor.u32 %v730_v22, %v726_v19  ;;  %v7962_v22 = vsub.s32 0, %v7959_v18 }
  0x30   : > { %v739_v30 = vor.u32 %v737_v29, %v735_v23  ;;  %v7058_v34 = vld [vmem:[%s10794_s29 + $0x1e4] ss:$12 sps:$4 sm:$0xff]   ;;  %v7056_v35 = vld [vmem:[%s10794_s29 + $0x1e0] ss:$12 sps:$4 sm:$0xff]   ;;  %v7059_v36 = vld [vmem:[%s10794_s29 + $0x1e8] ss:$12 sps:$4 sm:$0xff]  }
  0x31   : > { %v736_v27 = vsel %vm724_vm2, %v731_v25, %v735_v23  ;;  %1618 = vmatprep.subr.bf16.mxu1 %v7058_v34  ;;  %v7062_v37 = vld [vmem:[%s10794_s29 + $0x1cc] ss:$12 sps:$4 sm:$0xff]   ;;  %v7060_v38 = vld [vmem:[%s10794_s29 + $0x1c8] ss:$12 sps:$4 sm:$0xff]   ;;  %v7063_v39 = vld [vmem:[%s10794_s29 + $0x1d0] ss:$12 sps:$4 sm:$0xff]  }
  0x32   : > { %6319 = vmatmul.mubr.msk.bf16.vlgmr.msra.gmra.mxu0 %vm758_vm1, %v736_v27  ;;  %1619 = vmatpush1.bf16.msra.mxu1 %v7056_v35  ;;  %v7066_v40 = vld [vmem:[%s10794_s29 + $0x1b4] ss:$12 sps:$4 sm:$0xff]   ;;  %v7064_v41 = vld [vmem:[%s10794_s29 + $0x1b0] ss:$12 sps:$4 sm:$0xff]   ;;  %v7067_v42 = vld [vmem:[%s10794_s29 + $0x1b8] ss:$12 sps:$4 sm:$0xff]  }
  0x33   : > { %814 = vmatprep.mubr.bf16.mxu0 %v10770_v3  ;;  %960 = vmatpush1.bf16.msra.mxu0 %v942_v26  ;;  %v7070_v43 = vld [vmem:[%s10794_s29 + $0x19c] ss:$12 sps:$4 sm:$0xff]   ;;  %v7068_v44 = vld [vmem:[%s10794_s29 + $0x198] ss:$12 sps:$4 sm:$0xff]   ;;  %v7071_v45 = vld [vmem:[%s10794_s29 + $0x1a0] ss:$12 sps:$4 sm:$0xff]  }
  0x34   : > { %961 = vmatprep.subr.bf16.mxu0 %v7055_v24  ;;  %1620 = vmatprep.subr.bf16.mxu1 %v7062_v37  ;;  %v7074_v46 = vld [vmem:[%s10794_s29 + $0x184] ss:$12 sps:$4 sm:$0xff]   ;;  %v7072_v47 = vld [vmem:[%s10794_s29 + $0x180] ss:$12 sps:$4 sm:$0xff]   ;;  %v7075_v48 = vld [vmem:[%s10794_s29 + $0x188] ss:$12 sps:$4 sm:$0xff]  }
  0x35   : > { %v7078_v49 = vld [vmem:[%s10794_s29 + $0x16c] ss:$12 sps:$4 sm:$0xff]   ;;  %v7076_v50 = vld [vmem:[%s10794_s29 + $0x168] ss:$12 sps:$4 sm:$0xff]   ;;  %v7079_v51 = vld [vmem:[%s10794_s29 + $0x170] ss:$12 sps:$4 sm:$0xff]  }
  0x36   : > { %6327 = vmatmul.mubr.msk.bf16.gmra.mxu1 %vm758_vm1, %v714_v17  ;;  %v7082_v52 = vld [vmem:[%s10794_s29 + $0x154] ss:$12 sps:$4 sm:$0xff]   ;;  %v7080_v53 = vld [vmem:[%s10794_s29 + $0x150] ss:$12 sps:$4 sm:$0xff]   ;;  %v7083_v54 = vld [vmem:[%s10794_s29 + $0x158] ss:$12 sps:$4 sm:$0xff]  }
  0x37   : > { %962 = vmatpush1.bf16.msra.mxu0 %v7053_v28  ;;  %1621 = vmatpush1.bf16.msra.mxu1 %v7060_v38  ;;  %v7086_v55 = vld [vmem:[%s10794_s29 + $0x13c] ss:$12 sps:$4 sm:$0xff]   ;;  %v7084_v56 = vld [vmem:[%s10794_s29 + $0x138] ss:$12 sps:$4 sm:$0xff]   ;;  %v7087_v57 = vld [vmem:[%s10794_s29 + $0x140] ss:$12 sps:$4 sm:$0xff]  }
  0x38   : > { %1669 = vmatprep.subr.bf16.mxu0 %v10770_v3  ;;  %1622 = vmatprep.subr.bf16.mxu1 %v7066_v40  ;;  %v7090_v58 = vld [vmem:[%s10794_s29 + $0x25c] ss:$12 sps:$4 sm:$0xff]   ;;  %v7088_v59 = vld [vmem:[%s10794_s29 + $0x258] ss:$12 sps:$4 sm:$0xff]   ;;  %v7091_v60 = vld [vmem:[%s10794_s29 + $0x260] ss:$12 sps:$4 sm:$0xff]  }
  0x39   : > { %v7094_v61 = vld [vmem:[%s10794_s29 + $0x244] ss:$12 sps:$4 sm:$0xff]   ;;  %v7092_v62 = vld [vmem:[%s10794_s29 + $0x240] ss:$12 sps:$4 sm:$0xff]   ;;  %v7095_v63 = vld [vmem:[%s10794_s29 + $0x248] ss:$12 sps:$4 sm:$0xff]  }
  0x3a   : > { %6320 = vmatmul.mubr.msk.bf16.gmra.mxu0 %vm758_vm1, %v739_v30  ;;  %v7098_v0 = vld [vmem:[%s10794_s29 + $0x22c] ss:$12 sps:$4 sm:$0xff]   ;;  %v7096_v1 = vld [vmem:[%s10794_s29 + $0x228] ss:$12 sps:$4 sm:$0xff]   ;;  %v7099_v2 = vld [vmem:[%s10794_s29 + $0x230] ss:$12 sps:$4 sm:$0xff]  }
  0x3b   : > { %979 = vmatprep.mubr.bf16.mxu0 %v10770_v3  ;;  %1623 = vmatpush1.bf16.msra.mxu1 %v7064_v41  ;;  %v7102_v4 = vld [vmem:[%s10794_s29 + $0x214] ss:$12 sps:$4 sm:$0xff]   ;;  %v7100_v5 = vld [vmem:[%s10794_s29 + $0x210] ss:$12 sps:$4 sm:$0xff]   ;;  %v7103_v6 = vld [vmem:[%s10794_s29 + $0x218] ss:$12 sps:$4 sm:$0xff]  }
  0x3c   : > { %1624 = vmatprep.subr.bf16.mxu1 %v7070_v43  ;;  %v7104_v7 = vld [vmem:[%s10794_s29 + $0x1f8] ss:$12 sps:$4 sm:$0xff]   ;;  %v7106_v8 = vld [vmem:[%s10794_s29 + $0x1fc] ss:$12 sps:$4 sm:$0xff]   ;;  %v7107_v9 = vld [vmem:[%s10794_s29 + $0x200] ss:$12 sps:$4 sm:$0xff]  }
  0x3d   : > { %v7110_v10 = vld [vmem:[%s10794_s29 + $0xac] ss:$12 sps:$4 sm:$0xff]   ;;  %v1008_v24 = vld [vmem:[%s10795_s24] sm:$0x3]  ;;  %v7968_v25 = vsub.s32 1, %v7959_v18  ;;  %s10802_s24 = sld [smem:[#allocation18_spill]] }
  0x3e   : > { %v1013_v29 = vrot.slane %v1008_v24, %v7962_v22 }
  0x3f   : > { %1625 = vmatpush1.bf16.msra.mxu1 %v7068_v44 }
  0x40   : > { %1626 = vmatprep.subr.bf16.mxu1 %v7074_v46 }
  0x42   : > { %6337 = vmatmul.mubr.msk.bf16.vlgmr.msra.gmra.mxu0 %vm758_vm1, %v916_v33  ;;  %v1017_v33 = vrot.slane %v1008_v24, %v7968_v25 }
  0x43   : > { %989 = vmatprep.mubr.bf16.mxu0 %v10770_v3  ;;  %1670 = vmatpush1.bf16.msra.mxu0 %v7059_v36 }
  0x44   : > { %1671 = vmatprep.subr.bf16.mxu0 %v10770_v3  ;;  %1627 = vmatpush1.bf16.msra.mxu1 %v7072_v47 }
  0x45   : > { %1628 = vmatprep.subr.bf16.mxu1 %v7078_v49 }
  0x47   : > { %1672 = vmatpush1.bf16.msra.mxu0 %v7063_v39 }
  0x48   : > { %1673 = vmatprep.subr.bf16.mxu0 %v10770_v3  ;;  %1629 = vmatpush1.bf16.msra.mxu1 %v7076_v50 }
  0x49   : > { %1630 = vmatprep.subr.bf16.mxu1 %v7082_v52 }
  0x4a   : > { %6338 = vmatmul.mubr.msk.bf16.gmra.mxu0 %vm758_vm1, %v915_v32 }
  0x4b   : > { %1674 = vmatpush1.bf16.msra.mxu0 %v7067_v42 }
  0x4c   : > { %1675 = vmatprep.subr.bf16.mxu0 %v10770_v3  ;;  %1631 = vmatpush1.bf16.msra.mxu1 %v7080_v53 }
  0x4d   : > { %1632 = vmatprep.subr.bf16.mxu1 %v7086_v55 }
  0x4f   : > { %1676 = vmatpush1.bf16.msra.mxu0 %v7071_v45 }
  0x50   : > { %1677 = vmatprep.subr.bf16.mxu0 %v10770_v3  ;;  %1633 = vmatpush1.bf16.msra.mxu1 %v7084_v56 }
  0x51   : > { %1640 = vmatprep.subr.bf16.mxu1 %v7090_v58 }
  0x53   : > { %1678 = vmatpush1.bf16.msra.mxu0 %v7075_v48 }
  0x54   : > { %1679 = vmatprep.subr.bf16.mxu0 %v10770_v3  ;;  %1641 = vmatpush2.bf16.msra.mxu1 %v7088_v59 }
  0x55   : > { %1642 = vmatprep.subr.bf16.mxu1 %v7094_v61 }
  0x57   : > { %1680 = vmatpush1.bf16.msra.mxu0 %v7079_v51 }
  0x58   : > { %1681 = vmatprep.subr.bf16.mxu0 %v10770_v3  ;;  %1643 = vmatpush2.bf16.msra.mxu1 %v7092_v62 }
  0x59   : > { %1644 = vmatprep.subr.bf16.mxu1 %v7098_v0 }
  0x5b   : > { %1682 = vmatpush1.bf16.msra.mxu0 %v7083_v54 }
  0x5c   : > { %1683 = vmatprep.subr.bf16.mxu0 %v10770_v3  ;;  %1645 = vmatpush2.bf16.msra.mxu1 %v7096_v1 }
  0x5d   : > { %1646 = vmatprep.subr.bf16.mxu1 %v7102_v4 }
  0x5f   : > { %1684 = vmatpush1.bf16.msra.mxu0 %v7087_v57 }
  0x60   : > { %1691 = vmatprep.subr.bf16.mxu0 %v10770_v3  ;;  %1647 = vmatpush2.bf16.msra.mxu1 %v7100_v5 }
  0x61   : > { %1648 = vmatprep.subr.bf16.mxu1 %v7106_v8 }
  0x63   : > { %1692 = vmatpush2.bf16.msra.mxu0 %v7091_v60 }
  0x64   : > { %1693 = vmatprep.subr.bf16.mxu0 %v10770_v3  ;;  %1649 = vmatpush2.bf16.msra.mxu1 %v7104_v7 }
  0x65   : > { %1930 = vmatprep.subr.bf16.mxu1 %v7110_v10 }
  0x67   : > { %1694 = vmatpush2.bf16.msra.mxu0 %v7095_v63 }
  0x68   : > { %1695 = vmatprep.subr.bf16.mxu0 %v10770_v3 }
  0x6b   : > { %1696 = vmatpush2.bf16.msra.mxu0 %v7099_v2 }
  0x6c   : > { %1697 = vmatprep.subr.bf16.mxu0 %v10770_v3 }
  0x6f   : > { %1698 = vmatpush2.bf16.msra.mxu0 %v7103_v6 }
  0x70   : > { %1699 = vmatprep.subr.bf16.mxu0 %v10770_v3 }
  0x73   : > { %1700 = vmatpush2.bf16.msra.mxu0 %v7107_v9 }
  0x74   : > { %1981 = vmatprep.subr.bf16.mxu0 %v10770_v3 }
  0xee   : > { %v887_v13 = vpop.f32.mrf.mxu1 }
  0xf0   : > { %v889_v17 = vpop.f32.mrf.mxu1 }
  0xf2   : > { %v806_v11 = vpop.f32.mrf.mxu0  ;;  %v891_v21 = vpop.f32.mrf.mxu1 }
  0xf3   : > { %v888_v27 = vadd.f32 %v887_v13, %v806_v11 }
  0xf4   : > { %v808_v12 = vpop.f32.mrf.mxu0  ;;  %v893_v28 = vpop.f32.mrf.mxu1 }
  0xf5   : > { %v890_v31 = vadd.f32 %v889_v17, %v808_v12 }
  0xf6   : > { %v810_v15 = vpop.f32.mrf.mxu0  ;;  %v897_v36 = vpop.f32.mrf.mxu1 }
  0xf7   : > { %v892_v35 = vadd.f32 %v891_v21, %v810_v15 }
  0xf8   : > { %v812_v16 = vpop.f32.mrf.mxu0  ;;  %v899_v45 = vpop.f32.mrf.mxu1 }
  0xf9   : > { %v894_v43 = vadd.f32 %v893_v28, %v812_v16 }
  0xfa   : > { %v816_v19 = vpop.f32.mrf.mxu0  ;;  %v901_v57 = vpop.f32.mrf.mxu1 }
  0xfb   : > { %v898_v51 = vadd.f32 %v897_v36, %v816_v19 }
  0xfc   : > { %v818_v20 = vpop.f32.mrf.mxu0  ;;  %v903_v5 = vpop.f32.mrf.mxu1 }
  0xfd   : > { %v900_v63 = vadd.f32 %v899_v45, %v818_v20 }
  0xfe   : > { %v820_v23 = vpop.f32.mrf.mxu0 }
  0xff   : > { %v902_v10 = vadd.f32 %v901_v57, %v820_v23 }
 0x100   : > { %v822_v26 = vpop.f32.mrf.mxu0 }
 0x101   : > { %v904_v13 = vadd.f32 %v903_v5, %v822_v26 }
 0x102   : > { %v981_v30 = vpop.f32.mrf.mxu0 }
 0x103   : > { %v1000_v32 = vadd.f32 %v981_v30, %v888_v27 }
 0x104   : > { %v983_v34 = vpop.f32.mrf.mxu0 }
 0x105   : > { %v7972_v37 = vadd.f32 %v1013_v29, %v1000_v32  ;;  %v1001_v38 = vadd.f32 %v983_v34, %v890_v31 }
 0x106   : > { %v985_v39 = vpop.f32.mrf.mxu0 }
 0x107   : > { %v7975_v40 = vmul.f32 0.70710677, %v7972_v37  ;;  %v7977_v41 = vadd.f32 %v1017_v33, %v1001_v38  ;;  %v1002_v42 = vadd.f32 %v985_v39, %v892_v35 }
 0x108   : > { %v987_v44 = vpop.f32.mrf.mxu0 }
 0x109   : > { %v7980_v46 = vand.u32 2147483647, %v7975_v40  ;;  %v7983_v47 = vmul.f32 0.70710677, %v7977_v41  ;;  %v7985_v48 = vadd.f32 %v1013_v29, %v1002_v42  ;;  %v1003_v49 = vadd.f32 %v987_v44, %v894_v43 }
 0x10a   : > { %v991_v50 = vpop.f32.mrf.mxu0  ;;  %vm1220_vm7 = vcmp.lt.f32.partialorder %v7975_v40, 0.0 }
 0x10b   : > { %v1052_v52 = vmul.f32 0.3275911, %v7980_v46  ;;  %v1045_v53 = vand.u32 2147483647, %v7983_v47  ;;  %v7990_v54 = vmul.f32 0.70710677, %v7985_v48  ;;  %v7992_v55 = vadd.f32 %v1017_v33, %v1003_v49 }
 0x10c   : > { %v993_v56 = vpop.f32.mrf.mxu0  ;;  %v1004_v60 = vadd.f32 %v991_v50, %v898_v51  ;;  %v1172_v31 = vsub.f32 0.0, %v7980_v46  ;;  %vm1221_vm6 = vcmp.lt.f32.partialorder %v7983_v47, 0.0 }
 0x10d   : > { %v1060_v58 = vadd.f32 1.0, %v1052_v52  ;;  %v1053_v59 = vmul.f32 0.3275911, %v1045_v53  ;;  %v1046_v61 = vand.u32 2147483647, %v7990_v54  ;;  %v1005_v7 = vadd.f32 %v993_v56, %v900_v63 }
 0x10e   : > { %v7996_v62 = vmul.f32 0.70710677, %v7992_v55  ;;  %v995_v1 = vpop.f32.mrf.mxu0  ;;  %v7999_v6 = vadd.f32 %v1013_v29, %v1004_v60  ;;  %v1173_v35 = vsub.f32 0.0, %v1045_v53  ;;  %v1180_v49 = vmul.f32 %v1172_v31, %v7980_v46 }
 0x10f   : > { %7406 = vrcp.f32 %v1060_v58  ;;  %v1061_v0 = vadd.f32 1.0, %v1053_v59  ;;  %v1054_v2 = vmul.f32 0.3275911, %v1046_v61  ;;  %v8004_v15 = vadd.f32 %v1017_v33, %v1005_v7 }
 0x110   : > { %v1047_v4 = vand.u32 2147483647, %v7996_v62  ;;  %v8002_v11 = vmul.f32 0.70710677, %v7999_v6  ;;  %v997_v12 = vpop.f32.mrf.mxu0  ;;  %v1006_v17 = vadd.f32 %v995_v1, %v902_v10  ;;  %v1174_v38 = vsub.f32 0.0, %v1046_v61 }
 0x111   : > { %7408 = vrcp.f32 %v1061_v0  ;;  %v1062_v8 = vadd.f32 1.0, %v1054_v2  ;;  %v8008_v19 = vmul.f32 0.70710677, %v8004_v15  ;;  %v1007_v20 = vadd.f32 %v997_v12, %v904_v13 }
 0x112   : > { %v1055_v9 = vmul.f32 0.3275911, %v1047_v4  ;;  %v1048_v16 = vand.u32 2147483647, %v8002_v11  ;;  %v8011_v24 = vadd.f32 %v1013_v29, %v1006_v17  ;;  %v1175_v42 = vsub.f32 0.0, %v1047_v4 }
 0x113   : > { %7410 = vrcp.f32 %v1062_v8  ;;  %v1049_v23 = vand.u32 2147483647, %v8008_v19  ;;  %v8013_v27 = vadd.f32 %v1017_v33, %v1007_v20  ;;  %v1181_v52 = vmul.f32 %v1173_v35, %v1045_v53 }
 0x114   : > { %v1063_v14 = vadd.f32 1.0, %v1055_v9  ;;  %v1056_v21 = vmul.f32 0.3275911, %v1048_v16  ;;  %v8016_v30 = vmul.f32 0.70710677, %v8011_v24  ;;  %v1176_v56 = vsub.f32 0.0, %v1048_v16 }
 0x115   : > { %v1057_v28 = vmul.f32 0.3275911, %v1049_v23  ;;  %v8020_v32 = vmul.f32 0.70710677, %v8013_v27  ;;  %v1182_v60 = vmul.f32 %v1174_v38, %v1046_v61  ;;  %v1183_v5 = vmul.f32 %v1175_v42, %v1047_v4 }
 0x116   : > { %7412 = vrcp.f32 %v1063_v14  ;;  %v1064_v26 = vadd.f32 1.0, %v1056_v21  ;;  %v8025_v29 = vand.u32 2147483647, %v8016_v30  ;;  %v1188_v7 = vmul.f32 1.442695, %v1180_v49 }
 0x117   : > { %v8022_v36 = vadd.f32 1.0, %v1057_v28  ;;  %v8028_v39 = vand.u32 2147483647, %v8020_v32  ;;  %v1177_v9 = vsub.f32 0.0, %v1049_v23  ;;  %v1190_v10 = vmul.f32 1.442695, %v1181_v52 }
 0x118   : > { %7414 = vrcp.f32 %v1064_v26  ;;  %v1058_v43 = vmul.f32 0.3275911, %v8025_v29  ;;  %v1184_v13 = vmul.f32 %v1176_v56, %v1048_v16  ;;  %v1192_v17 = vmul.f32 1.442695, %v1182_v60 }
 0x119   : > { %7416 = vrcp.f32 %v8022_v36  ;;  %v1059_v50 = vmul.f32 0.3275911, %v8028_v39  ;;  %v1194_v21 = vmul.f32 1.442695, %v1183_v5  ;;  %v1178_v5 = vsub.f32 0.0, %v8025_v29 }
 0x11a   : > { %v8034_v57 = vadd.f32 1.0, %v1058_v43  ;;  %v1196_v42 = vmul.f32 1.442695, %v1184_v13  ;;  %vm1223_vm4 = vcmp.lt.f32.partialorder %v7996_v62, 0.0  ;;  %vm1222_vm5 = vcmp.lt.f32.partialorder %v7990_v54, 0.0 }
 0x11b   : > { %v8038_v63 = vadd.f32 1.0, %v1059_v50  ;;  %v1031_v47 = vmul.f32 0.5, %v7992_v55  ;;  %vm1224_vm8 = vcmp.lt.f32.partialorder %v8002_v11, 0.0  ;;  %vm1225_vm9 = vcmp.lt.f32.partialorder %v8008_v19, 0.0 }
 0x11c   : > { %v7407_v34 = vpop.eup %7406  ;;  %7418 = vrcp.f32 %v8034_v57  ;;  %vm1226_vm10 = vcmp.lt.f32.partialorder %v8016_v30, 0.0  ;;  %vm1227_vm11 = vcmp.lt.f32.partialorder %v8020_v32, 0.0 }
 0x11d   : > { %v1076_v33 = vmul.f32 %v7407_v34, %v1060_v58  ;;  %7420 = vrcp.f32 %v8038_v63 }
 0x11e   : > { %v7409_v44 = vpop.eup %7408  ;;  %7422 = vpow2.f32 %v1188_v7 }
 0x11f   : > { %v1084_v45 = vsub.f32 2.0, %v1076_v33  ;;  %v1077_v51 = vmul.f32 %v7409_v44, %v1061_v0  ;;  %7424 = vpow2.f32 %v1190_v10 }
 0x120   : > { %v7411_v58 = vpop.eup %7410  ;;  %7426 = vpow2.f32 %v1192_v17 }
 0x121   : > { %v8036_v59 = vmul.f32 %v7407_v34, %v1084_v45  ;;  %v1085_v1 = vsub.f32 2.0, %v1077_v51  ;;  %v1078_v2 = vmul.f32 %v7411_v58, %v1062_v8  ;;  %v1185_v34 = vmul.f32 %v1177_v9, %v1049_v23 }
 0x122   : > { %7428 = vpow2.f32 %v1194_v21 }
 0x123   : > { %v1100_v46 = vmul.f32 1.0614054, %v8036_v59  ;;  %v7413_v53 = vpop.eup %7412  ;;  %v8043_v0 = vmul.f32 %v7409_v44, %v1085_v1  ;;  %v1086_v12 = vsub.f32 2.0, %v1078_v2  ;;  %v1198_v52 = vmul.f32 1.442695, %v1185_v34 }
 0x124   : > { %v1079_v20 = vmul.f32 %v7413_v53, %v1063_v14  ;;  %7430 = vpow2.f32 %v1196_v42 }
 0x125   : > { %v1108_v61 = vadd.f32 -1.4531521, %v1100_v46  ;;  %v1101_v8 = vmul.f32 1.0614054, %v8043_v0  ;;  %v8046_v4 = vmul.f32 %v7411_v58, %v1086_v12  ;;  %v7415_v35 = vpop.eup %7414  ;;  %7432 = vpow2.f32 %v1198_v52 }
 0x126   : > { %v1087_v31 = vsub.f32 2.0, %v1079_v20  ;;  %v1080_v14 = vmul.f32 %v7415_v35, %v1064_v26  ;;  %v7417_v49 = vpop.eup %7416 }
 0x127   : > { %v1116_v28 = vmul.f32 %v1108_v61, %v8036_v59  ;;  %v1109_v33 = vadd.f32 -1.4531521, %v1101_v8  ;;  %v1102_v38 = vmul.f32 1.0614054, %v8046_v4  ;;  %v1081_v60 = vmul.f32 %v7417_v49, %v8022_v36 }
 0x128   : > { %v8050_v43 = vmul.f32 %v7413_v53, %v1087_v31  ;;  %v1088_v51 = vsub.f32 2.0, %v1080_v14  ;;  %v1179_v53 = vsub.f32 0.0, %v8028_v39 }
 0x129   : > { %v1124_v16 = vadd.f32 1.4214138, %v1116_v28  ;;  %v1117_v44 = vmul.f32 %v1109_v33, %v8043_v0  ;;  %v1110_v45 = vadd.f32 -1.4531521, %v1102_v38  ;;  %v1089_v9 = vsub.f32 2.0, %v1081_v60  ;;  %v7419_v10 = vpop.eup %7418 }
 0x12a   : > { %v1103_v23 = vmul.f32 1.0614054, %v8050_v43  ;;  %v8057_v26 = vmul.f32 %v7415_v35, %v1088_v51  ;;  %v7421_v36 = vpop.eup %7420  ;;  %v1082_v21 = vmul.f32 %v7419_v10, %v8034_v57 }
 0x12b   : > { %v1132_v50 = vmul.f32 %v1124_v16, %v8036_v59  ;;  %v1125_v56 = vadd.f32 1.4214138, %v1117_v44  ;;  %v1118_v58 = vmul.f32 %v1110_v45, %v8046_v4  ;;  %v8066_v8 = vmul.f32 %v7417_v49, %v1089_v9 }
 0x12c   : > { %v1111_v2 = vadd.f32 -1.4531521, %v1103_v23  ;;  %v1104_v61 = vmul.f32 1.0614054, %v8057_v26  ;;  %v1083_v35 = vmul.f32 %v7421_v36, %v8038_v63  ;;  %v1090_v16 = vsub.f32 2.0, %v1082_v21 }
 0x12d   : > { %v1140_v1 = vadd.f32 -0.28449672, %v1132_v50  ;;  %v1133_v46 = vmul.f32 %v1125_v56, %v8043_v0  ;;  %v1126_v7 = vadd.f32 1.4214138, %v1118_v58  ;;  %v1105_v42 = vmul.f32 1.0614054, %v8066_v8  ;;  %v7423_v50 = vpop.eup %7422 }
 0x12e   : > { %v1119_v13 = vmul.f32 %v1111_v2, %v8050_v43  ;;  %v1112_v34 = vadd.f32 -1.4531521, %v1104_v61  ;;  %v1186_v45 = vmul.f32 %v1178_v5, %v8025_v29  ;;  %v1091_v49 = vsub.f32 2.0, %v1083_v35  ;;  %v7425_v63 = vpop.eup %7424 }
 0x12f   : > { %v1148_v12 = vmul.f32 %v1140_v1, %v8036_v59  ;;  %v1141_v17 = vadd.f32 -0.28449672, %v1133_v46  ;;  %v1134_v20 = vmul.f32 %v1126_v7, %v8046_v4  ;;  %v1113_v51 = vadd.f32 -1.4531521, %v1105_v42  ;;  %v7427_v2 = vpop.eup %7426 }
 0x130   : > { %v1127_v31 = vadd.f32 1.4214138, %v1119_v13  ;;  %v1120_v44 = vmul.f32 %v1112_v34, %v8057_v26  ;;  %v8076_v52 = vmul.f32 %v7419_v10, %v1090_v16  ;;  %v8078_v60 = vmul.f32 %v7421_v36, %v1091_v49  ;;  %v7429_v9 = vpop.eup %7428 }
 0x131   : > { %v1156_v28 = vadd.f32 0.2548296, %v1148_v12  ;;  %v1149_v33 = vmul.f32 %v1141_v17, %v8043_v0  ;;  %v1142_v38 = vadd.f32 -0.28449672, %v1134_v20  ;;  %v1187_v1 = vmul.f32 %v1179_v53, %v8028_v39 }
 0x132   : > { %v1135_v14 = vmul.f32 %v1127_v31, %v8050_v43  ;;  %v1128_v58 = vadd.f32 1.4214138, %v1120_v44  ;;  %v1121_v29 = vmul.f32 %v1113_v51, %v8066_v8  ;;  %v1106_v5 = vmul.f32 1.0614054, %v8076_v52 }
 0x133   : > { %v1157_v57 = vadd.f32 0.2548296, %v1149_v33  ;;  %v1150_v23 = vmul.f32 %v1142_v38, %v8046_v4  ;;  %v1164_v46 = vmul.f32 %v1156_v28, %v8036_v59  ;;  %v1107_v61 = vmul.f32 1.0614054, %v8078_v60  ;;  %v7431_v59 = vpop.eup %7430 }
 0x134   : > { %v1143_v56 = vadd.f32 -0.28449672, %v1135_v14  ;;  %v1136_v13 = vmul.f32 %v1128_v58, %v8057_v26  ;;  %v1129_v39 = vadd.f32 1.4214138, %v1121_v29  ;;  %v1114_v53 = vadd.f32 -1.4531521, %v1106_v5 }
 0x135   : > { %v1158_v7 = vadd.f32 0.2548296, %v1150_v23  ;;  %v1165_v12 = vmul.f32 %v1157_v57, %v8043_v0  ;;  %v1200_v17 = vmul.f32 1.442695, %v1186_v45  ;;  %v1202_v28 = vmul.f32 1.442695, %v1187_v1 }
 0x136   : > { %v1151_v10 = vmul.f32 %v1143_v56, %v8050_v43  ;;  %v1144_v21 = vadd.f32 -0.28449672, %v1136_v13  ;;  %v1204_v31 = vmul.f32 %v7423_v50, %v1164_v46  ;;  %v1137_v35 = vmul.f32 %v1129_v39, %v8066_v8 }
 0x137   : > { %v1166_v36 = vmul.f32 %v1158_v7, %v8046_v4  ;;  %v1122_v0 = vmul.f32 %v1114_v53, %v8076_v52  ;;  %v1205_v33 = vmul.f32 %v7425_v63, %v1165_v12  ;;  %v1115_v16 = vadd.f32 -1.4531521, %v1107_v61  ;;  %v7433_v4 = vpop.eup %7432 }
 0x138   : > { %v1159_v20 = vadd.f32 0.2548296, %v1151_v10  ;;  %v1152_v42 = vmul.f32 %v1144_v21, %v8057_v26  ;;  %v1145_v14 = vadd.f32 -0.28449672, %v1137_v35  ;;  %7434 = vpow2.f32 %v1200_v17 }
 0x139   : > { %v1206_v34 = vmul.f32 %v7427_v2, %v1166_v36  ;;  %v1130_v49 = vadd.f32 1.4214138, %v1122_v0  ;;  %v1123_v57 = vmul.f32 %v1115_v16, %v8078_v60  ;;  %v1212_v50 = vsub.f32 1.0, %v1204_v31 }
 0x13a   : > { %v1167_v38 = vmul.f32 %v1159_v20, %v8050_v43  ;;  %v1160_v45 = vadd.f32 0.2548296, %v1152_v42  ;;  %v1153_v51 = vmul.f32 %v1145_v14, %v8066_v8  ;;  %7436 = vpow2.f32 %v1202_v28 }
 0x13b   : > { %v1214_v23 = vsub.f32 1.0, %v1206_v34  ;;  %v1213_v56 = vsub.f32 1.0, %v1205_v33  ;;  %v1138_v58 = vmul.f32 %v1130_v49, %v8076_v52  ;;  %v1131_v2 = vadd.f32 1.4214138, %v1123_v57 }
 0x13c   : > { %v1207_v44 = vmul.f32 %v7429_v9, %v1167_v38  ;;  %v1168_v43 = vmul.f32 %v1160_v45, %v8057_v26  ;;  %v1161_v1 = vadd.f32 0.2548296, %v1153_v51  ;;  %v1228_v10 = vsub.f32 0.0, %v1212_v50 }
 0x13d   : > { %v1230_v29 = vsub.f32 0.0, %v1214_v23  ;;  %v1146_v9 = vadd.f32 -0.28449672, %v1138_v58  ;;  %v1139_v12 = vmul.f32 %v1131_v2, %v8078_v60  ;;  %v1229_v13 = vsub.f32 0.0, %v1213_v56 }
 0x13e   : > { %v1215_v63 = vsub.f32 1.0, %v1207_v44  ;;  %v1208_v7 = vmul.f32 %v7431_v59, %v1168_v43  ;;  %v1169_v5 = vmul.f32 %v1161_v1, %v8066_v8  ;;  %v1236_v28 = vsel %vm1220_vm7, %v1228_v10, %v1212_v50 }
 0x13f   : > { %v1154_v26 = vmul.f32 %v1146_v9, %v8076_v52  ;;  %v1147_v39 = vadd.f32 -0.28449672, %v1139_v12  ;;  %v1238_v17 = vsel %vm1222_vm5, %v1230_v29, %v1214_v23  ;;  %v1237_v20 = vsel %vm1221_vm6, %v1229_v13, %v1213_v56 }
 0x140   : > { %v1231_v46 = vsub.f32 0.0, %v1215_v63  ;;  %v1216_v61 = vsub.f32 1.0, %v1208_v7  ;;  %v1209_v36 = vmul.f32 %v7433_v4, %v1169_v5  ;;  %v1246_v0 = vadd.f32 1.0, %v1238_v17 }
 0x141   : > { %v1162_v59 = vadd.f32 0.2548296, %v1154_v26  ;;  %v1155_v8 = vmul.f32 %v1147_v39, %v8078_v60  ;;  %v1245_v54 = vadd.f32 1.0, %v1237_v20  ;;  %v1030_v38 = vmul.f32 0.5, %v7985_v48 }
 0x142   : > { %v1239_v53 = vsel %vm1223_vm4, %v1231_v46, %v1215_v63  ;;  %v1217_v21 = vsub.f32 1.0, %v1209_v36  ;;  %v1232_v31 = vsub.f32 0.0, %v1216_v61  ;;  %v1244_v4 = vadd.f32 1.0, %v1236_v28 }
 0x143   : > { %v1247_v62 = vadd.f32 1.0, %v1239_v53  ;;  %v1170_v34 = vmul.f32 %v1162_v59, %v8076_v52  ;;  %v1163_v33 = vadd.f32 0.2548296, %v1155_v8  ;;  %v1029_v44 = vmul.f32 0.5, %v7977_v41 }
 0x144   : > { %v1233_v40 = vsub.f32 0.0, %v1217_v21  ;;  %v1240_v52 = vsel %vm1224_vm8, %v1232_v31, %v1216_v61  ;;  %v1028_v57 = vmul.f32 0.5, %v7972_v37  ;;  %v1254_v50 = vmul.f32 %v1246_v0, %v1030_v38  ;;  %v7112_v38 = vld [vmem:[%s10794_s29 + $0x90] ss:$12 sps:$4 sm:$0xff]  }
 0x145   : > { %v7435_v35 = vpop.eup %7434  ;;  %v1171_v14 = vmul.f32 %v1163_v33, %v8078_v60  ;;  %v1255_v45 = vmul.f32 %v1247_v62, %v1031_v47  ;;  %v1253_v48 = vmul.f32 %v1245_v54, %v1029_v44  ;;  %v1248_v11 = vadd.f32 1.0, %v1240_v52  ;;  %v7108_v62 = vld [vmem:[%s10794_s29 + $0xa8] ss:$12 sps:$4 sm:$0xff]   ;;  %v7115_v47 = vld [vmem:[%s10794_s29 + $0x98] ss:$12 sps:$4 sm:$0xff]  }
 0x146   : > { %v1210_v42 = vmul.f32 %v7435_v35, %v1170_v34  ;;  %v1252_v51 = vmul.f32 %v1244_v4, %v1028_v57  ;;  %v1241_v56 = vsel %vm1225_vm9, %v1233_v40, %v1217_v21  ;;  %v1032_v41 = vmul.f32 0.5, %v7999_v6  ;;  %v7111_v34 = vld [vmem:[%s10794_s29 + $0xb0] ss:$12 sps:$4 sm:$0xff]   ;;  %v7114_v54 = vld [vmem:[%s10794_s29 + $0x94] ss:$12 sps:$4 sm:$0xff]  }
 0x147   : > { %v7437_v16 = vpop.eup %7436  ;;  %v8114_v60 = vpack.c.bf16 %v1255_v45, %v1253_v48  ;;  %v1034_v37 = vmul.f32 0.5, %v8011_v24  ;;  %v1249_v46 = vadd.f32 1.0, %v1241_v56  ;;  %v1033_v29 = vmul.f32 0.5, %v8004_v15  ;;  %v7116_v4 = vld [vmem:[%s10794_s29 + $0x78] ss:$12 sps:$4 sm:$0xff]  }
 0x148   : > { %v1218_v49 = vsub.f32 1.0, %v1210_v42  ;;  %v1211_v23 = vmul.f32 %v7437_v16, %v1171_v14  ;;  %v8117_v58 = vpack.c.bf16 %v1254_v50, %v1252_v51  ;;  %v8121_v19 = vmul.f32 %v1248_v11, %v1032_v41  ;;  %v7118_v42 = vld [vmem:[%s10794_s29 + $0x7c] ss:$12 sps:$4 sm:$0xff]   ;;  %v7119_v40 = vld [vmem:[%s10794_s29 + $0x80] ss:$12 sps:$4 sm:$0xff]  }
 0x149   : > { %v1035_v5 = vmul.f32 0.5, %v8013_v27  ;;  %v1386_v6 = vshll.u32 %v8114_v60, 16  ;;  %v8130_v10 = vmul.f32 %v1249_v46, %v1033_v29  ;;  %v1384_v15 = vshrl.u32 %v8114_v60, 16  ;;  %v7122_v44 = vld [vmem:[%s10794_s29 + $0x64] ss:$12 sps:$4 sm:$0xff]  }
 0x14a   : > { %v1234_v55 = vsub.f32 0.0, %v1218_v49  ;;  %v1219_v63 = vsub.f32 1.0, %v1211_v23  ;;  %v1374_v24 = vshll.u32 %v8117_v58, 16  ;;  %v2089_v39 = vrot.slane %v8114_v60, 1  ;;  %v7120_v45 = vld [vmem:[%s10794_s29 + $0x60] ss:$12 sps:$4 sm:$0xff]  }
 0x14b   : > { %v1388_v36 = vrot.slane %v1386_v6, 1  ;;  %v1372_v17 = vshrl.u32 %v8117_v58, 16  ;;  %v7123_v52 = vld [vmem:[%s10794_s29 + $0x68] ss:$12 sps:$4 sm:$0xff]   ;;  %v7127_v50 = vld [vmem:[%s10794_s29 + $0x50] ss:$12 sps:$4 sm:$0xff]  }
 0x14c   : > { %v1242_v43 = vsel %vm1226_vm10, %v1234_v55, %v1218_v49  ;;  %v1235_v2 = vsub.f32 0.0, %v1219_v63  ;;  %v1376_v26 = vrot.slane %v1374_v24, 1  ;;  %v7126_v49 = vld [vmem:[%s10794_s29 + $0x4c] ss:$12 sps:$4 sm:$0xff]   ;;  %v7124_v57 = vld [vmem:[%s10794_s29 + $0x48] ss:$12 sps:$4 sm:$0xff]  }
 0x14d   : > { %v1250_v1 = vadd.f32 1.0, %v1242_v43  ;;  %v1389_v8 = vor.u32 %v1388_v36, %v1384_v15  ;;  %v7130_v23 = vld [vmem:[%s10794_s29 + $0x34] ss:$12 sps:$4 sm:$0xff]   ;;  %v7128_v48 = vld [vmem:[%s10794_s29 + $0x30] ss:$12 sps:$4 sm:$0xff]   ;;  %vm3330_vm7 = vcmask 187392  }
 0x14e   : > { %v1243_v7 = vsel %vm1227_vm11, %v1235_v2, %v1219_v63  ;;  %v1377_v31 = vor.u32 %v1376_v26, %v1372_v17  ;;  %v7131_v55 = vld [vmem:[%s10794_s29 + $0x38] ss:$12 sps:$4 sm:$0xff]   ;;  %v7134_v51 = vld [vmem:[%s10794_s29 + $0x1c] ss:$12 sps:$4 sm:$0xff]   ;;  %v7135_v56 = vld [vmem:[%s10794_s29 + $0x20] ss:$12 sps:$4 sm:$0xff]  }
 0x14f   : > { %v1258_v30 = vmul.f32 %v1250_v1, %v1034_v37  ;;  %v1251_v9 = vadd.f32 1.0, %v1243_v7  ;;  %v7132_v11 = vld [vmem:[%s10794_s29 + $0x18] ss:$12 sps:$4 sm:$0xff]   ;;  %v7139_v41 = vld [vmem:[%s10794_s29 + $0x8] ss:$12 sps:$4 sm:$0xff]  }
 0x150   : > { %v7138_v63 = vld [vmem:[%s10794_s29 + $0x4] ss:$12 sps:$4 sm:$0xff]   ;;  %v7140_v37 = vld [vmem:[%s10794_s29 + $0x120] ss:$12 sps:$4 sm:$0xff]   ;;  %v7143_v1 = vld [vmem:[%s10794_s29 + $0x128] ss:$12 sps:$4 sm:$0xff]  }
 0x151   : > { %v8127_v12 = vpack.c.bf16 %v1258_v30, %v8121_v19  ;;  %v1259_v13 = vmul.f32 %v1251_v9, %v1035_v5  ;;  %v7142_v43 = vld [vmem:[%s10794_s29 + $0x124] ss:$12 sps:$4 sm:$0xff]   ;;  %v7146_v2 = vld [vmem:[%s10794_s29 + $0x10c] ss:$12 sps:$4 sm:$0xff]   ;;  %v7144_v46 = vld [vmem:[%s10794_s29 + $0x108] ss:$12 sps:$4 sm:$0xff]  }
 0x152   : > { %v7147_v30 = vld [vmem:[%s10794_s29 + $0x110] ss:$12 sps:$4 sm:$0xff]   ;;  %v7150_v7 = vld [vmem:[%s10794_s29 + $0xf4] ss:$12 sps:$4 sm:$0xff]   ;;  %v7151_v5 = vld [vmem:[%s10794_s29 + $0xf8] ss:$12 sps:$4 sm:$0xff]  }
 0x153   : > { %v1379_v32 = vshll.u32 %v8127_v12, 16  ;;  %v1317_v61 = vpack.c.bf16 %v1259_v13, %v8130_v10  ;;  %v1395_v16 = vshrl.u32 %v8127_v12, 16  ;;  %v7148_v29 = vld [vmem:[%s10794_s29 + $0xf0] ss:$12 sps:$4 sm:$0xff]   ;;  %v7152_v6 = vld [vmem:[%s10794_s29 + $0xd8] ss:$12 sps:$4 sm:$0xff]  }
 0x154   : > { %v7154_v9 = vld [vmem:[%s10794_s29 + $0xdc] ss:$12 sps:$4 sm:$0xff]   ;;  %v7155_v24 = vld [vmem:[%s10794_s29 + $0xe0] ss:$12 sps:$4 sm:$0xff]   ;;  %v7158_v13 = vld [vmem:[%s10794_s29 + $0xc4] ss:$12 sps:$4 sm:$0xff]  }
 0x155   : > { %v1391_v27 = vshll.u32 %v1317_v61, 16  ;;  %v8136_v53 = vrot.slane %v1317_v61, 1  ;;  %v1381_v59 = vrot.slane %v1379_v32, 1  ;;  %v1398_v21 = vshrl.u32 %v1317_v61, 16  ;;  %v7156_v32 = vld [vmem:[%s10794_s29 + $0xc0] ss:$12 sps:$4 sm:$0xff]  }
 0x156   : > { %v7159_v61 = vld [vmem:[%s10794_s29 + $0xc8] ss:$12 sps:$4 sm:$0xff]   ;;  %v7160_v26 = vld [vmem:[%s10794_s29 + $0x318] ss:$12 sps:$4 sm:$0xff]   ;;  %v7163_v15 = vld [vmem:[%s10794_s29 + $0x320] ss:$12 sps:$4 sm:$0xff]  }
 0x157   : > { %v1393_v20 = vrot.slane %v1391_v27, 1  ;;  %v8141_v28 = vsel %vm913_vm3, %v2089_v39, %v8136_v53  ;;  %v1382_v33 = vsel %vm724_vm2, %v1377_v31, %v1381_v59  ;;  %v1397_v14 = vor.u32 %v1395_v16, %v1381_v59  ;;  %v7162_v36 = vld [vmem:[%s10794_s29 + $0x31c] ss:$12 sps:$4 sm:$0xff]   ;;  %v7166_v39 = vld [vmem:[%s10794_s29 + $0x304] ss:$12 sps:$4 sm:$0xff]  }
 0x158   : > { %v1263_v27 = vpack.c.bf16 %v8130_v10, %v8130_v10  ;;  %v7164_v17 = vld [vmem:[%s10794_s29 + $0x300] ss:$12 sps:$4 sm:$0xff]   ;;  %v7167_v10 = vld [vmem:[%s10794_s29 + $0x308] ss:$12 sps:$4 sm:$0xff]   ;;  %v7175_v31 = vld [vmem:[%s10794_s29 + $0x2d8] ss:$12 sps:$4 sm:$0xff]  }
 0x159   : > { %v1394_v35 = vsel %vm724_vm2, %v1389_v8, %v1393_v20  ;;  %v1400_v0 = vor.u32 %v1398_v21, %v1393_v20  ;;  %v7170_v59 = vld [vmem:[%s10794_s29 + $0x2ec] ss:$12 sps:$4 sm:$0xff]   ;;  %v1262_v8 = vpack.c.bf16 %v8121_v19, %v8121_v19  ;;  %v7168_v20 = vld [vmem:[%s10794_s29 + $0x2e8] ss:$12 sps:$4 sm:$0xff]   ;;  %v7171_v21 = vld [vmem:[%s10794_s29 + $0x2f0] ss:$12 sps:$4 sm:$0xff]  }
 0x15a   : > { %6430 = vmatprep.mubr.msk.bf16.mxu1 %vm1611_vm12, %v1394_v35  ;;  %6432 = vmatprep.mubr.msk.bf16.mxu0 %vm1611_vm12, %v1394_v35  ;;  %v7172_v19 = vld [vmem:[%s10794_s29 + $0x2d0] ss:$12 sps:$4 sm:$0xff]   ;;  %v7179_v35 = vld [vmem:[%s10794_s29 + $0x2c0] ss:$12 sps:$4 sm:$0xff]  }
 0x15b   : > { %1651 = vmatmul.mubr.bf16.vlgmr.msra.gmra.mxu1 %v1382_v33  ;;  %1702 = vmatmul.mubr.bf16.vlgmr.msra.gmra.mxu0 %v1382_v33  ;;  %v7180_v33 = vld [vmem:[%s10794_s29 + $0x2a0] ss:$12 sps:$4 sm:$0xff]  }
 0x15c   : > { %1931 = vmatpush1.bf16.msra.mxu1 %v7108_v62  ;;  %1982 = vmatpush1.bf16.msra.mxu0 %v7111_v34  ;;  %v7174_v62 = vld [vmem:[%s10794_s29 + $0x2d4] ss:$12 sps:$4 sm:$0xff]   ;;  %v7178_v34 = vld [vmem:[%s10794_s29 + $0x2bc] ss:$12 sps:$4 sm:$0xff]  }
 0x15d   : > { %6431 = vmatprep.mubr.msk.bf16.mxu1 %vm1611_vm12, %v1400_v0  ;;  %6433 = vmatprep.mubr.msk.bf16.mxu0 %vm1611_vm12, %v1400_v0  ;;  %v7182_v0 = vld [vmem:[%s10794_s29 + $0x2a4] ss:$12 sps:$4 sm:$0xff]   ;;  %v7190_v16 = vld [vmem:[%s10794_s29 + $0x274] ss:$12 sps:$4 sm:$0xff]  }
 0x15e   : > { %1932 = vmatprep.subr.bf16.mxu1 %v7114_v54  ;;  %1983 = vmatprep.subr.bf16.mxu0 %v10770_v3  ;;  %v7183_v54 = vld [vmem:[%s10794_s29 + $0x2a8] ss:$12 sps:$4 sm:$0xff]  }
 0x160   : > { %1933 = vmatpush1.bf16.msra.mxu1 %v7112_v38  ;;  %1984 = vmatpush1.bf16.msra.mxu0 %v7115_v47  ;;  %v7186_v38 = vld [vmem:[%s10794_s29 + $0x28c] ss:$12 sps:$4 sm:$0xff]   ;;  %v7184_v47 = vld [vmem:[%s10794_s29 + $0x288] ss:$12 sps:$4 sm:$0xff]  }
 0x161   : > { %1934 = vmatprep.subr.bf16.mxu1 %v7118_v42  ;;  %1985 = vmatprep.subr.bf16.mxu0 %v10770_v3  ;;  %v7187_v42 = vld [vmem:[%s10794_s29 + $0x290] ss:$12 sps:$4 sm:$0xff]  }
 0x163   : > { %1661 = vmatmul.mubr.bf16.gmra.mxu1 %v1397_v14  ;;  %1710 = vmatmul.mubr.bf16.gmra.mxu0 %v1397_v14  ;;  %v7194_v14 = vld [vmem:[%s10794_s29 + $0x394] ss:$12 sps:$4 sm:$0xff]  }
 0x164   : > { %1935 = vmatpush1.bf16.msra.mxu1 %v7116_v4  ;;  %1986 = vmatpush1.bf16.msra.mxu0 %v7119_v40  ;;  %v7188_v4 = vld [vmem:[%s10794_s29 + $0x270] ss:$12 sps:$4 sm:$0xff]   ;;  %v7191_v40 = vld [vmem:[%s10794_s29 + $0x278] ss:$12 sps:$4 sm:$0xff]  }
 0x165   : > { %6473 = vmatprep.mubr.msk.bf16.mxu1 %vm1611_vm12, %v8114_v60  ;;  %6475 = vmatprep.mubr.msk.bf16.mxu0 %vm1611_vm12, %v8114_v60  ;;  %v7136_v60 = vld [vmem:[%s10794_s29] ss:$12 sps:$4 sm:$0xff]  }
 0x166   : > { %1936 = vmatprep.subr.bf16.mxu1 %v7122_v44  ;;  %1987 = vmatprep.subr.bf16.mxu0 %v10770_v3  ;;  %v7192_v44 = vld [vmem:[%s10794_s29 + $0x390] ss:$12 sps:$4 sm:$0xff]  }
 0x168   : > { %1937 = vmatpush1.bf16.msra.mxu1 %v7120_v45  ;;  %1988 = vmatpush1.bf16.msra.mxu0 %v7123_v52  ;;  %v7195_v45 = vld [vmem:[%s10794_s29 + $0x398] ss:$12 sps:$4 sm:$0xff]   ;;  %v7198_v52 = vld [vmem:[%s10794_s29 + $0x37c] ss:$12 sps:$4 sm:$0xff]  }
 0x169   : > { %1938 = vmatprep.subr.bf16.mxu1 %v7126_v49  ;;  %1989 = vmatprep.subr.bf16.mxu0 %v10770_v3  ;;  %v7196_v49 = vld [vmem:[%s10794_s29 + $0x378] ss:$12 sps:$4 sm:$0xff]  }
 0x16c   : > { %1939 = vmatpush1.bf16.msra.mxu1 %v7124_v57  ;;  %1990 = vmatpush1.bf16.msra.mxu0 %v7127_v50  ;;  %v7199_v57 = vld [vmem:[%s10794_s29 + $0x380] ss:$12 sps:$4 sm:$0xff]   ;;  %v7202_v50 = vld [vmem:[%s10794_s29 + $0x364] ss:$12 sps:$4 sm:$0xff]  }
 0x16d   : > { %1940 = vmatprep.subr.bf16.mxu1 %v7130_v23  ;;  %1991 = vmatprep.subr.bf16.mxu0 %v10770_v3  ;;  %v7200_v23 = vld [vmem:[%s10794_s29 + $0x360] ss:$12 sps:$4 sm:$0xff]  }
 0x170   : > { %1941 = vmatpush1.bf16.msra.mxu1 %v7128_v48  ;;  %1992 = vmatpush1.bf16.msra.mxu0 %v7131_v55  ;;  %v7203_v48 = vld [vmem:[%s10794_s29 + $0x368] ss:$12 sps:$4 sm:$0xff]   ;;  %v7206_v55 = vld [vmem:[%s10794_s29 + $0x34c] ss:$12 sps:$4 sm:$0xff]  }
 0x171   : > { %1942 = vmatprep.subr.bf16.mxu1 %v7134_v51  ;;  %1993 = vmatprep.subr.bf16.mxu0 %v10770_v3  ;;  %v7204_v51 = vld [vmem:[%s10794_s29 + $0x348] ss:$12 sps:$4 sm:$0xff]  }
 0x174   : > { %1943 = vmatpush1.bf16.msra.mxu1 %v7132_v11  ;;  %1994 = vmatpush1.bf16.msra.mxu0 %v7135_v56  ;;  %v7207_v11 = vld [vmem:[%s10794_s29 + $0x350] ss:$12 sps:$4 sm:$0xff]   ;;  %v7210_v56 = vld [vmem:[%s10794_s29 + $0x334] ss:$12 sps:$4 sm:$0xff]  }
 0x175   : > { %1944 = vmatprep.subr.bf16.mxu1 %v7138_v63  ;;  %1995 = vmatprep.subr.bf16.mxu0 %v10770_v3  ;;  %v7208_v63 = vld [vmem:[%s10794_s29 + $0x330] ss:$12 sps:$4 sm:$0xff]  }
 0x178   : > { %1945 = vmatpush1.bf16.msra.mxu1 %v7136_v60  ;;  %1996 = vmatpush1.bf16.msra.mxu0 %v7139_v41  ;;  %v7211_v60 = vld [vmem:[%s10794_s29 + $0x338] ss:$12 sps:$4 sm:$0xff]   ;;  %v2087_v41 = vrot.slane %v8127_v12, 1 }
 0x179   : > { %1952 = vmatprep.subr.bf16.mxu1 %v7142_v43  ;;  %2003 = vmatprep.subr.bf16.mxu0 %v10770_v3  ;;  %v2086_v43 = vrot.slane %v8117_v58, 1 }
 0x17c   : > { %1953 = vmatpush2.bf16.msra.mxu1 %v7140_v37  ;;  %2004 = vmatpush2.bf16.msra.mxu0 %v7143_v1  ;;  %v2088_v37 = vsel %vm913_vm3, %v2086_v43, %v2087_v41  ;;  %v2887_v43 = vld [vmem:[%s10796_s8 + $0x2c8] sm:$0xff] }
 0x17d   : > { %1954 = vmatprep.subr.bf16.mxu1 %v7146_v2  ;;  %2005 = vmatprep.subr.bf16.mxu0 %v10770_v3 }
 0x180   : > { %1955 = vmatpush2.bf16.msra.mxu1 %v7144_v46  ;;  %2006 = vmatpush2.bf16.msra.mxu0 %v7147_v30 }
 0x181   : > { %1956 = vmatprep.subr.bf16.mxu1 %v7150_v7  ;;  %2007 = vmatprep.subr.bf16.mxu0 %v10770_v3 }
 0x184   : > { %1957 = vmatpush2.bf16.msra.mxu1 %v7148_v29  ;;  %2008 = vmatpush2.bf16.msra.mxu0 %v7151_v5 }
 0x185   : > { %1958 = vmatprep.subr.bf16.mxu1 %v7154_v9  ;;  %2009 = vmatprep.subr.bf16.mxu0 %v10770_v3 }
 0x188   : > { %1959 = vmatpush2.bf16.msra.mxu1 %v7152_v6  ;;  %2010 = vmatpush2.bf16.msra.mxu0 %v7155_v24 }
 0x189   : > { %1960 = vmatprep.subr.bf16.mxu1 %v7158_v13  ;;  %2011 = vmatprep.subr.bf16.mxu0 %v10770_v3 }
 0x18c   : > { %1961 = vmatpush2.bf16.msra.mxu1 %v7156_v32  ;;  %2012 = vmatpush2.bf16.msra.mxu0 %v7159_v61 }
 0x18d   : > { %2308 = vmatprep.subr.bf16.mxu1 %v7162_v36  ;;  %2359 = vmatprep.subr.bf16.mxu0 %v10770_v3  ;;  %v2829_v36 = vld [vmem:[%s10796_s8 + $0xf8] sm:$0xff] }
 0x18f   : > { %1963 = vmatmul.mubr.bf16.vlgmr.msra.gmra.mxu1 %v8117_v58  ;;  %2014 = vmatmul.mubr.bf16.vlgmr.msra.gmra.mxu0 %v8117_v58 }
 0x190   : > { %6474 = vmatprep.mubr.msk.bf16.mxu1 %vm1611_vm12, %v1263_v27  ;;  %6476 = vmatprep.mubr.msk.bf16.mxu0 %vm1611_vm12, %v1263_v27  ;;  %v2826_v27 = vld [vmem:[%s10796_s8 + $0xe0] sm:$0xff] }
 0x191   : > { %2309 = vmatpush1.bf16.msra.mxu1 %v7160_v26  ;;  %2360 = vmatpush1.bf16.msra.mxu0 %v7163_v15  ;;  %v2828_v26 = vld [vmem:[%s10796_s8 + $0xf0] sm:$0xff]  ;;  %v2827_v15 = vld [vmem:[%s10796_s8 + $0xe8] sm:$0xff] }
 0x192   : > { %2310 = vmatprep.subr.bf16.mxu1 %v7166_v39  ;;  %2361 = vmatprep.subr.bf16.mxu0 %v10770_v3  ;;  %v2825_v39 = vld [vmem:[%s10796_s8 + $0xd8] sm:$0xff] }
 0x195   : > { %2311 = vmatpush1.bf16.msra.mxu1 %v7164_v17  ;;  %2362 = vmatpush1.bf16.msra.mxu0 %v7167_v10  ;;  %v2824_v17 = vld [vmem:[%s10796_s8 + $0xd0] sm:$0xff]  ;;  %v2823_v10 = vld [vmem:[%s10796_s8 + $0xc8] sm:$0xff] }
 0x196   : > { %2312 = vmatprep.subr.bf16.mxu1 %v7170_v59  ;;  %2363 = vmatprep.subr.bf16.mxu0 %v10770_v3  ;;  %v2822_v59 = vld [vmem:[%s10796_s8 + $0xc0] sm:$0xff] }
 0x197   : > { %1973 = vmatmul.mubr.bf16.gmra.mxu1 %v1262_v8  ;;  %2022 = vmatmul.mubr.bf16.gmra.mxu0 %v1262_v8  ;;  %v2821_v8 = vld [vmem:[%s10796_s8 + $0xb8] sm:$0xff] }
 0x198   : > { %6568 = vmatprep.mubr.msk.bf16.mxu1 %vm1611_vm12, %v8141_v28  ;;  %6570 = vmatprep.mubr.msk.bf16.mxu0 %vm1611_vm12, %v8141_v28  ;;  %v7176_v28 = vld [vmem:[%s10794_s29 + $0x2b8] ss:$12 sps:$4 sm:$0xff]  }
 0x199   : > { %2313 = vmatpush1.bf16.msra.mxu1 %v7168_v20  ;;  %2364 = vmatpush1.bf16.msra.mxu0 %v7171_v21  ;;  %v2820_v20 = vld [vmem:[%s10796_s8 + $0xb0] sm:$0xff]  ;;  %v2819_v21 = vld [vmem:[%s10796_s8 + $0xa8] sm:$0xff] }
 0x19a   : > { %2314 = vmatprep.subr.bf16.mxu1 %v7174_v62  ;;  %2365 = vmatprep.subr.bf16.mxu0 %v10770_v3  ;;  %v2818_v62 = vld [vmem:[%s10796_s8 + $0xa0] sm:$0xff] }
 0x19d   : > { %2315 = vmatpush1.bf16.msra.mxu1 %v7172_v19  ;;  %2366 = vmatpush1.bf16.msra.mxu0 %v7175_v31  ;;  %v2817_v19 = vld [vmem:[%s10796_s8 + $0x98] sm:$0xff]  ;;  %v2816_v31 = vld [vmem:[%s10796_s8 + $0x90] sm:$0xff] }
 0x19e   : > { %2316 = vmatprep.subr.bf16.mxu1 %v7178_v34  ;;  %2367 = vmatprep.subr.bf16.mxu0 %v10770_v3  ;;  %v2815_v34 = vld [vmem:[%s10796_s8 + $0x88] sm:$0xff] }
 0x1a1   : > { %2317 = vmatpush1.bf16.msra.mxu1 %v7176_v28  ;;  %2368 = vmatpush1.bf16.msra.mxu0 %v7179_v35  ;;  %v2814_v28 = vld [vmem:[%s10796_s8 + $0x80] sm:$0xff]  ;;  %v2813_v35 = vld [vmem:[%s10796_s8 + $0x78] sm:$0xff] }
 0x1a2   : > { %2318 = vmatprep.subr.bf16.mxu1 %v7182_v0  ;;  %2369 = vmatprep.subr.bf16.mxu0 %v10770_v3  ;;  %v2812_v0 = vld [vmem:[%s10796_s8 + $0x70] sm:$0xff] }
 0x1a5   : > { %2319 = vmatpush1.bf16.msra.mxu1 %v7180_v33  ;;  %2370 = vmatpush1.bf16.msra.mxu0 %v7183_v54  ;;  %v2811_v33 = vld [vmem:[%s10796_s8 + $0x68] sm:$0xff]  ;;  %v2810_v54 = vld [vmem:[%s10796_s8 + $0x60] sm:$0xff] }
 0x1a6   : > { %2320 = vmatprep.subr.bf16.mxu1 %v7186_v38  ;;  %2371 = vmatprep.subr.bf16.mxu0 %v10770_v3  ;;  %v2809_v38 = vld [vmem:[%s10796_s8 + $0x58] sm:$0xff] }
 0x1a9   : > { %2321 = vmatpush1.bf16.msra.mxu1 %v7184_v47  ;;  %2372 = vmatpush1.bf16.msra.mxu0 %v7187_v42  ;;  %v2808_v47 = vld [vmem:[%s10796_s8 + $0x50] sm:$0xff]  ;;  %v2807_v42 = vld [vmem:[%s10796_s8 + $0x48] sm:$0xff] }
 0x1aa   : > { %2322 = vmatprep.subr.bf16.mxu1 %v7190_v16  ;;  %2373 = vmatprep.subr.bf16.mxu0 %v10770_v3  ;;  %v2806_v16 = vld [vmem:[%s10796_s8 + $0x40] sm:$0xff] }
 0x1ad   : > { %2323 = vmatpush1.bf16.msra.mxu1 %v7188_v4  ;;  %2374 = vmatpush1.bf16.msra.mxu0 %v7191_v40  ;;  %v2805_v4 = vld [vmem:[%s10796_s8 + $0x38] sm:$0xff]  ;;  %v2804_v40 = vld [vmem:[%s10796_s8 + $0x30] sm:$0xff] }
 0x1ae   : > { %2330 = vmatprep.subr.bf16.mxu1 %v7194_v14  ;;  %2381 = vmatprep.subr.bf16.mxu0 %v10770_v3  ;;  %v2803_v14 = vld [vmem:[%s10796_s8 + $0x28] sm:$0xff] }
 0x1b1   : > { %2331 = vmatpush2.bf16.msra.mxu1 %v7192_v44  ;;  %2382 = vmatpush2.bf16.msra.mxu0 %v7195_v45  ;;  %v2802_v44 = vld [vmem:[%s10796_s8 + $0x20] sm:$0xff]  ;;  %v2801_v45 = vld [vmem:[%s10796_s8 + $0x18] sm:$0xff] }
 0x1b2   : > { %2332 = vmatprep.subr.bf16.mxu1 %v7198_v52  ;;  %2383 = vmatprep.subr.bf16.mxu0 %v10770_v3  ;;  %v2800_v52 = vld [vmem:[%s10796_s8 + $0x10] sm:$0xff] }
 0x1b5   : > { %2333 = vmatpush2.bf16.msra.mxu1 %v7196_v49  ;;  %2384 = vmatpush2.bf16.msra.mxu0 %v7199_v57  ;;  %v2893_v49 = vld [vmem:[%s10796_s8 + $0x2f8] sm:$0xff]  ;;  %v2799_v57 = vld [vmem:[%s10796_s8 + $0x8] sm:$0xff] }
 0x1b6   : > { %2334 = vmatprep.subr.bf16.mxu1 %v7202_v50  ;;  %2385 = vmatprep.subr.bf16.mxu0 %v10770_v3  ;;  %v2892_v50 = vld [vmem:[%s10796_s8 + $0x2f0] sm:$0xff] }
 0x1b9   : > { %2335 = vmatpush2.bf16.msra.mxu1 %v7200_v23  ;;  %2386 = vmatpush2.bf16.msra.mxu0 %v7203_v48  ;;  %v2798_v23 = vld [vmem:[%s10796_s8] sm:$0xff]  ;;  %v2891_v48 = vld [vmem:[%s10796_s8 + $0x2e8] sm:$0xff] }
 0x1ba   : > { %2336 = vmatprep.subr.bf16.mxu1 %v7206_v55  ;;  %2387 = vmatprep.subr.bf16.mxu0 %v10770_v3  ;;  %v2861_v55 = vld [vmem:[%s10796_s8 + $0x1f8] sm:$0xff] }
 0x1bd   : > { %2337 = vmatpush2.bf16.msra.mxu1 %v7204_v51  ;;  %2388 = vmatpush2.bf16.msra.mxu0 %v7207_v11  ;;  %v2890_v51 = vld [vmem:[%s10796_s8 + $0x2e0] sm:$0xff]  ;;  %v2860_v11 = vld [vmem:[%s10796_s8 + $0x1f0] sm:$0xff] }
 0x1be   : > { %2338 = vmatprep.subr.bf16.mxu1 %v7210_v56  ;;  %2389 = vmatprep.subr.bf16.mxu0 %v10770_v3  ;;  %v2889_v56 = vld [vmem:[%s10796_s8 + $0x2d8] sm:$0xff] }
 0x1c1   : > { %2339 = vmatpush2.bf16.msra.mxu1 %v7208_v63  ;;  %2390 = vmatpush2.bf16.msra.mxu0 %v7211_v60  ;;  %v2859_v63 = vld [vmem:[%s10796_s8 + $0x1e8] sm:$0xff]  ;;  %v2888_v60 = vld [vmem:[%s10796_s8 + $0x2d0] sm:$0xff] }
 0x1c2   : > { %2894 = vmatprep.subr.mxu1 %v2829_v36  ;;  %2977 = vmatprep.subr.mxu0 %v2893_v49 }
 0x1c4   : > { %2341 = vmatmul.mubr.bf16.vlgmr.msra.gmra.mxu1 %v2088_v37  ;;  %2392 = vmatmul.mubr.bf16.vlgmr.msra.gmra.mxu0 %v2088_v37 }
 0x1c5   : > { %6569 = vmatprep.mubr.msk.bf16.mxu1 %vm1611_vm12, %v8136_v53  ;;  %6571 = vmatprep.mubr.msk.bf16.mxu0 %vm1611_vm12, %v8136_v53  ;;  %vm3842_vm12 = vcmask 523264  }
 0x1c6   : > { %2895 = vmatpush1.msra.mxu1 %v2828_v26  ;;  %2978 = vmatpush1.msra.mxu0 %v2892_v50  ;;  %v2855_v26 = vld [vmem:[%s10796_s8 + $0x1c8] sm:$0xff]  ;;  %v2844_v50 = vld [vmem:[%s10796_s8 + $0x170] sm:$0xff] }
 0x1c7   : > { %2896 = vmatprep.subr.mxu1 %v2827_v15  ;;  %2979 = vmatprep.subr.mxu0 %v2891_v48 }
 0x1c8   : > { %2897 = vmatpush1.msra.mxu1 %v2826_v27  ;;  %2980 = vmatpush1.msra.mxu0 %v2890_v51  ;;  %v2854_v27 = vld [vmem:[%s10796_s8 + $0x1c0] sm:$0xff]  ;;  %v2843_v51 = vld [vmem:[%s10796_s8 + $0x168] sm:$0xff] }
 0x1c9   : > { %2898 = vmatprep.subr.mxu1 %v2825_v39  ;;  %2981 = vmatprep.subr.mxu0 %v2889_v56  ;;  %v2883_v39 = vld [vmem:[%s10796_s8 + $0x2a8] sm:$0xff]  ;;  %v2842_v56 = vld [vmem:[%s10796_s8 + $0x160] sm:$0xff] }
 0x1ca   : > { %2899 = vmatpush1.msra.mxu1 %v2824_v17  ;;  %2982 = vmatpush1.msra.mxu0 %v2888_v60  ;;  %v2841_v60 = vld [vmem:[%s10796_s8 + $0x158] sm:$0xff] }
 0x1cb   : > { %2900 = vmatprep.subr.mxu1 %v2823_v10  ;;  %2983 = vmatprep.subr.mxu0 %v2887_v43  ;;  %v2840_v43 = vld [vmem:[%s10796_s8 + $0x150] sm:$0xff] }
 0x1cc   : > { %2351 = vmatmul.mubr.bf16.gmra.mxu1 %v2087_v41  ;;  %2400 = vmatmul.mubr.bf16.gmra.mxu0 %v2087_v41  ;;  %v2858_v41 = vld [vmem:[%s10796_s8 + $0x1e0] sm:$0xff] }
 0x1cd   : > { %2901 = vmatpush1.msra.mxu1 %v2822_v59  ;;  %v2882_v59 = vld [vmem:[%s10796_s8 + $0x2a0] sm:$0xff] }
 0x1ce   : > { %2902 = vmatprep.subr.mxu1 %v2821_v8 }
 0x1cf   : > { %2903 = vmatpush1.msra.mxu1 %v2820_v20  ;;  %v2852_v20 = vld [vmem:[%s10796_s8 + $0x1b0] sm:$0xff] }
 0x1d0   : > { %2904 = vmatprep.subr.mxu1 %v2819_v21  ;;  %v2881_v21 = vld [vmem:[%s10796_s8 + $0x298] sm:$0xff] }
 0x1d1   : > { %2905 = vmatpush1.msra.mxu1 %v2818_v62 }
 0x1d2   : > { %2906 = vmatprep.subr.mxu1 %v2817_v19 }
 0x1d3   : > { %2907 = vmatpush1.msra.mxu1 %v2816_v31  ;;  %v2880_v31 = vld [vmem:[%s10796_s8 + $0x290] sm:$0xff] }
 0x1d4   : > { %2908 = vmatprep.subr.mxu1 %v2815_v34  ;;  %v2850_v34 = vld [vmem:[%s10796_s8 + $0x1a0] sm:$0xff] }
 0x1d5   : > { %2909 = vmatpush1.msra.mxu1 %v2814_v28  ;;  %v2879_v28 = vld [vmem:[%s10796_s8 + $0x288] sm:$0xff] }
 0x1d6   : > { %2910 = vmatprep.subr.mxu1 %v2813_v35 }
 0x1d7   : > { %2911 = vmatpush1.msra.mxu1 %v2812_v0 }
 0x1d8   : > { %2912 = vmatprep.subr.mxu1 %v2811_v33  ;;  %v2849_v33 = vld [vmem:[%s10796_s8 + $0x198] sm:$0xff] }
 0x1d9   : > { %2913 = vmatpush1.msra.mxu1 %v2810_v54  ;;  %v2878_v54 = vld [vmem:[%s10796_s8 + $0x280] sm:$0xff] }
 0x1da   : > { %2914 = vmatprep.subr.mxu1 %v2809_v38 }
 0x1db   : > { %2915 = vmatpush1.msra.mxu1 %v2808_v47 }
 0x1dc   : > { %2916 = vmatprep.subr.mxu1 %v2807_v42  ;;  %v2848_v42 = vld [vmem:[%s10796_s8 + $0x190] sm:$0xff] }
 0x1dd   : > { %2917 = vmatpush1.msra.mxu1 %v2806_v16  ;;  %v2877_v16 = vld [vmem:[%s10796_s8 + $0x278] sm:$0xff] }
 0x1de   : > { %2918 = vmatprep.subr.mxu1 %v2805_v4 }
 0x1df   : > { %2919 = vmatpush1.msra.mxu1 %v2804_v40 }
 0x1e0   : > { %2920 = vmatprep.subr.mxu1 %v2803_v14 }
 0x1e1   : > { %2921 = vmatpush1.msra.mxu1 %v2802_v44  ;;  %v2846_v44 = vld [vmem:[%s10796_s8 + $0x180] sm:$0xff] }
 0x1e2   : > { %2922 = vmatprep.subr.mxu1 %v2801_v45  ;;  %v2875_v45 = vld [vmem:[%s10796_s8 + $0x268] sm:$0xff] }
 0x1e3   : > { %2923 = vmatpush1.msra.mxu1 %v2800_v52 }
 0x1e4   : > { %2924 = vmatprep.subr.mxu1 %v2799_v57  ;;  %v2845_v57 = vld [vmem:[%s10796_s8 + $0x178] sm:$0xff] }
 0x1e5   : > { %2925 = vmatpush1.msra.mxu1 %v2798_v23  ;;  %v2873_v23 = vld [vmem:[%s10796_s8 + $0x258] sm:$0xff] }
 0x1e6   : > { %2926 = vmatprep.subr.mxu1 %v2861_v55 }
 0x1e7   : > { %2927 = vmatpush2.msra.mxu1 %v2860_v11  ;;  %v2872_v11 = vld [vmem:[%s10796_s8 + $0x250] sm:$0xff] }
 0x1e8   : > { %2928 = vmatprep.subr.mxu1 %v2859_v63  ;;  %v2871_v63 = vld [vmem:[%s10796_s8 + $0x248] sm:$0xff] }
 0x1e9   : > { %2929 = vmatpush2.msra.mxu1 %v2858_v41  ;;  %v2870_v41 = vld [vmem:[%s10796_s8 + $0x240] sm:$0xff] }
 0x21b   : > { %v8429_v1 = vpop.f32.mrf.mxu1  ;;  %v8431_v2 = vpop.f32.mrf.mxu0 }
 0x21d   : > { %v8433_v12 = vpop.f32.mrf.mxu1  ;;  %v1705_v46 = vpop.f32.mrf.mxu0 }
 0x21f   : > { %v8435_v58 = vpop.f32.mrf.mxu1  ;;  %v8437_v30 = vpop.f32.mrf.mxu0 }
 0x221   : > { %v8439_v7 = vpop.f32.mrf.mxu1  ;;  %v1708_v29 = vpop.f32.mrf.mxu0 }
 0x222   : > { %v2857_v29 = vld [vmem:[%s10796_s8 + $0x1d8] sm:$0xff] }
 0x223   : > { %v8441_v5 = vpop.f32.mrf.mxu1  ;;  %v8443_v9 = vpop.f32.mrf.mxu0  ;;  %2930 = vmatprep.subr.mxu1 %v2857_v29  ;;  %v2839_v29 = vld [vmem:[%s10796_s8 + $0x148] sm:$0xff] }
 0x225   : > { %v8445_v53 = vpop.f32.mrf.mxu1  ;;  %v1713_v6 = vpop.f32.mrf.mxu0 }
 0x226   : > { %v2886_v6 = vld [vmem:[%s10796_s8 + $0x2c0] sm:$0xff] }
 0x227   : > { %v1666_v24 = vpop.f32.mrf.mxu1  ;;  %v1714_v13 = vpop.f32.mrf.mxu0  ;;  %2984 = vmatpush1.msra.mxu0 %v2886_v6  ;;  %v2868_v6 = vld [vmem:[%s10796_s8 + $0x230] sm:$0xff] }
 0x228   : > { %v2856_v13 = vld [vmem:[%s10796_s8 + $0x1d0] sm:$0xff] }
 0x229   : > { %v1667_v32 = vpop.f32.mrf.mxu1  ;;  %v1715_v61 = vpop.f32.mrf.mxu0  ;;  %2931 = vmatpush2.msra.mxu1 %v2856_v13  ;;  %v2838_v13 = vld [vmem:[%s10796_s8 + $0x140] sm:$0xff] }
 0x22a   : > { %v2885_v32 = vld [vmem:[%s10796_s8 + $0x2b8] sm:$0xff]  ;;  %2932 = vmatprep.subr.mxu1 %v2855_v26  ;;  %v2836_v26 = vld [vmem:[%s10796_s8 + $0x130] sm:$0xff] }
 0x22b   : > { %2985 = vmatprep.subr.mxu0 %v2885_v32  ;;  %2933 = vmatpush2.msra.mxu1 %v2854_v27  ;;  %v2867_v32 = vld [vmem:[%s10796_s8 + $0x228] sm:$0xff] }
 0x22c   : > { %v2835_v27 = vld [vmem:[%s10796_s8 + $0x128] sm:$0xff] }
 0x24f   : > { %v1964_v37 = vpop.f32.mrf.mxu1  ;;  %v8576_v46 = vpop.f32.mrf.mxu0 }
 0x250   : > { %v8585_v24 = vadd.f32 %v1964_v37, %v8429_v1  ;;  %v2884_v1 = vld [vmem:[%s10796_s8 + $0x2b0] sm:$0xff]  ;;  %v2869_v37 = vld [vmem:[%s10796_s8 + $0x238] sm:$0xff] }
 0x251   : > { %v1966_v61 = vpop.f32.mrf.mxu1  ;;  %v2017_v36 = vpop.f32.mrf.mxu0  ;;  %2986 = vmatpush1.msra.mxu0 %v2884_v1  ;;  %v2865_v1 = vld [vmem:[%s10796_s8 + $0x218] sm:$0xff] }
 0x252   : > { %v8600_v15 = vadd.f32 %v1966_v61, %v8433_v12  ;;  %2987 = vmatprep.subr.mxu0 %v2883_v39  ;;  %v2853_v12 = vld [vmem:[%s10796_s8 + $0x1b8] sm:$0xff]  ;;  %v2866_v36 = vld [vmem:[%s10796_s8 + $0x220] sm:$0xff]  ;;  %v2864_v39 = vld [vmem:[%s10796_s8 + $0x210] sm:$0xff] }
 0x253   : > { %v1968_v17 = vpop.f32.mrf.mxu1  ;;  %v8608_v10 = vpop.f32.mrf.mxu0  ;;  %2934 = vmatprep.subr.mxu1 %v2853_v12  ;;  %2988 = vmatpush1.msra.mxu0 %v2882_v59  ;;  %v2837_v61 = vld [vmem:[%s10796_s8 + $0x138] sm:$0xff]  ;;  %v2863_v12 = vld [vmem:[%s10796_s8 + $0x208] sm:$0xff] }
 0x254   : > { %v8617_v8 = vadd.f32 %v1968_v17, %v8435_v58  ;;  %2935 = vmatpush2.msra.mxu1 %v2852_v20  ;;  %2989 = vmatprep.subr.mxu0 %v2881_v21  ;;  %v2851_v58 = vld [vmem:[%s10796_s8 + $0x1a8] sm:$0xff]  ;;  %v2834_v17 = vld [vmem:[%s10796_s8 + $0x120] sm:$0xff]  ;;  %v2833_v59 = vld [vmem:[%s10796_s8 + $0x118] sm:$0xff] }
 0x255   : > { %v8625_v62 = vpop.f32.mrf.mxu1  ;;  %v2020_v19 = vpop.f32.mrf.mxu0  ;;  %2936 = vmatprep.subr.mxu1 %v2851_v58  ;;  %2990 = vmatpush1.msra.mxu0 %v2880_v31  ;;  %v2862_v20 = vld [vmem:[%s10796_s8 + $0x200] sm:$0xff]  ;;  %v2832_v21 = vld [vmem:[%s10796_s8 + $0x110] sm:$0xff]  ;;  %v7593_v58 = vmov 0.0   ;;  %v2831_v31 = vld [vmem:[%s10796_s8 + $0x108] sm:$0xff] }
 0x256   : > { %2937 = vmatpush2.msra.mxu1 %v2850_v34  ;;  %2991 = vmatprep.subr.mxu0 %v2879_v28  ;;  %v3091_v19 = vld [vmem:[%s10797_s9 + $0xf8] sm:$0xff]  ;;  %v2830_v34 = vld [vmem:[%s10796_s8 + $0x100] sm:$0xff] }
 0x257   : > { %v1974_v35 = vpop.f32.mrf.mxu1  ;;  %v2023_v0 = vpop.f32.mrf.mxu0  ;;  %2938 = vmatprep.subr.mxu1 %v2849_v33  ;;  %2992 = vmatpush1.msra.mxu0 %v2878_v54  ;;  %v3155_v28 = vld [vmem:[%s10797_s9 + $0x2f8] sm:$0xff]  ;;  %v2016_v33 = vadd.f32 %v8576_v46, %v8431_v2 }
 0x258   : > { %v8646_v38 = vadd.f32 %v1974_v35, %v8441_v5  ;;  %v8649_v47 = vadd.f32 %v2023_v0, %v8443_v9  ;;  %2939 = vmatpush2.msra.mxu1 %v2848_v42  ;;  %2993 = vmatprep.subr.mxu0 %v2877_v16  ;;  %v2847_v5 = vld [vmem:[%s10796_s8 + $0x188] sm:$0xff]  ;;  %v2876_v9 = vld [vmem:[%s10796_s8 + $0x270] sm:$0xff]  ;;  %v8767_v35 = vsub.s32 2, %v7959_v18  ;;  %v2416_v0 = vld [vmem:[%s10798_s26] sm:$0x7]  ;;  %s10803_s26 = smov %s10802_s24 }
 0x259   : > { %v1976_v4 = vpop.f32.mrf.mxu1  ;;  %v2025_v40 = vpop.f32.mrf.mxu0  ;;  %2940 = vmatprep.subr.mxu1 %v2847_v5  ;;  %2994 = vmatpush1.msra.mxu0 %v2876_v9  ;;  %v8775_v54 = vrot.slane %v2416_v0, %v7962_v22  ;;  %v8782_v9 = vrot.slane %v2416_v0, %v7968_v25 }
 0x25a   : > { %v8664_v14 = vadd.f32 %v1976_v4, %v8445_v53  ;;  %2941 = vmatpush2.msra.mxu1 %v2846_v44  ;;  %2995 = vmatprep.subr.mxu0 %v2875_v45  ;;  %v2874_v53 = vld [vmem:[%s10796_s8 + $0x260] sm:$0xff]  ;;  %v8778_v42 = vrot.slane %v2416_v0, %v8767_v35  ;;  %s7534_s8 = sshll.u32 %s7595_s0, 4  ;;  %s7535_s8 = int_to_ptr.vmem [resolvable:$false] %s7534_s8 }
 0x25b   : > { %v1978_v52 = vpop.f32.mrf.mxu1  ;;  %v2026_v49 = vpop.f32.mrf.mxu0  ;;  %2942 = vmatprep.subr.mxu1 %v2845_v57  ;;  %2996 = vmatpush1.msra.mxu0 %v2874_v53  ;;  %v2019_v57 = vadd.f32 %v8608_v10, %v8437_v30  ;;  %s7536_s5 = scalar_lea.vmem %s7535_s8, 32 }
 0x25c   : > { %2943 = vmatpush2.msra.mxu1 %v2844_v50  ;;  %2997 = vmatprep.subr.mxu0 %v2873_v23 }
 0x25d   : > { %v1979_v48 = vpop.f32.mrf.mxu1  ;;  %v2027_v55 = vpop.f32.mrf.mxu0  ;;  %2944 = vmatprep.subr.mxu1 %v2843_v51  ;;  %2998 = vmatpush1.msra.mxu0 %v2872_v11 }
 0x25e   : > { %2945 = vmatpush2.msra.mxu1 %v2842_v56  ;;  %2999 = vmatprep.subr.mxu0 %v2871_v63 }
 0x25f   : > { %2946 = vmatprep.subr.mxu1 %v2841_v60  ;;  %3000 = vmatpush1.msra.mxu0 %v2870_v41 }
 0x260   : > { %2947 = vmatpush2.msra.mxu1 %v2840_v43  ;;  %3001 = vmatprep.subr.mxu0 %v2869_v37 }
 0x261   : > { %2948 = vmatprep.subr.mxu1 %v2839_v29  ;;  %3002 = vmatpush1.msra.mxu0 %v2868_v6 }
 0x262   : > { %2949 = vmatpush2.msra.mxu1 %v2838_v13  ;;  %3003 = vmatprep.subr.mxu0 %v2867_v32 }
 0x263   : > { %2950 = vmatprep.subr.mxu1 %v2837_v61  ;;  %3004 = vmatpush1.msra.mxu0 %v2866_v36 }
 0x264   : > { %2951 = vmatpush2.msra.mxu1 %v2836_v26  ;;  %3005 = vmatprep.subr.mxu0 %v2865_v1 }
 0x265   : > { %2952 = vmatprep.subr.mxu1 %v2835_v27  ;;  %3006 = vmatpush1.msra.mxu0 %v2864_v39  ;;  %v1971_v27 = vadd.f32 %v8625_v62, %v8439_v7 }
 0x266   : > { %2953 = vmatpush2.msra.mxu1 %v2834_v17  ;;  %3007 = vmatprep.subr.mxu0 %v2863_v12  ;;  %v2703_v17 = vld [vmem:[%s10799_s23] sm:$0x7]  ;;  %s701_s23 = sand.u32 1, %s7582_s30  }
 0x267   : > { %2954 = vmatprep.subr.mxu1 %v2833_v59  ;;  %3008 = vmatpush1.msra.mxu0 %v2862_v20  ;;  %v8836_v62 = vrot.slane %v2703_v17, %v7962_v22  ;;  %s702_s2 = scalar_lea.vmem [#allocation2], %s701_s23  ;;  %s6237_s4 = scalar_lea.sflag [#allocation3], %s701_s23 }
 0x268   : > { %2955 = vmatpush2.msra.mxu1 %v2832_v21  ;;  %3041 = vmatprep.mubr.f32.mxu0 %v7593_v58 }
 0x269   : > { %3156 = vmatprep.subr.mxu0 %v3091_v19  ;;  %2956 = vmatprep.subr.mxu1 %v2831_v31 }
 0x26a   : > { %2957 = vmatpush2.msra.mxu1 %v2830_v34  ;;  %v2729_v34 = vld [vmem:[%s10800_s6] sm:$0x7]  ;;  %s6249_s6 = sshll.u32 %s702_s2, 4  ;;  %s6250_s6 = int_to_ptr.vmem [resolvable:$true] %s6249_s6 }
 0x26b   : > { %3239 = vmatprep.subr.mxu1 %v3155_v28  ;;  %s7530_s25 = scalar_lea.vmem %s6250_s6, 16  ;;  %p7537_p0 = scmp.lt.s32.totalorder %s6250_s6, %s7535_s8 }
 0x26c   : > { %p7531_p11 = scmp.ne.s32.totalorder %s6250_s6, %s7530_s25  ;;  %p7538_p1 = scmp.lt.s32.totalorder %s7536_s5, %s7530_s25 }
 0x26e   : > { %p7532_p12 = pnand %p7531_p11, %p7754_p5  ;;  %p7539_p2 = por %p7538_p1, %p7537_p0 }
 0x270   : > { %p7533_p13 = pneg %p7532_p12 }
 0x272   : > { %p7540_p3 = pnand %p7539_p2, %p7533_p13 }
 0x284   : > { %v2342_v16 = vpop.f32.mrf.mxu1  ;;  %v2393_v4 = vpop.f32.mrf.mxu0 }
 0x285   : > { %v2407_v40 = vadd.f32 %v2342_v16, %v8585_v24  ;;  %v2409_v5 = vadd.f32 %v2393_v4, %v2016_v33  ;;  %v8845_v16 = vrot.slane %v2703_v17, %v8767_v35 }
 0x286   : > { %v2344_v18 = vpop.f32.mrf.mxu1  ;;  %v2395_v44 = vpop.f32.mrf.mxu0 }
 0x287   : > { %v8785_v45 = vadd.f32 %v8775_v54, %v2407_v40  ;;  %v8788_v2 = vadd.f32 %v8778_v42, %v2409_v5  ;;  %v2408_v46 = vadd.f32 %v2344_v18, %v8600_v15 }
 0x288   : > { %v2346_v52 = vpop.f32.mrf.mxu1  ;;  %v2396_v49 = vpop.f32.mrf.mxu0 }
 0x289   : > { %v8794_v24 = vmul.f32 0.70710677, %v8785_v45  ;;  %v8797_v53 = vmul.f32 0.70710677, %v8788_v2  ;;  %v8800_v50 = vadd.f32 %v8782_v9, %v2408_v46  ;;  %v2410_v23 = vadd.f32 %v2346_v52, %v8617_v8 }
 0x28a   : > { %v2348_v48 = vpop.f32.mrf.mxu1  ;;  %v2398_v55 = vpop.f32.mrf.mxu0  ;;  %v2412_v11 = vadd.f32 %v2396_v49, %v2019_v57  ;;  %v8857_v46 = vrot.slane %v2729_v34, %v7962_v22 }
 0x28b   : > { %v2460_v15 = vand.u32 2147483647, %v8794_v24  ;;  %v2462_v51 = vand.u32 2147483647, %v8797_v53  ;;  %v8806_v30 = vmul.f32 0.70710677, %v8800_v50  ;;  %v2436_v10 = vadd.f32 %v8775_v54, %v2410_v23 }
 0x28c   : > { %v2352_v56 = vpop.f32.mrf.mxu1  ;;  %v2401_v63 = vpop.f32.mrf.mxu0  ;;  %v8817_v32 = vadd.f32 %v8778_v42, %v2412_v11  ;;  %v2411_v7 = vadd.f32 %v2348_v48, %v1971_v27  ;;  %v8867_v23 = vrot.slane %v2703_v17, %v7968_v25  ;;  %vm2658_vm13 = vcmp.lt.f32.partialorder %v8794_v24, 0.0 }
 0x28d   : > { %v2469_v60 = vmul.f32 0.3275911, %v2460_v15  ;;  %v2471_v41 = vmul.f32 0.3275911, %v2462_v51  ;;  %v2461_v43 = vand.u32 2147483647, %v8806_v30  ;;  %v2413_v0 = vadd.f32 %v2352_v56, %v8646_v38 }
 0x28e   : > { %v8810_v37 = vmul.f32 0.70710677, %v2436_v10  ;;  %v2354_v8 = vpop.f32.mrf.mxu1  ;;  %v2403_v29 = vpop.f32.mrf.mxu0  ;;  %v2604_v39 = vsub.f32 0.0, %v2460_v15  ;;  %v2606_v12 = vsub.f32 0.0, %v2462_v51  ;;  %v8833_v31 = vmul.f32 0.70710677, %v8817_v32 }
 0x28f   : > { %v8812_v6 = vadd.f32 1.0, %v2469_v60  ;;  %v8814_v13 = vadd.f32 1.0, %v2471_v41  ;;  %v2470_v61 = vmul.f32 0.3275911, %v2461_v43  ;;  %v8850_v5 = vadd.f32 %v8782_v9, %v2411_v7 }
 0x290   : > { %v8820_v36 = vand.u32 2147483647, %v8810_v37  ;;  %v2356_v26 = vpop.f32.mrf.mxu1  ;;  %v2404_v1 = vpop.f32.mrf.mxu0  ;;  %v2613_v33 = vmul.f32 %v2604_v39, %v2460_v15  ;;  %v2465_v4 = vand.u32 2147483647, %v8833_v31  ;;  %v2615_v40 = vmul.f32 %v2606_v12, %v2462_v51 }
 0x291   : > { %7438 = vrcp.f32 %v8812_v6  ;;  %v8829_v59 = vadd.f32 1.0, %v2470_v61  ;;  %v8853_v18 = vadd.f32 %v8775_v54, %v2413_v0  ;;  %v2415_v44 = vadd.f32 %v2401_v63, %v8649_v47 }
 0x292   : > { %7440 = vrcp.f32 %v8814_v13  ;;  %v2472_v20 = vmul.f32 0.3275911, %v8820_v36  ;;  %v2357_v21 = vpop.f32.mrf.mxu1  ;;  %v2405_v19 = vpop.f32.mrf.mxu0  ;;  %v8860_v38 = vrot.slane %v2729_v34, %v8767_v35  ;;  %v2474_v52 = vmul.f32 0.3275911, %v2465_v4 }
 0x293   : > { %7442 = vrcp.f32 %v8829_v59  ;;  %v2605_v49 = vsub.f32 0.0, %v2461_v43  ;;  %v8864_v57 = vmul.f32 0.70710677, %v8850_v5  ;;  %v8870_v54 = vmul.f32 0.70710677, %v8853_v18 }
 0x294   : > { %v8841_v28 = vadd.f32 1.0, %v2472_v20  ;;  %v8873_v47 = vmul.f32 0.5, %v8785_v45  ;;  %v2622_v48 = vmul.f32 1.442695, %v2613_v33  ;;  %v8875_v55 = vadd.f32 1.0, %v2474_v52 }
 0x295   : > { %v8878_v15 = vadd.f32 %v8778_v42, %v2415_v44  ;;  %v2626_v51 = vmul.f32 1.442695, %v2615_v40  ;;  %v2464_v11 = vand.u32 2147483647, %v8864_v57  ;;  %v8882_v56 = vrot.slane %v2729_v34, %v7968_v25 }
 0x296   : > { %7444 = vrcp.f32 %v8841_v28  ;;  %v2466_v63 = vand.u32 2147483647, %v8870_v54  ;;  %v8886_v60 = vmul.f32 0.5, %v8788_v2  ;;  %v8889_v45 = vmul.f32 0.5, %v8800_v50 }
 0x297   : > { %7446 = vrcp.f32 %v8875_v55  ;;  %v8893_v41 = vmul.f32 0.70710677, %v8878_v15  ;;  %v2614_v42 = vmul.f32 %v2605_v49, %v2461_v43  ;;  %v8895_v29 = vmul.f32 0.5, %v2436_v10 }
 0x298   : > { %v2473_v61 = vmul.f32 0.3275911, %v2464_v11  ;;  %v2475_v26 = vmul.f32 0.3275911, %v2466_v63  ;;  %7448 = vpow2.f32 %v2622_v48  ;;  %v2607_v1 = vsub.f32 0.0, %v8820_v36 }
 0x299   : > { %v2468_v27 = vand.u32 2147483647, %v8893_v41  ;;  %v2414_v2 = vadd.f32 %v2354_v8, %v8664_v14  ;;  %7450 = vpow2.f32 %v2626_v51  ;;  %v2609_v50 = vsub.f32 0.0, %v2465_v4 }
 0x29a   : > { %v8900_v17 = vadd.f32 1.0, %v2473_v61  ;;  %v8902_v12 = vadd.f32 1.0, %v2475_v26  ;;  %v2608_v43 = vsub.f32 0.0, %v2464_v11  ;;  %v8910_v34 = vmul.f32 0.5, %v8817_v32 }
 0x29b   : > { %v2477_v21 = vmul.f32 0.3275911, %v2468_v27  ;;  %v8906_v19 = vadd.f32 %v8782_v9, %v2414_v2  ;;  %v2610_v14 = vsub.f32 0.0, %v2466_v63  ;;  %v2616_v0 = vmul.f32 %v2607_v1, %v8820_v36 }
 0x29c   : > { %7452 = vrcp.f32 %v8900_v17  ;;  %v2618_v44 = vmul.f32 %v2609_v50, %v2465_v4  ;;  %v2612_v9 = vsub.f32 0.0, %v2468_v27  ;;  %v2624_v49 = vmul.f32 1.442695, %v2614_v42 }
 0x29d   : > { %7454 = vrcp.f32 %v8902_v12  ;;  %v8915_v33 = vadd.f32 1.0, %v2477_v21  ;;  %v8918_v52 = vmul.f32 0.70710677, %v8906_v19  ;;  %v2617_v48 = vmul.f32 %v2608_v43, %v2464_v11 }
 0x29e   : > { %v7439_v39 = vpop.eup %7438  ;;  %v2619_v36 = vmul.f32 %v2610_v14, %v2466_v63  ;;  %v8933_v11 = vmul.f32 0.5, %v8850_v5  ;;  %v2621_v42 = vmul.f32 %v2612_v9, %v2468_v27  ;;  %vm2660_vm14 = vcmp.lt.f32.partialorder %v8797_v53, 0.0 }
 0x29f   : > { %v7441_v20 = vpop.eup %7440  ;;  %v2496_v10 = vmul.f32 %v7439_v39, %v8812_v6  ;;  %7456 = vrcp.f32 %v8915_v33  ;;  %v8927_v26 = vand.u32 2147483647, %v8918_v52  ;;  %v2630_v43 = vmul.f32 1.442695, %v2617_v48 }
 0x2a0   : > { %v2498_v7 = vmul.f32 %v7441_v20, %v8814_v13  ;;  %v7443_v6 = vpop.eup %7442  ;;  %7458 = vpow2.f32 %v2624_v49  ;;  %v2634_v14 = vmul.f32 1.442695, %v2619_v36  ;;  %v2638_v9 = vmul.f32 1.442695, %v2621_v42 }
 0x2a1   : > { %v2505_v8 = vsub.f32 2.0, %v2496_v10  ;;  %v2497_v32 = vmul.f32 %v7443_v6, %v8829_v59  ;;  %v2632_v59 = vmul.f32 1.442695, %v2618_v44  ;;  %v8945_v44 = vmul.f32 0.5, %v8853_v18 }
 0x2a2   : > { %v2507_v40 = vsub.f32 2.0, %v2498_v7  ;;  %vm2659_vm15 = vcmp.lt.f32.partialorder %v8806_v30, 0.0  ;;  %vm2661_vm0 = vcmp.lt.f32.partialorder %v8810_v37, 0.0  ;;  %vm2663_vm1 = vcmp.lt.f32.partialorder %v8833_v31, 0.0 }
 0x2a3   : > { %v8920_v13 = vmul.f32 %v7439_v39, %v2505_v8  ;;  %v7445_v51 = vpop.eup %7444  ;;  %v2506_v1 = vsub.f32 2.0, %v2497_v32  ;;  %v2628_v39 = vmul.f32 1.442695, %v2616_v0  ;;  %v2476_v8 = vmul.f32 0.3275911, %v8927_v26 }
 0x2a4   : > { %v8923_v61 = vmul.f32 %v7441_v20, %v2507_v40  ;;  %v2499_v2 = vmul.f32 %v7445_v51, %v8841_v28  ;;  %v7447_v21 = vpop.eup %7446  ;;  %vm2662_vm2 = vcmp.lt.f32.partialorder %v8864_v57, 0.0  ;;  %vm2664_vm4 = vcmp.lt.f32.partialorder %v8870_v54, 0.0 }
 0x2a5   : > { %v2523_v4 = vmul.f32 1.0614054, %v8920_v13  ;;  %v8935_v63 = vmul.f32 %v7443_v6, %v2506_v1  ;;  %v2501_v5 = vmul.f32 %v7447_v21, %v8875_v55  ;;  %v7449_v27 = vpop.eup %7448  ;;  %7460 = vpow2.f32 %v2628_v39 }
 0x2a6   : > { %v2525_v50 = vmul.f32 1.0614054, %v8923_v61  ;;  %v2508_v10 = vsub.f32 2.0, %v2499_v2  ;;  %v7451_v32 = vpop.eup %7450  ;;  %7462 = vpow2.f32 %v2632_v59  ;;  %vm2666_vm5 = vcmp.lt.f32.partialorder %v8893_v41, 0.0 }
 0x2a7   : > { %v2532_v20 = vadd.f32 -1.4531521, %v2523_v4  ;;  %v2524_v0 = vmul.f32 1.0614054, %v8935_v63  ;;  %v2510_v1 = vsub.f32 2.0, %v2501_v5  ;;  %7464 = vpow2.f32 %v2630_v43 }
 0x2a8   : > { %v2534_v7 = vadd.f32 -1.4531521, %v2525_v50  ;;  %v8940_v40 = vmul.f32 %v7445_v51, %v2508_v10  ;;  %v8948_v51 = vadd.f32 1.0, %v2476_v8  ;;  %7466 = vpow2.f32 %v2634_v14 }
 0x2a9   : > { %v2541_v28 = vmul.f32 %v2532_v20, %v8920_v13  ;;  %v2533_v48 = vadd.f32 -1.4531521, %v2524_v0  ;;  %v7453_v55 = vpop.eup %7452  ;;  %v8953_v20 = vmul.f32 %v7447_v21, %v2510_v1  ;;  %7468 = vpow2.f32 %v2638_v9 }
 0x2aa   : > { %v2543_v6 = vmul.f32 %v2534_v7, %v8923_v61  ;;  %v2526_v36 = vmul.f32 1.0614054, %v8940_v40  ;;  %v7455_v18 = vpop.eup %7454  ;;  %v2500_v10 = vmul.f32 %v7453_v55, %v8900_v17  ;;  %7470 = vrcp.f32 %v8948_v51 }
 0x2ab   : > { %v2550_v49 = vadd.f32 1.4214138, %v2541_v28  ;;  %v2542_v39 = vmul.f32 %v2533_v48, %v8935_v63  ;;  %v2502_v8 = vmul.f32 %v7455_v18, %v8902_v12  ;;  %v2528_v0 = vmul.f32 1.0614054, %v8953_v20 }
 0x2ac   : > { %v2552_v4 = vadd.f32 1.4214138, %v2543_v6  ;;  %v2535_v50 = vadd.f32 -1.4531521, %v2526_v36  ;;  %v2509_v5 = vsub.f32 2.0, %v2500_v10  ;;  %v7457_v14 = vpop.eup %7456  ;;  %v2450_v41 = vmul.f32 0.5, %v8878_v15 }
 0x2ad   : > { %v2559_v2 = vmul.f32 %v2550_v49, %v8920_v13  ;;  %v2551_v7 = vadd.f32 1.4214138, %v2542_v39  ;;  %v2511_v17 = vsub.f32 2.0, %v2502_v8  ;;  %v2537_v48 = vadd.f32 -1.4531521, %v2528_v0 }
 0x2ae   : > { %v2561_v42 = vmul.f32 %v2552_v4, %v8923_v61  ;;  %v2544_v43 = vmul.f32 %v2535_v50, %v8940_v40  ;;  %v8963_v36 = vmul.f32 %v7453_v55, %v2509_v5  ;;  %v2504_v12 = vmul.f32 %v7457_v14, %v8915_v33 }
 0x2af   : > { %v2568_v59 = vadd.f32 -0.28449672, %v2559_v2  ;;  %v2560_v21 = vmul.f32 %v2551_v7, %v8935_v63  ;;  %v8967_v39 = vmul.f32 %v7455_v18, %v2511_v17  ;;  %v7459_v7 = vpop.eup %7458  ;;  %vm2665_vm6 = vcmp.lt.f32.partialorder %v8918_v52, 0.0  ;;  %v3078_v52 = vld [vmem:[%s10797_s9 + $0x90] sm:$0xff] }
 0x2b0   : > { %v2570_v28 = vadd.f32 -0.28449672, %v2561_v42  ;;  %v2553_v49 = vadd.f32 1.4214138, %v2544_v43  ;;  %v2546_v42 = vmul.f32 %v2537_v48, %v8953_v20  ;;  %v2527_v10 = vmul.f32 1.0614054, %v8963_v36 }
 0x2b1   : > { %v2577_v6 = vmul.f32 %v2568_v59, %v8920_v13  ;;  %v2569_v1 = vadd.f32 -0.28449672, %v2560_v21  ;;  %v2513_v59 = vsub.f32 2.0, %v2504_v12  ;;  %v2529_v8 = vmul.f32 1.0614054, %v8967_v39 }
 0x2b2   : > { %v2579_v9 = vmul.f32 %v2570_v28, %v8923_v61  ;;  %v2562_v2 = vmul.f32 %v2553_v49, %v8940_v40  ;;  %v2555_v28 = vadd.f32 1.4214138, %v2546_v42  ;;  %v2536_v0 = vadd.f32 -1.4531521, %v2527_v10 }
 0x2b3   : > { %v2586_v4 = vadd.f32 0.2548296, %v2577_v6  ;;  %v2578_v33 = vmul.f32 %v2569_v1, %v8935_v63  ;;  %v8977_v5 = vmul.f32 %v7457_v14, %v2513_v59  ;;  %v7461_v6 = vpop.eup %7460 }
 0x2b4   : > { %v2588_v50 = vadd.f32 0.2548296, %v2579_v9  ;;  %v2571_v43 = vadd.f32 -0.28449672, %v2562_v2  ;;  %v2538_v9 = vadd.f32 -1.4531521, %v2529_v8  ;;  %v2564_v12 = vmul.f32 %v2555_v28, %v8953_v20 }
 0x2b5   : > { %v2595_v55 = vmul.f32 %v2586_v4, %v8920_v13  ;;  %v2587_v49 = vadd.f32 0.2548296, %v2578_v33  ;;  %v7463_v13 = vpop.eup %7462  ;;  %v2545_v4 = vmul.f32 %v2536_v0, %v8963_v36 }
 0x2b6   : > { %v2597_v18 = vmul.f32 %v2588_v50, %v8923_v61  ;;  %v2580_v17 = vmul.f32 %v2571_v43, %v8940_v40  ;;  %v2531_v61 = vmul.f32 1.0614054, %v8977_v5  ;;  %v8984_v1 = vpop.eup %7464  ;;  %v2547_v50 = vmul.f32 %v2538_v9, %v8967_v39 }
 0x2b7   : > { %v2640_v21 = vmul.f32 %v7449_v27, %v2595_v55  ;;  %v2596_v2 = vmul.f32 %v2587_v49, %v8935_v63  ;;  %v7467_v42 = vpop.eup %7466  ;;  %v2554_v59 = vadd.f32 1.4214138, %v2545_v4  ;;  %v2611_v55 = vsub.f32 0.0, %v8927_v26 }
 0x2b8   : > { %v2642_v48 = vmul.f32 %v7451_v32, %v2597_v18  ;;  %v2589_v27 = vadd.f32 0.2548296, %v2580_v17  ;;  %v2573_v32 = vadd.f32 -0.28449672, %v2564_v12  ;;  %v8990_v33 = vpop.eup %7468  ;;  %v2556_v28 = vadd.f32 1.4214138, %v2547_v50 }
 0x2b9   : > { %v2649_v14 = vsub.f32 1.0, %v2640_v21  ;;  %v2641_v8 = vmul.f32 %v7459_v7, %v2596_v2  ;;  %v2563_v21 = vmul.f32 %v2554_v59, %v8963_v36  ;;  %v2540_v49 = vadd.f32 -1.4531521, %v2531_v61  ;;  %v7471_v17 = vpop.eup %7470 }
 0x2ba   : > { %v2651_v10 = vsub.f32 1.0, %v2642_v48  ;;  %v2598_v18 = vmul.f32 %v2589_v27, %v8940_v40  ;;  %v2582_v63 = vmul.f32 %v2573_v32, %v8953_v20  ;;  %v2565_v4 = vmul.f32 %v2556_v28, %v8967_v39 }
 0x2bb   : > { %v2667_v43 = vsub.f32 0.0, %v2649_v14  ;;  %v2650_v48 = vsub.f32 1.0, %v2641_v8  ;;  %v2572_v2 = vadd.f32 -0.28449672, %v2563_v21  ;;  %v2620_v8 = vmul.f32 %v2611_v55, %v8927_v26 }
 0x2bc   : > { %v2669_v0 = vsub.f32 0.0, %v2651_v10  ;;  %v2643_v12 = vmul.f32 %v7461_v6, %v2598_v18  ;;  %v2591_v40 = vadd.f32 0.2548296, %v2582_v63  ;;  %v2574_v61 = vadd.f32 -0.28449672, %v2565_v4 }
 0x2bd   : > { %v2676_v9 = vsel %vm2658_vm13, %v2667_v43, %v2649_v14  ;;  %v2668_v50 = vsub.f32 0.0, %v2650_v48  ;;  %v2581_v6 = vmul.f32 %v2572_v2, %v8963_v36  ;;  %v2549_v14 = vmul.f32 %v2540_v49, %v8977_v5 }
 0x2be   : > { %v2685_v3 = vadd.f32 1.0, %v2676_v9  ;;  %v2678_v7 = vsel %vm2660_vm14, %v2669_v0, %v2651_v10  ;;  %v2652_v32 = vsub.f32 1.0, %v2643_v12  ;;  %v2600_v24 = vmul.f32 %v2591_v40, %v8953_v20 }
 0x2bf   : > { %v2687_v27 = vadd.f32 1.0, %v2678_v7  ;;  %v2677_v53 = vsel %vm2659_vm15, %v2668_v50, %v2650_v48  ;;  %v2583_v43 = vmul.f32 %v2574_v61, %v8967_v39  ;;  %v2590_v0 = vadd.f32 0.2548296, %v2581_v6 }
 0x2c0   : > { %v2694_v59 = vmul.f32 %v2685_v3, %v8873_v47  ;;  %v2670_v10 = vsub.f32 0.0, %v2652_v32  ;;  %v2645_v28 = vmul.f32 %v7463_v13, %v2600_v24  ;;  %v2503_v3 = vmul.f32 %v7471_v17, %v8948_v51 }
 0x2c1   : > { %v2696_v18 = vmul.f32 %v2687_v27, %v8886_v60  ;;  %v2592_v63 = vadd.f32 0.2548296, %v2583_v43  ;;  %v2558_v21 = vadd.f32 1.4214138, %v2549_v14  ;;  %v2686_v30 = vadd.f32 1.0, %v2677_v53 }
 0x2c2   : > { %v2720_v47 = vmul.f32 %v8836_v62, %v2694_v59  ;;  %v2679_v20 = vsel %vm2661_vm0, %v2670_v10, %v2652_v32  ;;  %v2654_v9 = vsub.f32 1.0, %v2645_v28  ;;  %v2599_v60 = vmul.f32 %v2590_v0, %v8963_v36 }
 0x2c3   : > { %v2688_v49 = vadd.f32 1.0, %v2679_v20  ;;  %v2601_v26 = vmul.f32 %v2592_v63, %v8967_v39  ;;  %v2567_v51 = vmul.f32 %v2558_v21, %v8977_v5  ;;  %v2636_v13 = vmul.f32 1.442695, %v2620_v8 }
 0x2c4   : > { %v2722_v55 = vmul.f32 %v8845_v16, %v2696_v18  ;;  %v2672_v48 = vsub.f32 0.0, %v2654_v9  ;;  %v2512_v12 = vsub.f32 2.0, %v2503_v3  ;;  %v2746_v4 = vadd.f32 %v8857_v46, %v2720_v47 }
 0x2c5   : > { %v2697_v37 = vmul.f32 %v2688_v49, %v8895_v29  ;;  %v2644_v7 = vmul.f32 %v8984_v1, %v2599_v60  ;;  %v2646_v40 = vmul.f32 %v7467_v42, %v2601_v26  ;;  %v2576_v2 = vadd.f32 -0.28449672, %v2567_v51 }
 0x2c6   : > { %v2695_v27 = vmul.f32 %v2686_v30, %v8889_v45  ;;  %v2681_v39 = vsel %vm2663_vm1, %v2672_v48, %v2654_v9  ;;  %v9027_v50 = vmul.f32 %v7471_v17, %v2512_v12  ;;  %v2748_v24 = vadd.f32 %v8860_v38, %v2722_v55 }
 0x2c7   : > { %v2723_v36 = vmul.f32 %v8836_v62, %v2697_v37  ;;  %v2690_v32 = vadd.f32 1.0, %v2681_v39  ;;  %v2653_v61 = vsub.f32 1.0, %v2644_v7  ;;  %v2655_v29 = vsub.f32 1.0, %v2646_v40  ;;  %v3089_v7 = vld [vmem:[%s10797_s9 + $0xe8] sm:$0xff] }
 0x2c8   : > { %v2585_v59 = vmul.f32 %v2576_v2, %v8977_v5  ;;  %v2530_v42 = vmul.f32 1.0614054, %v9027_v50  ;;  %7472 = vpow2.f32 %v2636_v13  ;;  %v2765_v17 = vrot.slane %v2746_v4, 1 }
 0x2c9   : > { %v9032_v1 = vadd.f32 %v8857_v46, %v2723_v36  ;;  %v2699_v45 = vmul.f32 %v2690_v32, %v8910_v34  ;;  %v2671_v6 = vsub.f32 0.0, %v2653_v61  ;;  %v2673_v31 = vsub.f32 0.0, %v2655_v29  ;;  %v3088_v36 = vld [vmem:[%s10797_s9 + $0xe0] sm:$0xff]  ;;  %v3087_v32 = vld [vmem:[%s10797_s9 + $0xd8] sm:$0xff] }
 0x2ca   : > { %v2594_v14 = vadd.f32 0.2548296, %v2585_v59  ;;  %v2539_v10 = vadd.f32 -1.4531521, %v2530_v42  ;;  %v2721_v43 = vmul.f32 %v8867_v23, %v2695_v27  ;;  %v2771_v9 = vrot.slane %v2748_v24, 1 }
 0x2cb   : > { %v2766_v53 = vrot.slane %v9032_v1, 1  ;;  %v2725_v8 = vmul.f32 %v8845_v16, %v2699_v45  ;;  %v2680_v18 = vsel %vm2662_vm2, %v2671_v6, %v2653_v61  ;;  %v2682_v28 = vsel %vm2664_vm4, %v2673_v31, %v2655_v29  ;;  %v3085_v6 = vld [vmem:[%s10797_s9 + $0xc8] sm:$0xff] }
 0x2cc   : > { %v2603_v0 = vmul.f32 %v2594_v14, %v8977_v5  ;;  %v2689_v34 = vadd.f32 1.0, %v2680_v18  ;;  %v2691_v3 = vadd.f32 1.0, %v2682_v28  ;;  %v2548_v47 = vmul.f32 %v2539_v10, %v9027_v50  ;;  %v3154_v10 = vld [vmem:[%s10797_s9 + $0x2f0] sm:$0xff]  ;;  %v3151_v28 = vld [vmem:[%s10797_s9 + $0x2d8] sm:$0xff] }
 0x2cd   : > { %v2767_v20 = vsel %vm913_vm3, %v2765_v17, %v2766_v53  ;;  %v9047_v63 = vadd.f32 %v8860_v38, %v2725_v8  ;;  %v2747_v26 = vadd.f32 %v8882_v56, %v2721_v43  ;;  %v3152_v8 = vld [vmem:[%s10797_s9 + $0x2e0] sm:$0xff]  ;;  %v3082_v18 = vld [vmem:[%s10797_s9 + $0xb0] sm:$0xff]  ;;  %vm5296_vm4 = vcmask 72704  }
 0x2ce   : > { %v2648_v21 = vmul.f32 %v8990_v33, %v2603_v0  ;;  %v9050_v30 = vmax.f32 %v2746_v4, %v2767_v20  ;;  %v2698_v57 = vmul.f32 %v2689_v34, %v8933_v11  ;;  %v2700_v54 = vmul.f32 %v2691_v3, %v8945_v44  ;;  %v3150_v3 = vld [vmem:[%s10797_s9 + $0x2d0] sm:$0xff]  ;;  %v3149_v20 = vld [vmem:[%s10797_s9 + $0x2c8] sm:$0xff] }
 0x2cf   : > { %v2557_v49 = vadd.f32 1.4214138, %v2548_v47  ;;  %v2772_v5 = vrot.slane %v9047_v63, 1  ;;  %v2768_v40 = vrot.slane %v2747_v26, 1  ;;  %v3080_v47 = vld [vmem:[%s10797_s9 + $0xa0] sm:$0xff] }
 0x2d0   : > { %v2657_v60 = vsub.f32 1.0, %v2648_v21  ;;  %v2724_v51 = vmul.f32 %v8867_v23, %v2698_v57  ;;  %v2726_v13 = vmul.f32 %v8836_v62, %v2700_v54  ;;  %v3090_v62 = vld [vmem:[%s10797_s9 + $0xf0] sm:$0xff]  ;;  %v3079_v21 = vld [vmem:[%s10797_s9 + $0x98] sm:$0xff] }
 0x2d1   : > { %v2566_v55 = vmul.f32 %v2557_v49, %v9027_v50  ;;  %v2773_v11 = vsel %vm913_vm3, %v2771_v9, %v2772_v5  ;;  %v3148_v49 = vld [vmem:[%s10797_s9 + $0x2c0] sm:$0xff] }
 0x2d2   : > { %v2675_v33 = vsub.f32 0.0, %v2657_v60  ;;  %v9064_v44 = vadd.f32 %v8882_v56, %v2724_v51  ;;  %v9067_v37 = vadd.f32 %v8857_v46, %v2726_v13  ;;  %v9069_v12 = vmax.f32 %v2748_v24, %v2773_v11  ;;  %v3086_v24 = vld [vmem:[%s10797_s9 + $0xd0] sm:$0xff]  ;;  %v3145_v13 = vld [vmem:[%s10797_s9 + $0x2a8] sm:$0xff] }
 0x2d3   : > { %v2575_v48 = vadd.f32 -0.28449672, %v2566_v55  ;;  %v3077_v55 = vld [vmem:[%s10797_s9 + $0x88] sm:$0xff] }
 0x2d4   : > { %v2684_v4 = vsel %vm2666_vm5, %v2675_v33, %v2657_v60  ;;  %3042 = vmatmul.mubr.f32.vlgmr.msra.gmra.mxu0 %v9069_v12  ;;  %v2769_v46 = vrot.slane %v9064_v44, 1  ;;  %v2774_v39 = vrot.slane %v9067_v37, 1  ;;  %v3147_v60 = vld [vmem:[%s10797_s9 + $0x2b8] sm:$0xff]  ;;  %v3144_v33 = vld [vmem:[%s10797_s9 + $0x2a0] sm:$0xff] }
 0x2d5   : > { %v2693_v2 = vadd.f32 1.0, %v2684_v4  ;;  %v2584_v27 = vmul.f32 %v2575_v48, %v9027_v50  ;;  %v7473_v15 = vpop.eup %7472  ;;  %3157 = vmatpush1.msra.mxu0 %v3090_v62  ;;  %3047 = vmatprep.mubr.f32.mxu0 %v7593_v58  ;;  %v3076_v48 = vld [vmem:[%s10797_s9 + $0x80] sm:$0xff]  ;;  %v3143_v62 = vld [vmem:[%s10797_s9 + $0x298] sm:$0xff] }
 0x2d6   : > { %3158 = vmatprep.subr.mxu0 %v3089_v7  ;;  %v2770_v59 = vsel %vm913_vm3, %v2768_v40, %v2769_v46  ;;  %v2775_v42 = vsel %vm913_vm3, %v2766_v53, %v2774_v39  ;;  %v3084_v53 = vld [vmem:[%s10797_s9 + $0xc0] sm:$0xff]  ;;  %v3142_v7 = vld [vmem:[%s10797_s9 + $0x290] sm:$0xff] }
 0x2d7   : > { %v2702_v61 = vmul.f32 %v2693_v2, %v2450_v41  ;;  %v2593_v29 = vadd.f32 0.2548296, %v2584_v27  ;;  %v9098_v45 = vmax.f32 %v2747_v26, %v2770_v59  ;;  %3159 = vmatpush1.msra.mxu0 %v3088_v36  ;;  %v9104_v31 = vmax.f32 %v9032_v1, %v2775_v42  ;;  %v3153_v1 = vld [vmem:[%s10797_s9 + $0x2e8] sm:$0xff]  ;;  %v3075_v41 = vld [vmem:[%s10797_s9 + $0x78] sm:$0xff]  ;;  %v3074_v40 = vld [vmem:[%s10797_s9 + $0x70] sm:$0xff] }
 0x2d8   : > { %3160 = vmatprep.subr.mxu0 %v3087_v32  ;;  %v3141_v2 = vld [vmem:[%s10797_s9 + $0x288] sm:$0xff]  ;;  %v3140_v36 = vld [vmem:[%s10797_s9 + $0x280] sm:$0xff]  ;;  %v3139_v32 = vld [vmem:[%s10797_s9 + $0x278] sm:$0xff] }
 0x2d9   : > { %v2728_v14 = vmul.f32 %v8845_v16, %v2702_v61  ;;  %v2602_v17 = vmul.f32 %v2593_v29, %v9027_v50  ;;  %2958 = vmatprep.mubr.f32.mxu1 %v9098_v45  ;;  %3161 = vmatpush1.msra.mxu0 %v3086_v24  ;;  %v3083_v16 = vld [vmem:[%s10797_s9 + $0xb8] sm:$0xff]  ;;  %v3138_v29 = vld [vmem:[%s10797_s9 + $0x270] sm:$0xff]  ;;  %v3137_v24 = vld [vmem:[%s10797_s9 + $0x268] sm:$0xff] }
 0x2da   : > { %2959 = vmatmul.mubr.f32.vlgmr.msra.gmra.mxu1 %v9050_v30  ;;  %3162 = vmatprep.subr.mxu0 %v3085_v6  ;;  %v3070_v59 = vld [vmem:[%s10797_s9 + $0x50] sm:$0xff]  ;;  %v3069_v42 = vld [vmem:[%s10797_s9 + $0x48] sm:$0xff]  ;;  %v3136_v6 = vld [vmem:[%s10797_s9 + $0x260] sm:$0xff] }
 0x2db   : > { %v2754_v50 = vadd.f32 %v8860_v38, %v2728_v14  ;;  %v2647_v43 = vmul.f32 %v7473_v15, %v2602_v17  ;;  %3240 = vmatpush1.msra.mxu1 %v3154_v10  ;;  %3163 = vmatpush1.msra.mxu0 %v3084_v53  ;;  %v3081_v38 = vld [vmem:[%s10797_s9 + $0xa8] sm:$0xff]  ;;  %v3072_v15 = vld [vmem:[%s10797_s9 + $0x60] sm:$0xff]  ;;  %v3134_v53 = vld [vmem:[%s10797_s9 + $0x250] sm:$0xff] }
 0x2dc   : > { %3241 = vmatprep.subr.mxu1 %v3153_v1  ;;  %3164 = vmatprep.subr.mxu0 %v3083_v16  ;;  %v3068_v17 = vld [vmem:[%s10797_s9 + $0x40] sm:$0xff]  ;;  %v3066_v1 = vld [vmem:[%s10797_s9 + $0x30] sm:$0xff]  ;;  %v3133_v16 = vld [vmem:[%s10797_s9 + $0x248] sm:$0xff] }
 0x2dd   : > { %v2656_v0 = vsub.f32 1.0, %v2647_v43  ;;  %v2778_v34 = vrot.slane %v2754_v50, 1  ;;  %3242 = vmatpush1.msra.mxu1 %v3152_v8  ;;  %3165 = vmatpush1.msra.mxu0 %v3082_v18  ;;  %v9267_v43 = vmax.f32 %v9067_v37, %v2774_v39  ;;  %v3132_v8 = vld [vmem:[%s10797_s9 + $0x240] sm:$0xff]  ;;  %v3063_v37 = vld [vmem:[%s10797_s9 + $0x18] sm:$0xff]  ;;  %v3130_v39 = vld [vmem:[%s10797_s9 + $0x230] sm:$0xff] }
 0x2de   : > { %3243 = vmatprep.subr.mxu1 %v3151_v28  ;;  %3166 = vmatprep.subr.mxu0 %v3081_v38  ;;  %v3064_v18 = vld [vmem:[%s10797_s9 + $0x20] sm:$0xff]  ;;  %v3131_v28 = vld [vmem:[%s10797_s9 + $0x238] sm:$0xff]  ;;  %v3062_v38 = vld [vmem:[%s10797_s9 + $0x10] sm:$0xff] }
 0x2df   : > { %v2674_v57 = vsub.f32 0.0, %v2656_v0  ;;  %v2779_v54 = vsel %vm913_vm3, %v2772_v5, %v2778_v34  ;;  %3244 = vmatpush1.msra.mxu1 %v3150_v3  ;;  %3167 = vmatpush1.msra.mxu0 %v3080_v47  ;;  %v3146_v5 = vld [vmem:[%s10797_s9 + $0x2b0] sm:$0xff]  ;;  %v9178_v11 = vmax.f32 %v2754_v50, %v2778_v34  ;;  %v3065_v50 = vld [vmem:[%s10797_s9 + $0x28] sm:$0xff]  ;;  %v3128_v3 = vld [vmem:[%s10797_s9 + $0x220] sm:$0xff] }
 0x2e0   : > { %v9155_v9 = vmax.f32 %v9047_v63, %v2779_v54  ;;  %3245 = vmatprep.subr.mxu1 %v3149_v20  ;;  %3168 = vmatprep.subr.mxu0 %v3079_v21  ;;  %v2449_v63 = vmul.f32 0.5, %v8906_v19  ;;  %v3061_v34 = vld [vmem:[%s10797_s9 + $0x8] sm:$0xff]  ;;  %v3060_v47 = vld [vmem:[%s10797_s9] sm:$0xff]  ;;  %v3127_v20 = vld [vmem:[%s10797_s9 + $0x218] sm:$0xff] }
 0x2e1   : > { %v2683_v26 = vsel %vm2665_vm6, %v2674_v57, %v2656_v0  ;;  %3246 = vmatpush1.msra.mxu1 %v3148_v49  ;;  %3169 = vmatpush1.msra.mxu0 %v3078_v52  ;;  %v3129_v0 = vld [vmem:[%s10797_s9 + $0x228] sm:$0xff]  ;;  %v3123_v21 = vld [vmem:[%s10797_s9 + $0x1f8] sm:$0xff]  ;;  %v3126_v57 = vld [vmem:[%s10797_s9 + $0x210] sm:$0xff] }
 0x2e2   : > { %v2692_v51 = vadd.f32 1.0, %v2683_v26  ;;  %3048 = vmatmul.mubr.f32.gmra.mxu0 %v9155_v9  ;;  %3247 = vmatprep.subr.mxu1 %v3147_v60  ;;  %v3122_v54 = vld [vmem:[%s10797_s9 + $0x1f0] sm:$0xff]  ;;  %v3125_v49 = vld [vmem:[%s10797_s9 + $0x208] sm:$0xff]  ;;  %v3124_v26 = vld [vmem:[%s10797_s9 + $0x200] sm:$0xff] }
 0x2e3   : > { %3053 = vmatprep.mubr.f32.mxu0 %v7593_v58  ;;  %3248 = vmatpush1.msra.mxu1 %v3146_v5  ;;  %v3121_v60 = vld [vmem:[%s10797_s9 + $0x1e8] sm:$0xff]  ;;  %v3120_v5 = vld [vmem:[%s10797_s9 + $0x1e0] sm:$0xff]  ;;  %v3119_v52 = vld [vmem:[%s10797_s9 + $0x1d8] sm:$0xff] }
 0x2e4   : > { %v2701_v19 = vmul.f32 %v2692_v51, %v2449_v63  ;;  %3249 = vmatprep.subr.mxu1 %v3145_v13  ;;  %3170 = vmatprep.subr.mxu0 %v3077_v55  ;;  %v3118_v63 = vld [vmem:[%s10797_s9 + $0x1d0] sm:$0xff]  ;;  %v3117_v51 = vld [vmem:[%s10797_s9 + $0x1c8] sm:$0xff]  ;;  %v3116_v13 = vld [vmem:[%s10797_s9 + $0x1c0] sm:$0xff] }
 0x2e5   : > { %3250 = vmatpush1.msra.mxu1 %v3144_v33  ;;  %3171 = vmatpush1.msra.mxu0 %v3076_v48  ;;  %v3115_v55 = vld [vmem:[%s10797_s9 + $0x1b8] sm:$0xff]  ;;  %v3113_v33 = vld [vmem:[%s10797_s9 + $0x1a8] sm:$0xff] }
 0x2e6   : > { %v2727_v4 = vmul.f32 %v8867_v23, %v2701_v19  ;;  %3054 = vmatmul.mubr.f32.gmra.mxu0 %v9178_v11  ;;  %v3073_v23 = vld [vmem:[%s10797_s9 + $0x68] sm:$0xff]  ;;  %3251 = vmatprep.subr.mxu1 %v3143_v62  ;;  %v3112_v19 = vld [vmem:[%s10797_s9 + $0x1a0] sm:$0xff]  ;;  %v3111_v48 = vld [vmem:[%s10797_s9 + $0x198] sm:$0xff] }
 0x2e7   : > { %3220 = vmatprep.mubr.f32.mxu0 %v9098_v45  ;;  %3172 = vmatprep.subr.mxu0 %v3075_v41  ;;  %v3109_v62 = vld [vmem:[%s10797_s9 + $0x188] sm:$0xff]  ;;  %v3108_v41 = vld [vmem:[%s10797_s9 + $0x180] sm:$0xff] }
 0x2e8   : > { %v2753_v27 = vadd.f32 %v8882_v56, %v2727_v4  ;;  %3252 = vmatpush1.msra.mxu1 %v3142_v7  ;;  %3173 = vmatpush1.msra.mxu0 %v3074_v40  ;;  %v3071_v56 = vld [vmem:[%s10797_s9 + $0x58] sm:$0xff]  ;;  %v3105_v7 = vld [vmem:[%s10797_s9 + $0x168] sm:$0xff]  ;;  %v3104_v40 = vld [vmem:[%s10797_s9 + $0x160] sm:$0xff] }
 0x2e9   : > { %3253 = vmatprep.subr.mxu1 %v3141_v2  ;;  %3174 = vmatprep.subr.mxu0 %v3073_v23  ;;  %v3107_v4 = vld [vmem:[%s10797_s9 + $0x178] sm:$0xff]  ;;  %v3102_v23 = vld [vmem:[%s10797_s9 + $0x150] sm:$0xff] }
 0x2ea   : > { %v2776_v61 = vrot.slane %v2753_v27, 1  ;;  %3254 = vmatpush1.msra.mxu1 %v3140_v36  ;;  %3175 = vmatpush1.msra.mxu0 %v3072_v15  ;;  %v3103_v2 = vld [vmem:[%s10797_s9 + $0x158] sm:$0xff]  ;;  %v3100_v36 = vld [vmem:[%s10797_s9 + $0x140] sm:$0xff] }
 0x2eb   : > { %3255 = vmatprep.subr.mxu1 %v3139_v32  ;;  %3176 = vmatprep.subr.mxu0 %v3071_v56  ;;  %v3099_v15 = vld [vmem:[%s10797_s9 + $0x138] sm:$0xff]  ;;  %v3098_v32 = vld [vmem:[%s10797_s9 + $0x130] sm:$0xff]  ;;  %v3097_v56 = vld [vmem:[%s10797_s9 + $0x128] sm:$0xff] }
 0x2ec   : > { %v2777_v45 = vsel %vm913_vm3, %v2769_v46, %v2776_v61  ;;  %3256 = vmatpush1.msra.mxu1 %v3138_v29  ;;  %3177 = vmatpush1.msra.mxu0 %v3070_v59  ;;  %v3135_v46 = vld [vmem:[%s10797_s9 + $0x258] sm:$0xff]  ;;  %v9245_v10 = vmax.f32 %v2753_v27, %v2776_v61  ;;  %v3101_v27 = vld [vmem:[%s10797_s9 + $0x148] sm:$0xff]  ;;  %v3096_v61 = vld [vmem:[%s10797_s9 + $0x120] sm:$0xff] }
 0x2ed   : > { %v9236_v14 = vmax.f32 %v9064_v44, %v2777_v45  ;;  %3257 = vmatprep.subr.mxu1 %v3137_v24  ;;  %3178 = vmatprep.subr.mxu0 %v3069_v42  ;;  %v3067_v44 = vld [vmem:[%s10797_s9 + $0x38] sm:$0xff]  ;;  %v3094_v59 = vld [vmem:[%s10797_s9 + $0x110] sm:$0xff]  ;;  %v3093_v24 = vld [vmem:[%s10797_s9 + $0x108] sm:$0xff]  ;;  %v10801_v45 = vmov 0  }
 0x2ee   : > { %3258 = vmatpush1.msra.mxu1 %v3136_v6  ;;  %3179 = vmatpush1.msra.mxu0 %v3068_v17  ;;  %v3095_v29 = vld [vmem:[%s10797_s9 + $0x118] sm:$0xff]  ;;  %v3092_v42 = vld [vmem:[%s10797_s9 + $0x100] sm:$0xff] }
 0x2ef   : > { %2964 = vmatprep.mubr.f32.mxu1 %v9236_v14  ;;  %3259 = vmatprep.subr.mxu1 %v3135_v46 }
 0x2f0   : > { %2965 = vmatmul.mubr.f32.gmra.mxu1 %v9104_v31  ;;  %3180 = vmatprep.subr.mxu0 %v3067_v44 }
 0x2f1   : > { %2970 = vmatprep.mubr.f32.mxu1 %v9245_v10  ;;  %3260 = vmatpush1.msra.mxu1 %v3134_v53 }
 0x2f2   : > { %3181 = vmatpush1.msra.mxu0 %v3066_v1  ;;  %3261 = vmatprep.subr.mxu1 %v3133_v16 }
 0x2f3   : > { %3182 = vmatprep.subr.mxu0 %v3065_v50  ;;  %3262 = vmatpush1.msra.mxu1 %v3132_v8 }
 0x2f4   : > { %2971 = vmatmul.mubr.f32.gmra.mxu1 %v9267_v43  ;;  %3183 = vmatpush1.msra.mxu0 %v3064_v18 }
 0x2f5   : > { %3263 = vmatprep.subr.mxu1 %v3131_v28  ;;  %3184 = vmatprep.subr.mxu0 %v3063_v37 }
 0x2f6   : > { %3264 = vmatpush1.msra.mxu1 %v3130_v39  ;;  %3185 = vmatpush1.msra.mxu0 %v3062_v38 }
 0x2f7   : > { %3265 = vmatprep.subr.mxu1 %v3129_v0  ;;  %3186 = vmatprep.subr.mxu0 %v3061_v34 }
 0x2f8   : > { %3266 = vmatpush1.msra.mxu1 %v3128_v3  ;;  %3187 = vmatpush1.msra.mxu0 %v3060_v47 }
 0x2f9   : > { %3267 = vmatprep.subr.mxu1 %v3127_v20  ;;  %3188 = vmatprep.subr.mxu0 %v3123_v21 }
 0x2fa   : > { %3268 = vmatpush1.msra.mxu1 %v3126_v57  ;;  %3189 = vmatpush2.msra.mxu0 %v3122_v54 }
 0x2fb   : > { %3269 = vmatprep.subr.mxu1 %v3125_v49  ;;  %3190 = vmatprep.subr.mxu0 %v3121_v60 }
 0x2fc   : > { %3270 = vmatpush1.msra.mxu1 %v3124_v26  ;;  %3303 = vmatprep.mubr.f32.mxu1 %v7593_v58 }
 0x2fd   : > { %3191 = vmatpush2.msra.mxu0 %v3120_v5  ;;  %3304 = vmatmul.mubr.f32.vlgmr.msra.gmra.mxu1 %v9069_v12  ;;  %v3114_v12 = vld [vmem:[%s10797_s9 + $0x1b0] sm:$0xff] }
 0x2fe   : > { %3192 = vmatprep.subr.mxu0 %v3119_v52  ;;  %3309 = vmatprep.mubr.f32.mxu1 %v7593_v58 }
 0x2ff   : > { %3193 = vmatpush2.msra.mxu0 %v3118_v63 }
 0x300   : > { %3194 = vmatprep.subr.mxu0 %v3117_v51 }
 0x301   : > { %3195 = vmatpush2.msra.mxu0 %v3116_v13  ;;  %3310 = vmatmul.mubr.f32.gmra.mxu1 %v9155_v9  ;;  %v3110_v9 = vld [vmem:[%s10797_s9 + $0x190] sm:$0xff] }
 0x302   : > { %3196 = vmatprep.subr.mxu0 %v3115_v55  ;;  %3315 = vmatprep.mubr.f32.mxu1 %v7593_v58 }
 0x303   : > { %3197 = vmatpush2.msra.mxu0 %v3114_v12 }
 0x304   : > { %3198 = vmatprep.subr.mxu0 %v3113_v33 }
 0x305   : > { %3199 = vmatpush2.msra.mxu0 %v3112_v19  ;;  %3316 = vmatmul.mubr.f32.gmra.mxu1 %v9178_v11  ;;  %v3106_v11 = vld [vmem:[%s10797_s9 + $0x170] sm:$0xff] }
 0x306   : > { %3200 = vmatprep.subr.mxu0 %v3111_v48  ;;  %3407 = vmatprep.mubr.f32.mxu1 %v7593_v58 }
 0x307   : > { %3201 = vmatpush2.msra.mxu0 %v3110_v9 }
 0x308   : > { %3202 = vmatprep.subr.mxu0 %v3109_v62 }
 0x309   : > { %3203 = vmatpush2.msra.mxu0 %v3108_v41  ;;  %v3322_v41 = vld [vmem:[%s10802_s24] sm:$0xff]  ;;  %s6247_s24 = scalar_lea.hbm %s10804_s1, %s6912_s28 }
 0x30a   : > { %3204 = vmatprep.subr.mxu0 %v3107_v4  ;;  %v3323_v4 = vld [vmem:[%s10803_s26 + $0x8] sm:$0xf] }
 0x30b   : > { %3205 = vmatpush2.msra.mxu0 %v3106_v11  ;;  %v7214_v11 = vld [vmem:[%s10746_s10 + $0x1cc] ss:$12 sps:$4 sm:$0xff]  }
 0x30c   : > { %3206 = vmatprep.subr.mxu0 %v3105_v7  ;;  %v7212_v7 = vld [vmem:[%s10746_s10 + $0x1c8] ss:$12 sps:$4 sm:$0xff]  }
 0x30d   : > { %3207 = vmatpush2.msra.mxu0 %v3104_v40  ;;  %v7215_v40 = vld [vmem:[%s10746_s10 + $0x1d0] ss:$12 sps:$4 sm:$0xff]  }
 0x30e   : > { %3208 = vmatprep.subr.mxu0 %v3103_v2  ;;  %v7218_v2 = vld [vmem:[%s10746_s10 + $0x1b4] ss:$12 sps:$4 sm:$0xff]  }
 0x30f   : > { %3209 = vmatpush2.msra.mxu0 %v3102_v23  ;;  %v7216_v23 = vld [vmem:[%s10746_s10 + $0x1b0] ss:$12 sps:$4 sm:$0xff]  }
 0x310   : > { %3210 = vmatprep.subr.mxu0 %v3101_v27  ;;  %v7219_v27 = vld [vmem:[%s10746_s10 + $0x1b8] ss:$12 sps:$4 sm:$0xff]  }
 0x311   : > { %3211 = vmatpush2.msra.mxu0 %v3100_v36  ;;  %v7222_v36 = vld [vmem:[%s10746_s10 + $0x19c] ss:$12 sps:$4 sm:$0xff]  }
 0x312   : > { %3212 = vmatprep.subr.mxu0 %v3099_v15  ;;  %v7220_v15 = vld [vmem:[%s10746_s10 + $0x198] ss:$12 sps:$4 sm:$0xff]  }
 0x313   : > { %3213 = vmatpush2.msra.mxu0 %v3098_v32  ;;  %v7223_v32 = vld [vmem:[%s10746_s10 + $0x1a0] ss:$12 sps:$4 sm:$0xff]  }
 0x314   : > { %3214 = vmatprep.subr.mxu0 %v3097_v56  ;;  %v7226_v56 = vld [vmem:[%s10746_s10 + $0x184] ss:$12 sps:$4 sm:$0xff]  }
 0x315   : > { %3215 = vmatpush2.msra.mxu0 %v3096_v61  ;;  %v7224_v61 = vld [vmem:[%s10746_s10 + $0x180] ss:$12 sps:$4 sm:$0xff]  }
 0x316   : > { %3216 = vmatprep.subr.mxu0 %v3095_v29  ;;  %v7227_v29 = vld [vmem:[%s10746_s10 + $0x188] ss:$12 sps:$4 sm:$0xff]  }
 0x317   : > { %3217 = vmatpush2.msra.mxu0 %v3094_v59  ;;  %v7230_v59 = vld [vmem:[%s10746_s10 + $0x16c] ss:$12 sps:$4 sm:$0xff]  }
 0x318   : > { %3218 = vmatprep.subr.mxu0 %v3093_v24  ;;  %v7228_v24 = vld [vmem:[%s10746_s10 + $0x168] ss:$12 sps:$4 sm:$0xff]  }
 0x319   : > { %3219 = vmatpush2.msra.mxu0 %v3092_v42  ;;  %v7231_v42 = vld [vmem:[%s10746_s10 + $0x170] ss:$12 sps:$4 sm:$0xff]  }
 0x31a   : > { %3221 = vmatmul.mubr.f32.vlgmr.msra.gmra.mxu0 %v9050_v30  ;;  %3889 = vmatprep.subr.bf16.mxu0 %v10801_v45 }
 0x31b   : > { %3226 = vmatprep.mubr.f32.mxu0 %v9236_v14  ;;  %3890 = vmatpush1.bf16.msra.mxu0 %v7215_v40 }
 0x31c   : > { %3891 = vmatprep.subr.bf16.mxu0 %v10801_v45 }
 0x31e   : > { %3227 = vmatmul.mubr.f32.gmra.mxu0 %v9104_v31 }
 0x31f   : > { %3232 = vmatprep.mubr.f32.mxu0 %v9245_v10  ;;  %3892 = vmatpush1.bf16.msra.mxu0 %v7219_v27 }
 0x320   : > { %3893 = vmatprep.subr.bf16.mxu0 %v10801_v45 }
 0x322   : > { %3233 = vmatmul.mubr.f32.gmra.mxu0 %v9267_v43 }
 0x323   : > { %3894 = vmatpush1.bf16.msra.mxu0 %v7223_v32 }
 0x324   : > { %3895 = vmatprep.subr.bf16.mxu0 %v10801_v45 }
 0x327   : > { %3896 = vmatpush1.bf16.msra.mxu0 %v7227_v29 }
 0x328   : > { %3897 = vmatprep.subr.bf16.mxu0 %v10801_v45 }
 0x32b   : > { %3898 = vmatpush1.bf16.msra.mxu0 %v7231_v42 }
 0x32c   : > { %3899 = vmatprep.subr.bf16.mxu0 %v10801_v45 }
 0x394   : > { %v3043_v44 = vpop.f32.mrf.mxu0 }
 0x396   : > { %v3045_v1 = vpop.f32.mrf.mxu0 }
 0x39a   : > { %v2960_v6 = vpop.f32.mrf.mxu1 }
 0x39b   : > { %v3044_v19 = vadd.f32 %v3043_v44, %v2960_v6  ;;  %v7234_v6 = vld [vmem:[%s10746_s10 + $0x154] ss:$12 sps:$4 sm:$0xff]   ;;  %v7238_v44 = vld [vmem:[%s10746_s10 + $0x13c] ss:$12 sps:$4 sm:$0xff]  }
 0x39c   : > { %v2962_v17 = vpop.f32.mrf.mxu1 }
 0x39d   : > { %v3046_v12 = vadd.f32 %v3045_v1, %v2962_v17  ;;  %v7232_v17 = vld [vmem:[%s10746_s10 + $0x150] ss:$12 sps:$4 sm:$0xff]   ;;  %v7239_v1 = vld [vmem:[%s10746_s10 + $0x140] ss:$12 sps:$4 sm:$0xff]  }
 0x3a2   : > { %v3049_v50 = vpop.f32.mrf.mxu0 }
 0x3a4   : > { %v3051_v30 = vpop.f32.mrf.mxu0 }
 0x3a6   : > { %v3055_v28 = vpop.f32.mrf.mxu0 }
 0x3a8   : > { %v3057_v14 = vpop.f32.mrf.mxu0 }
 0x3b0   : > { %v2966_v46 = vpop.f32.mrf.mxu1 }
 0x3b1   : > { %v3050_v51 = vadd.f32 %v3049_v50, %v2966_v46  ;;  %v7235_v46 = vld [vmem:[%s10746_s10 + $0x158] ss:$12 sps:$4 sm:$0xff]   ;;  %v7240_v50 = vld [vmem:[%s10746_s10 + $0x120] ss:$12 sps:$4 sm:$0xff]  }
 0x3b2   : > { %v2968_v53 = vpop.f32.mrf.mxu1  ;;  %3900 = vmatpush1.bf16.msra.mxu0 %v7235_v46 }
 0x3b3   : > { %v3052_v5 = vadd.f32 %v3051_v30, %v2968_v53  ;;  %3901 = vmatprep.subr.bf16.mxu0 %v10801_v45  ;;  %v7236_v53 = vld [vmem:[%s10746_s10 + $0x138] ss:$12 sps:$4 sm:$0xff]   ;;  %v7244_v30 = vld [vmem:[%s10746_s10 + $0x228] ss:$12 sps:$4 sm:$0xff]  }
 0x3b4   : > { %v2972_v16 = vpop.f32.mrf.mxu1 }
 0x3b5   : > { %v3056_v60 = vadd.f32 %v3055_v28, %v2972_v16  ;;  %v7242_v16 = vld [vmem:[%s10746_s10 + $0x124] ss:$12 sps:$4 sm:$0xff]  }
 0x3b6   : > { %v2974_v8 = vpop.f32.mrf.mxu1  ;;  %3902 = vmatpush1.bf16.msra.mxu0 %v7239_v1  ;;  %v7247_v28 = vld [vmem:[%s10746_s10 + $0x230] ss:$12 sps:$4 sm:$0xff]  }
 0x3b7   : > { %v3058_v57 = vadd.f32 %v3057_v14, %v2974_v8  ;;  %3903 = vmatprep.subr.bf16.mxu0 %v10801_v45  ;;  %v7243_v8 = vld [vmem:[%s10746_s10 + $0x128] ss:$12 sps:$4 sm:$0xff]   ;;  %v7248_v14 = vld [vmem:[%s10746_s10 + $0x210] ss:$12 sps:$4 sm:$0xff]  }
 0x3ba   : > { %3904 = vmatpush1.bf16.msra.mxu0 %v7243_v8 }
 0x3bb   : > { %3913 = vmatprep.subr.bf16.mxu0 %v10801_v45 }
 0x3bd   : > { %v3305_v18 = vpop.f32.mrf.mxu1 }
 0x3be   : > { %3914 = vmatpush2.bf16.msra.mxu0 %v7247_v28 }
 0x3bf   : > { %v3307_v37 = vpop.f32.mrf.mxu1  ;;  %3915 = vmatprep.subr.bf16.mxu0 %v10801_v45 }
 0x3c1   : > { %v3311_v39 = vpop.f32.mrf.mxu1 }
 0x3c3   : > { %v3313_v38 = vpop.f32.mrf.mxu1 }
 0x3c5   : > { %v3317_v43 = vpop.f32.mrf.mxu1 }
 0x3c7   : > { %v3319_v47 = vpop.f32.mrf.mxu1 }
 0x3da   : > { %v3222_v31 = vpop.f32.mrf.mxu0 }
 0x3db   : > { %v3306_v13 = vadd.f32 %v3305_v18, %v3222_v31  ;;  %v7246_v18 = vld [vmem:[%s10746_s10 + $0x22c] ss:$12 sps:$4 sm:$0xff]   ;;  %v7254_v31 = vld [vmem:[%s10746_s10 + $0x1fc] ss:$12 sps:$4 sm:$0xff]  }
 0x3dc   : > { %v3224_v10 = vpop.f32.mrf.mxu0 }
 0x3dd   : > { %v3308_v52 = vadd.f32 %v3307_v37, %v3224_v10  ;;  %v3324_v62 = vmax.f32 %v3044_v19, %v3306_v13  ;;  %v7250_v37 = vld [vmem:[%s10746_s10 + $0x214] ss:$12 sps:$4 sm:$0xff]  }
 0x3de   : > { %v3228_v0 = vpop.f32.mrf.mxu0  ;;  %v7255_v10 = vld [vmem:[%s10746_s10 + $0x200] ss:$12 sps:$4 sm:$0xff]  }
 0x3df   : > { %v3312_v26 = vadd.f32 %v3311_v39, %v3228_v0  ;;  %v3325_v9 = vmax.f32 %v3046_v12, %v3308_v52  ;;  %v7251_v39 = vld [vmem:[%s10746_s10 + $0x218] ss:$12 sps:$4 sm:$0xff]  }
 0x3e0   : > { %v3230_v34 = vpop.f32.mrf.mxu0  ;;  %3916 = vmatpush2.bf16.msra.mxu0 %v7251_v39  ;;  %v7258_v0 = vld [vmem:[%s10746_s10 + $0x1e4] ss:$12 sps:$4 sm:$0xff]  }
 0x3e1   : > { %v3314_v54 = vadd.f32 %v3313_v38, %v3230_v34  ;;  %v3326_v48 = vmax.f32 %v3050_v51, %v3312_v26  ;;  %v7252_v38 = vld [vmem:[%s10746_s10 + $0x1f8] ss:$12 sps:$4 sm:$0xff]   ;;  %3917 = vmatprep.subr.bf16.mxu0 %v10801_v45  ;;  %v7259_v34 = vld [vmem:[%s10746_s10 + $0x1e8] ss:$12 sps:$4 sm:$0xff]  }
 0x3e2   : > { %v3234_v3 = vpop.f32.mrf.mxu0 }
 0x3e3   : > { %v3318_v20 = vadd.f32 %v3317_v43, %v3234_v3  ;;  %v3327_v33 = vmax.f32 %v3052_v5, %v3314_v54  ;;  %v7256_v43 = vld [vmem:[%s10746_s10 + $0x1e0] ss:$12 sps:$4 sm:$0xff]  }
 0x3e4   : > { %v3236_v21 = vpop.f32.mrf.mxu0  ;;  %3918 = vmatpush2.bf16.msra.mxu0 %v7255_v10  ;;  %v7262_v3 = vld [vmem:[%s10746_s10 + $0xac] ss:$12 sps:$4 sm:$0xff]  }
 0x3e5   : > { %v3320_v49 = vadd.f32 %v3319_v47, %v3236_v21  ;;  %v3328_v55 = vmax.f32 %v3056_v60, %v3318_v20  ;;  %3919 = vmatprep.subr.bf16.mxu0 %v10801_v45 }
 0x3e7   : > { %v3329_v63 = vmax.f32 %v3058_v57, %v3320_v49 }
 0x3e8   : > { %3920 = vmatpush2.bf16.msra.mxu0 %v7259_v34 }
 0x3e9   : > { %6572 = vmatprep.subr.msk.mxu1 %vm913_vm3, %v3329_v63  ;;  %4167 = vmatprep.subr.bf16.mxu0 %v10801_v45 }
 0x3ea   : > { %6573 = vmatpush1.msk.msra.mxu1 %vm913_vm3, %v3328_v55 }
 0x3eb   : > { %3371 = vmatprep.subr.mxu1 %v3327_v33 }
 0x3ec   : > { %3372 = vmatpush1.msra.mxu1 %v3326_v48 }
 0x3ed   : > { %3373 = vmatprep.subr.mxu1 %v3325_v9 }
 0x3ee   : > { %3374 = vmatpush1.msra.mxu1 %v3324_v62 }
 0x3ef   : > { %6574 = vmatmul.mubr.msk.f32.vlgmr.msra.gmra.mxu1 %vm3330_vm7, %v3322_v41  ;;  %3846 = vmatprep.subr.bf16.mxu1 %v7214_v11 }
 0x3f0   : > { %3413 = vmatprep.mubr.f32.mxu1 %v7593_v58  ;;  %3847 = vmatpush1.bf16.msra.mxu1 %v7212_v7 }
 0x3f1   : > { %3848 = vmatprep.subr.bf16.mxu1 %v7218_v2 }
 0x3f3   : > { %6575 = vmatmul.mubr.msk.f32.gmra.mxu1 %vm3330_vm7, %v3323_v4  ;;  %vm5554_vm7 = vcmask 261120  }
 0x3f4   : > { %3849 = vmatpush1.bf16.msra.mxu1 %v7216_v23 }
 0x3f5   : > { %3850 = vmatprep.subr.bf16.mxu1 %v7222_v36 }
 0x3f8   : > { %3851 = vmatpush1.bf16.msra.mxu1 %v7220_v15 }
 0x3f9   : > { %3852 = vmatprep.subr.bf16.mxu1 %v7226_v56 }
 0x3fc   : > { %3853 = vmatpush1.bf16.msra.mxu1 %v7224_v61 }
 0x3fd   : > { %3854 = vmatprep.subr.bf16.mxu1 %v7230_v59 }
 0x400   : > { %3855 = vmatpush1.bf16.msra.mxu1 %v7228_v24 }
 0x401   : > { %3856 = vmatprep.subr.bf16.mxu1 %v7234_v6 }
 0x404   : > { %3857 = vmatpush1.bf16.msra.mxu1 %v7232_v17 }
 0x405   : > { %3858 = vmatprep.subr.bf16.mxu1 %v7238_v44 }
 0x408   : > { %3859 = vmatpush1.bf16.msra.mxu1 %v7236_v53 }
 0x409   : > { %3860 = vmatprep.subr.bf16.mxu1 %v7242_v16 }
 0x40c   : > { %3861 = vmatpush1.bf16.msra.mxu1 %v7240_v50 }
 0x40d   : > { %3870 = vmatprep.subr.bf16.mxu1 %v7246_v18 }
 0x410   : > { %3871 = vmatpush2.bf16.msra.mxu1 %v7244_v30 }
 0x411   : > { %3872 = vmatprep.subr.bf16.mxu1 %v7250_v37 }
 0x414   : > { %3873 = vmatpush2.bf16.msra.mxu1 %v7248_v14 }
 0x415   : > { %3874 = vmatprep.subr.bf16.mxu1 %v7254_v31 }
 0x418   : > { %3875 = vmatpush2.bf16.msra.mxu1 %v7252_v38 }
 0x419   : > { %3876 = vmatprep.subr.bf16.mxu1 %v7258_v0 }
 0x41c   : > { %3877 = vmatpush2.bf16.msra.mxu1 %v7256_v43 }
 0x41d   : > { %4124 = vmatprep.subr.bf16.mxu1 %v7262_v3 }
 0x4af   : > { %v9553_v47 = vpop.f32.mrf.mxu1 }
 0x4b0   : > { %v9556_v20 = vmul.f32 0.70710677, %v9553_v47 }
 0x4b1   : > { %v9558_v21 = vpop.f32.mrf.mxu1 }
 0x4b2   : > { %v3428_v57 = vand.u32 2147483647, %v9556_v20  ;;  %v9562_v54 = vmul.f32 0.70710677, %v9558_v21  ;;  %vm3516_vm8 = vcmp.lt.f32.partialorder %v9556_v20, 0.0 }
 0x4b3   : > { %v9564_v49 = vpop.f32.mrf.mxu1 }
 0x4b4   : > { %v3432_v60 = vmul.f32 0.3275911, %v3428_v57  ;;  %v3429_v26 = vand.u32 2147483647, %v9562_v54  ;;  %v9568_v5 = vmul.f32 0.70710677, %v9564_v49 }
 0x4b5   : > { %v9570_v52 = vpop.f32.mrf.mxu1  ;;  %v3492_v41 = vsub.f32 0.0, %v3428_v57  ;;  %vm3517_vm9 = vcmp.lt.f32.partialorder %v9562_v54, 0.0  ;;  %v3421_v54 = vmul.f32 0.5, %v9558_v21 }
 0x4b6   : > { %v3436_v63 = vadd.f32 1.0, %v3432_v60  ;;  %v3433_v51 = vmul.f32 0.3275911, %v3429_v26  ;;  %v3430_v13 = vand.u32 2147483647, %v9568_v5  ;;  %v3493_v7 = vsub.f32 0.0, %v3429_v26 }
 0x4b7   : > { %v9574_v55 = vmul.f32 0.70710677, %v9570_v52  ;;  %v3496_v23 = vmul.f32 %v3492_v41, %v3428_v57  ;;  %vm3518_vm10 = vcmp.lt.f32.partialorder %v9568_v5, 0.0 }
 0x4b8   : > { %7474 = vrcp.f32 %v3436_v63  ;;  %v3437_v12 = vadd.f32 1.0, %v3433_v51  ;;  %v3434_v33 = vmul.f32 0.3275911, %v3430_v13  ;;  %v3494_v36 = vsub.f32 0.0, %v3430_v13 }
 0x4b9   : > { %v3431_v19 = vand.u32 2147483647, %v9574_v55  ;;  %v3497_v61 = vmul.f32 %v3493_v7, %v3429_v26  ;;  %v3500_v24 = vmul.f32 1.442695, %v3496_v23  ;;  %vm3519_vm11 = vcmp.lt.f32.partialorder %v9574_v55, 0.0 }
 0x4ba   : > { %7476 = vrcp.f32 %v3437_v12  ;;  %v3438_v48 = vadd.f32 1.0, %v3434_v33  ;;  %v3498_v44 = vmul.f32 %v3494_v36, %v3430_v13 }
 0x4bb   : > { %v3435_v9 = vmul.f32 0.3275911, %v3431_v19  ;;  %v3495_v42 = vsub.f32 0.0, %v3431_v19  ;;  %v3502_v50 = vmul.f32 1.442695, %v3497_v61 }
 0x4bc   : > { %7478 = vrcp.f32 %v3438_v48  ;;  %v3504_v39 = vmul.f32 1.442695, %v3498_v44 }
 0x4bd   : > { %v3439_v62 = vadd.f32 1.0, %v3435_v9  ;;  %v3499_v28 = vmul.f32 %v3495_v42, %v3431_v19 }
 0x4bf   : > { %7480 = vrcp.f32 %v3439_v62  ;;  %v3506_v3 = vmul.f32 1.442695, %v3499_v28 }
 0x4c0   : > { %7482 = vpow2.f32 %v3500_v24 }
 0x4c1   : > { %7484 = vpow2.f32 %v3502_v50 }
 0x4c2   : > { %7486 = vpow2.f32 %v3504_v39 }
 0x4c3   : > { %7488 = vpow2.f32 %v3506_v3 }
 0x4c5   : > { %v7475_v4 = vpop.eup %7474 }
 0x4c6   : > { %v3444_v11 = vmul.f32 %v7475_v4, %v3436_v63 }
 0x4c7   : > { %v7477_v40 = vpop.eup %7476 }
 0x4c8   : > { %v3448_v2 = vsub.f32 2.0, %v3444_v11  ;;  %v3445_v27 = vmul.f32 %v7477_v40, %v3437_v12 }
 0x4c9   : > { %v7479_v15 = vpop.eup %7478 }
 0x4ca   : > { %v3452_v32 = vmul.f32 %v7475_v4, %v3448_v2  ;;  %v3449_v56 = vsub.f32 2.0, %v3445_v27  ;;  %v3446_v29 = vmul.f32 %v7479_v15, %v3438_v48 }
 0x4cc   : > { %v3456_v59 = vmul.f32 1.0614054, %v3452_v32  ;;  %v7481_v6 = vpop.eup %7480  ;;  %v3453_v17 = vmul.f32 %v7477_v40, %v3449_v56  ;;  %v3450_v46 = vsub.f32 2.0, %v3446_v29 }
 0x4cd   : > { %v3447_v1 = vmul.f32 %v7481_v6, %v3439_v62  ;;  %v7483_v40 = vpop.eup %7482 }
 0x4ce   : > { %v3460_v53 = vadd.f32 -1.4531521, %v3456_v59  ;;  %v3457_v16 = vmul.f32 1.0614054, %v3453_v17  ;;  %v3454_v8 = vmul.f32 %v7479_v15, %v3450_v46  ;;  %v7485_v61 = vpop.eup %7484 }
 0x4cf   : > { %v3451_v18 = vsub.f32 2.0, %v3447_v1 }
 0x4d0   : > { %v3464_v30 = vmul.f32 %v3460_v53, %v3452_v32  ;;  %v3461_v37 = vadd.f32 -1.4531521, %v3457_v16  ;;  %v3458_v14 = vmul.f32 1.0614054, %v3454_v8 }
 0x4d1   : > { %v3455_v38 = vmul.f32 %v7481_v6, %v3451_v18  ;;  %v7487_v6 = vpop.eup %7486 }
 0x4d2   : > { %v3468_v31 = vadd.f32 1.4214138, %v3464_v30  ;;  %v3465_v10 = vmul.f32 %v3461_v37, %v3453_v17  ;;  %v3462_v0 = vadd.f32 -1.4531521, %v3458_v14  ;;  %v7489_v16 = vpop.eup %7488 }
 0x4d3   : > { %v3459_v34 = vmul.f32 1.0614054, %v3455_v38 }
 0x4d4   : > { %v3472_v43 = vmul.f32 %v3468_v31, %v3452_v32  ;;  %v3469_v57 = vadd.f32 1.4214138, %v3465_v10  ;;  %v3466_v60 = vmul.f32 %v3462_v0, %v3454_v8  ;;  %v3420_v31 = vmul.f32 0.5, %v9553_v47 }
 0x4d5   : > { %v3463_v63 = vadd.f32 -1.4531521, %v3459_v34  ;;  %v3422_v10 = vmul.f32 0.5, %v9564_v49 }
 0x4d6   : > { %v3476_v26 = vadd.f32 -0.28449672, %v3472_v43  ;;  %v3473_v51 = vmul.f32 %v3469_v57, %v3453_v17  ;;  %v3470_v13 = vadd.f32 1.4214138, %v3466_v60  ;;  %v3423_v57 = vmul.f32 0.5, %v9570_v52 }
 0x4d7   : > { %v3467_v33 = vmul.f32 %v3463_v63, %v3455_v38  ;;  %v7260_v52 = vld [vmem:[%s10746_s10 + $0xa8] ss:$12 sps:$4 sm:$0xff]  }
 0x4d8   : > { %v3480_v12 = vmul.f32 %v3476_v26, %v3452_v32  ;;  %v3477_v19 = vadd.f32 -0.28449672, %v3473_v51  ;;  %v3474_v48 = vmul.f32 %v3470_v13, %v3454_v8 }
 0x4d9   : > { %v3471_v62 = vadd.f32 1.4214138, %v3467_v33 }
 0x4da   : > { %v3484_v9 = vadd.f32 0.2548296, %v3480_v12  ;;  %v3481_v41 = vmul.f32 %v3477_v19, %v3453_v17  ;;  %v3478_v4 = vadd.f32 -0.28449672, %v3474_v48  ;;  %v7263_v19 = vld [vmem:[%s10746_s10 + $0xb0] ss:$12 sps:$4 sm:$0xff]  }
 0x4db   : > { %v3475_v7 = vmul.f32 %v3471_v62, %v3455_v38  ;;  %v7264_v62 = vld [vmem:[%s10746_s10 + $0x90] ss:$12 sps:$4 sm:$0xff]  }
 0x4dc   : > { %v3488_v11 = vmul.f32 %v3484_v9, %v3452_v32  ;;  %v3485_v2 = vadd.f32 0.2548296, %v3481_v41  ;;  %v3482_v23 = vmul.f32 %v3478_v4, %v3454_v8  ;;  %v7266_v9 = vld [vmem:[%s10746_s10 + $0x94] ss:$12 sps:$4 sm:$0xff]   ;;  %v7267_v41 = vld [vmem:[%s10746_s10 + $0x98] ss:$12 sps:$4 sm:$0xff]  }
 0x4dd   : > { %v3479_v36 = vadd.f32 -0.28449672, %v3475_v7  ;;  %v7270_v4 = vld [vmem:[%s10746_s10 + $0x7c] ss:$12 sps:$4 sm:$0xff]   ;;  %v7271_v7 = vld [vmem:[%s10746_s10 + $0x80] ss:$12 sps:$4 sm:$0xff]  }
 0x4de   : > { %v3508_v27 = vmul.f32 %v7483_v40, %v3488_v11  ;;  %v3489_v15 = vmul.f32 %v3485_v2, %v3453_v17  ;;  %v3486_v56 = vadd.f32 0.2548296, %v3482_v23  ;;  %v7268_v11 = vld [vmem:[%s10746_s10 + $0x78] ss:$12 sps:$4 sm:$0xff]   ;;  %v7272_v2 = vld [vmem:[%s10746_s10 + $0x60] ss:$12 sps:$4 sm:$0xff]  }
 0x4df   : > { %v3483_v59 = vmul.f32 %v3479_v36, %v3455_v38  ;;  %v7274_v40 = vld [vmem:[%s10746_s10 + $0x64] ss:$12 sps:$4 sm:$0xff]   ;;  %v7275_v23 = vld [vmem:[%s10746_s10 + $0x68] ss:$12 sps:$4 sm:$0xff]  }
 0x4e0   : > { %v3512_v29 = vsub.f32 1.0, %v3508_v27  ;;  %v3509_v24 = vmul.f32 %v7485_v61, %v3489_v15  ;;  %v3490_v42 = vmul.f32 %v3486_v56, %v3454_v8  ;;  %v7278_v27 = vld [vmem:[%s10746_s10 + $0x4c] ss:$12 sps:$4 sm:$0xff]   ;;  %v7276_v36 = vld [vmem:[%s10746_s10 + $0x48] ss:$12 sps:$4 sm:$0xff]  }
 0x4e1   : > { %v3487_v44 = vadd.f32 0.2548296, %v3483_v59  ;;  %v7279_v15 = vld [vmem:[%s10746_s10 + $0x50] ss:$12 sps:$4 sm:$0xff]   ;;  %v7282_v56 = vld [vmem:[%s10746_s10 + $0x34] ss:$12 sps:$4 sm:$0xff]  }
 0x4e2   : > { %v3520_v46 = vsub.f32 0.0, %v3512_v29  ;;  %v3513_v53 = vsub.f32 1.0, %v3509_v24  ;;  %v3510_v1 = vmul.f32 %v7487_v6, %v3490_v42  ;;  %v7280_v61 = vld [vmem:[%s10746_s10 + $0x30] ss:$12 sps:$4 sm:$0xff]   ;;  %v7284_v24 = vld [vmem:[%s10746_s10 + $0x18] ss:$12 sps:$4 sm:$0xff]  }
 0x4e3   : > { %v3491_v32 = vmul.f32 %v3487_v44, %v3455_v38  ;;  %v7286_v59 = vld [vmem:[%s10746_s10 + $0x1c] ss:$12 sps:$4 sm:$0xff]   ;;  %v7287_v42 = vld [vmem:[%s10746_s10 + $0x20] ss:$12 sps:$4 sm:$0xff]   ;;  %v7290_v6 = vld [vmem:[%s10746_s10 + $0x4] ss:$12 sps:$4 sm:$0xff]  }
 0x4e4   : > { %v3524_v50 = vsel %vm3516_vm8, %v3520_v46, %v3512_v29  ;;  %v3521_v30 = vsub.f32 0.0, %v3513_v53  ;;  %v3514_v18 = vsub.f32 1.0, %v3510_v1  ;;  %v7283_v29 = vld [vmem:[%s10746_s10 + $0x38] ss:$12 sps:$4 sm:$0xff]   ;;  %v7288_v46 = vld [vmem:[%s10746_s10] ss:$12 sps:$4 sm:$0xff]  }
 0x4e5   : > { %v3511_v28 = vmul.f32 %v7489_v16, %v3491_v32  ;;  %v3528_v37 = vadd.f32 1.0, %v3524_v50  ;;  %v7291_v44 = vld [vmem:[%s10746_s10 + $0x8] ss:$12 sps:$4 sm:$0xff]   ;;  %v7295_v32 = vld [vmem:[%s10746_s10 + $0x110] ss:$12 sps:$4 sm:$0xff]   ;;  %vm7594_vm8 = vmmov 0  }
 0x4e6   : > { %v3522_v17 = vsub.f32 0.0, %v3514_v18  ;;  %v3525_v14 = vsel %vm3517_vm9, %v3521_v30, %v3513_v53  ;;  %v7294_v53 = vld [vmem:[%s10746_s10 + $0x10c] ss:$12 sps:$4 sm:$0xff]   ;;  %v7292_v1 = vld [vmem:[%s10746_s10 + $0x108] ss:$12 sps:$4 sm:$0xff]  }
 0x4e7   : > { %v3515_v8 = vsub.f32 1.0, %v3511_v28  ;;  %v3529_v0 = vadd.f32 1.0, %v3525_v14  ;;  %v3532_v43 = vmul.f32 %v3528_v37, %v3420_v31  ;;  %v7298_v16 = vld [vmem:[%s10746_s10 + $0xf4] ss:$12 sps:$4 sm:$0xff]   ;;  %v7296_v50 = vld [vmem:[%s10746_s10 + $0xf0] ss:$12 sps:$4 sm:$0xff]  }
 0x4e8   : > { %v3526_v39 = vsel %vm3518_vm10, %v3522_v17, %v3514_v18  ;;  %v7299_v30 = vld [vmem:[%s10746_s10 + $0xf8] ss:$12 sps:$4 sm:$0xff]   ;;  %v7302_v18 = vld [vmem:[%s10746_s10 + $0xdc] ss:$12 sps:$4 sm:$0xff]   ;;  %v7303_v17 = vld [vmem:[%s10746_s10 + $0xe0] ss:$12 sps:$4 sm:$0xff]  }
 0x4e9   : > { %v3530_v20 = vadd.f32 1.0, %v3526_v39  ;;  %v3523_v38 = vsub.f32 0.0, %v3515_v8  ;;  %v3533_v26 = vmul.f32 %v3529_v0, %v3421_v54  ;;  %v7300_v28 = vld [vmem:[%s10746_s10 + $0xd8] ss:$12 sps:$4 sm:$0xff]   ;;  %v7304_v14 = vld [vmem:[%s10746_s10 + $0xc0] ss:$12 sps:$4 sm:$0xff]  }
 0x4ea   : > { %v7306_v37 = vld [vmem:[%s10746_s10 + $0xc4] ss:$12 sps:$4 sm:$0xff]   ;;  %v7310_v39 = vld [vmem:[%s10746_s10 + $0x2ec] ss:$12 sps:$4 sm:$0xff]   ;;  %v7308_v31 = vld [vmem:[%s10746_s10 + $0x2e8] ss:$12 sps:$4 sm:$0xff]  }
 0x4eb   : > { %v3534_v34 = vmul.f32 %v3530_v20, %v3422_v10  ;;  %v3527_v3 = vsel %vm3519_vm11, %v3523_v38, %v3515_v8  ;;  %v7307_v8 = vld [vmem:[%s10746_s10 + $0xc8] ss:$12 sps:$4 sm:$0xff]   ;;  %v7311_v10 = vld [vmem:[%s10746_s10 + $0x2f0] ss:$12 sps:$4 sm:$0xff]   ;;  %v7319_v54 = vld [vmem:[%s10746_s10 + $0x2c0] ss:$12 sps:$4 sm:$0xff]  }
 0x4ec   : > { %v3531_v60 = vadd.f32 1.0, %v3527_v3  ;;  %v7314_v38 = vld [vmem:[%s10746_s10 + $0x2d4] ss:$12 sps:$4 sm:$0xff]   ;;  %v7312_v0 = vld [vmem:[%s10746_s10 + $0x2d0] ss:$12 sps:$4 sm:$0xff]   ;;  %vm5936_vm10 = vcmask 785408  }
 0x4ed   : > { %v9585_v5 = vpack.c.bf16 %v3534_v34, %v3532_v43  ;;  %v7315_v43 = vld [vmem:[%s10746_s10 + $0x2d8] ss:$12 sps:$4 sm:$0xff]   ;;  %v7318_v34 = vld [vmem:[%s10746_s10 + $0x2bc] ss:$12 sps:$4 sm:$0xff]   ;;  %vm6222_vm11 = vcmask 73728  }
 0x4ee   : > { %v3535_v63 = vmul.f32 %v3531_v60, %v3423_v57  ;;  %v7316_v3 = vld [vmem:[%s10746_s10 + $0x2b8] ss:$12 sps:$4 sm:$0xff]   ;;  %v7320_v60 = vld [vmem:[%s10746_s10 + $0x2a0] ss:$12 sps:$4 sm:$0xff]  }
 0x4ef   : > { %v3638_v47 = vshll.u32 %v9585_v5, 16  ;;  %v3636_v21 = vshrl.u32 %v9585_v5, 16  ;;  %v7322_v57 = vld [vmem:[%s10746_s10 + $0x2a4] ss:$12 sps:$4 sm:$0xff]  }
 0x4f0   : > { %v9588_v49 = vpack.c.bf16 %v3535_v63, %v3533_v26  ;;  %v7323_v26 = vld [vmem:[%s10746_s10 + $0x2a8] ss:$12 sps:$4 sm:$0xff]   ;;  %v7326_v63 = vld [vmem:[%s10746_s10 + $0x28c] ss:$12 sps:$4 sm:$0xff]  }
 0x4f1   : > { %v3640_v13 = vrot.slane %v3638_v47, 1  ;;  %v7324_v47 = vld [vmem:[%s10746_s10 + $0x288] ss:$12 sps:$4 sm:$0xff]  }
 0x4f2   : > { %v3645_v51 = vshll.u32 %v9588_v49, 16  ;;  %v3643_v55 = vshrl.u32 %v9588_v49, 16  ;;  %v4260_v20 = vrot.slane %v9588_v49, 1 }
 0x4f3   : > { %v3641_v48 = vor.u32 %v3640_v13, %v3636_v21  ;;  %v7328_v13 = vld [vmem:[%s10746_s10 + $0x270] ss:$12 sps:$4 sm:$0xff]   ;;  %v7332_v21 = vld [vmem:[%s10746_s10 + $0x258] ss:$12 sps:$4 sm:$0xff]  }
 0x4f4   : > { %v3647_v12 = vrot.slane %v3645_v51, 1  ;;  %v7330_v51 = vld [vmem:[%s10746_s10 + $0x274] ss:$12 sps:$4 sm:$0xff]  }
 0x4f6   : > { %v3648_v33 = vor.u32 %v3647_v12, %v3643_v55  ;;  %v7331_v55 = vld [vmem:[%s10746_s10 + $0x278] ss:$12 sps:$4 sm:$0xff]   ;;  %v7334_v12 = vld [vmem:[%s10746_s10 + $0x25c] ss:$12 sps:$4 sm:$0xff]  }
 0x4f8   : > { %6660 = vmatprep.mubr.msk.bf16.mxu1 %vm3842_vm12, %v3648_v33  ;;  %6661 = vmatprep.mubr.msk.bf16.mxu0 %vm3842_vm12, %v3648_v33  ;;  %v7335_v33 = vld [vmem:[%s10746_s10 + $0x260] ss:$12 sps:$4 sm:$0xff]  }
 0x4f9   : > { %3879 = vmatmul.mubr.bf16.vlgmr.msra.gmra.mxu1 %v3641_v48  ;;  %3922 = vmatmul.mubr.bf16.vlgmr.msra.gmra.mxu0 %v3641_v48  ;;  %v7339_v48 = vld [vmem:[%s10746_s10 + $0x248] ss:$12 sps:$4 sm:$0xff]  }
 0x4fa   : > { %4125 = vmatpush1.bf16.msra.mxu1 %v7260_v52  ;;  %4168 = vmatpush1.bf16.msra.mxu0 %v7263_v19  ;;  %v7338_v52 = vld [vmem:[%s10746_s10 + $0x244] ss:$12 sps:$4 sm:$0xff]   ;;  %v7336_v19 = vld [vmem:[%s10746_s10 + $0x240] ss:$12 sps:$4 sm:$0xff]  }
 0x4fb   : > { %6698 = vmatprep.mubr.msk.bf16.mxu1 %vm3842_vm12, %v9588_v49  ;;  %6699 = vmatprep.mubr.msk.bf16.mxu0 %vm3842_vm12, %v9588_v49  ;;  %v7327_v49 = vld [vmem:[%s10746_s10 + $0x290] ss:$12 sps:$4 sm:$0xff]  }
 0x4fc   : > { %4126 = vmatprep.subr.bf16.mxu1 %v7266_v9  ;;  %4169 = vmatprep.subr.bf16.mxu0 %v10801_v45  ;;  %v7342_v9 = vld [vmem:[%s10746_s10 + $0x34c] ss:$12 sps:$4 sm:$0xff]  }
 0x4fe   : > { %4127 = vmatpush1.bf16.msra.mxu1 %v7264_v62  ;;  %4170 = vmatpush1.bf16.msra.mxu0 %v7267_v41  ;;  %v7340_v62 = vld [vmem:[%s10746_s10 + $0x348] ss:$12 sps:$4 sm:$0xff]   ;;  %v7343_v41 = vld [vmem:[%s10746_s10 + $0x350] ss:$12 sps:$4 sm:$0xff]  }
 0x4ff   : > { %4128 = vmatprep.subr.bf16.mxu1 %v7270_v4  ;;  %4171 = vmatprep.subr.bf16.mxu0 %v10801_v45  ;;  %v7346_v4 = vld [vmem:[%s10746_s10 + $0x334] ss:$12 sps:$4 sm:$0xff]  }
 0x502   : > { %4129 = vmatpush1.bf16.msra.mxu1 %v7268_v11  ;;  %4172 = vmatpush1.bf16.msra.mxu0 %v7271_v7  ;;  %v7344_v11 = vld [vmem:[%s10746_s10 + $0x330] ss:$12 sps:$4 sm:$0xff]   ;;  %v7347_v7 = vld [vmem:[%s10746_s10 + $0x338] ss:$12 sps:$4 sm:$0xff]  }
 0x503   : > { %4130 = vmatprep.subr.bf16.mxu1 %v7274_v40  ;;  %4173 = vmatprep.subr.bf16.mxu0 %v10801_v45  ;;  %v7350_v40 = vld [vmem:[%s10746_s10 + $0x31c] ss:$12 sps:$4 sm:$0xff]  }
 0x506   : > { %4131 = vmatpush1.bf16.msra.mxu1 %v7272_v2  ;;  %4174 = vmatpush1.bf16.msra.mxu0 %v7275_v23  ;;  %v7348_v2 = vld [vmem:[%s10746_s10 + $0x318] ss:$12 sps:$4 sm:$0xff]   ;;  %v7351_v23 = vld [vmem:[%s10746_s10 + $0x320] ss:$12 sps:$4 sm:$0xff]  }
 0x507   : > { %4132 = vmatprep.subr.bf16.mxu1 %v7278_v27  ;;  %4175 = vmatprep.subr.bf16.mxu0 %v10801_v45  ;;  %v7354_v27 = vld [vmem:[%s10746_s10 + $0x304] ss:$12 sps:$4 sm:$0xff]  }
 0x50a   : > { %4133 = vmatpush1.bf16.msra.mxu1 %v7276_v36  ;;  %4176 = vmatpush1.bf16.msra.mxu0 %v7279_v15  ;;  %v7352_v36 = vld [vmem:[%s10746_s10 + $0x300] ss:$12 sps:$4 sm:$0xff]   ;;  %v7355_v15 = vld [vmem:[%s10746_s10 + $0x308] ss:$12 sps:$4 sm:$0xff]  }
 0x50b   : > { %4134 = vmatprep.subr.bf16.mxu1 %v7282_v56  ;;  %4177 = vmatprep.subr.bf16.mxu0 %v10801_v45  ;;  %v4259_v56 = vrot.slane %v9585_v5, 1 }
 0x50e   : > { %4135 = vmatpush1.bf16.msra.mxu1 %v7280_v61  ;;  %4178 = vmatpush1.bf16.msra.mxu0 %v7283_v29  ;;  %v4848_v61 = vld [vmem:[%s10751_s15 + $0xf8] sm:$0xff]  ;;  %v4847_v29 = vld [vmem:[%s10751_s15 + $0xf0] sm:$0xff] }
 0x50f   : > { %4136 = vmatprep.subr.bf16.mxu1 %v7286_v59  ;;  %4179 = vmatprep.subr.bf16.mxu0 %v10801_v45  ;;  %v4846_v59 = vld [vmem:[%s10751_s15 + $0xe8] sm:$0xff] }
 0x512   : > { %4137 = vmatpush1.bf16.msra.mxu1 %v7284_v24  ;;  %4180 = vmatpush1.bf16.msra.mxu0 %v7287_v42  ;;  %v4844_v24 = vld [vmem:[%s10751_s15 + $0xd8] sm:$0xff]  ;;  %v4843_v42 = vld [vmem:[%s10751_s15 + $0xd0] sm:$0xff] }
 0x513   : > { %4138 = vmatprep.subr.bf16.mxu1 %v7290_v6  ;;  %4181 = vmatprep.subr.bf16.mxu0 %v10801_v45  ;;  %v4842_v6 = vld [vmem:[%s10751_s15 + $0xc8] sm:$0xff] }
 0x516   : > { %4139 = vmatpush1.bf16.msra.mxu1 %v7288_v46  ;;  %4182 = vmatpush1.bf16.msra.mxu0 %v7291_v44  ;;  %v4841_v46 = vld [vmem:[%s10751_s15 + $0xc0] sm:$0xff]  ;;  %v4840_v44 = vld [vmem:[%s10751_s15 + $0xb8] sm:$0xff] }
 0x517   : > { %4148 = vmatprep.subr.bf16.mxu1 %v7294_v53  ;;  %4191 = vmatprep.subr.bf16.mxu0 %v10801_v45  ;;  %v4839_v53 = vld [vmem:[%s10751_s15 + $0xb0] sm:$0xff] }
 0x51a   : > { %4149 = vmatpush2.bf16.msra.mxu1 %v7292_v1  ;;  %4192 = vmatpush2.bf16.msra.mxu0 %v7295_v32  ;;  %v4838_v32 = vld [vmem:[%s10751_s15 + $0xa8] sm:$0xff] }
 0x51b   : > { %4150 = vmatprep.subr.bf16.mxu1 %v7298_v16  ;;  %4193 = vmatprep.subr.bf16.mxu0 %v10801_v45  ;;  %v4837_v16 = vld [vmem:[%s10751_s15 + $0xa0] sm:$0xff] }
 0x51e   : > { %4151 = vmatpush2.bf16.msra.mxu1 %v7296_v50  ;;  %4194 = vmatpush2.bf16.msra.mxu0 %v7299_v30  ;;  %v4836_v30 = vld [vmem:[%s10751_s15 + $0x98] sm:$0xff] }
 0x51f   : > { %4152 = vmatprep.subr.bf16.mxu1 %v7302_v18  ;;  %4195 = vmatprep.subr.bf16.mxu0 %v10801_v45  ;;  %v4835_v18 = vld [vmem:[%s10751_s15 + $0x90] sm:$0xff] }
 0x522   : > { %4153 = vmatpush2.bf16.msra.mxu1 %v7300_v28  ;;  %4196 = vmatpush2.bf16.msra.mxu0 %v7303_v17  ;;  %v4834_v17 = vld [vmem:[%s10751_s15 + $0x88] sm:$0xff] }
 0x523   : > { %4154 = vmatprep.subr.bf16.mxu1 %v7306_v37  ;;  %4197 = vmatprep.subr.bf16.mxu0 %v10801_v45  ;;  %v4833_v37 = vld [vmem:[%s10751_s15 + $0x80] sm:$0xff] }
 0x526   : > { %4155 = vmatpush2.bf16.msra.mxu1 %v7304_v14  ;;  %4198 = vmatpush2.bf16.msra.mxu0 %v7307_v8  ;;  %v4832_v8 = vld [vmem:[%s10751_s15 + $0x78] sm:$0xff] }
 0x527   : > { %4457 = vmatprep.subr.bf16.mxu1 %v7310_v39  ;;  %4500 = vmatprep.subr.bf16.mxu0 %v10801_v45  ;;  %v4831_v39 = vld [vmem:[%s10751_s15 + $0x70] sm:$0xff] }
 0x529   : > { %4157 = vmatmul.mubr.bf16.vlgmr.msra.gmra.mxu1 %v9585_v5  ;;  %4200 = vmatmul.mubr.bf16.vlgmr.msra.gmra.mxu0 %v9585_v5  ;;  %v4845_v5 = vld [vmem:[%s10751_s15 + $0xe0] sm:$0xff] }
 0x52a   : > { %4458 = vmatpush1.bf16.msra.mxu1 %v7308_v31  ;;  %6784 = vmatprep.mubr.msk.bf16.mxu1 %vm3842_vm12, %v4260_v20  ;;  %v4830_v31 = vld [vmem:[%s10751_s15 + $0x68] sm:$0xff] }
 0x52b   : > { %4501 = vmatpush1.bf16.msra.mxu0 %v7311_v10  ;;  %6785 = vmatprep.mubr.msk.bf16.mxu0 %vm3842_vm12, %v4260_v20  ;;  %v4829_v10 = vld [vmem:[%s10751_s15 + $0x60] sm:$0xff]  ;;  %v4828_v20 = vld [vmem:[%s10751_s15 + $0x58] sm:$0xff] }
 0x52c   : > { %4459 = vmatprep.subr.bf16.mxu1 %v7314_v38  ;;  %4502 = vmatprep.subr.bf16.mxu0 %v10801_v45  ;;  %v4827_v38 = vld [vmem:[%s10751_s15 + $0x50] sm:$0xff] }
 0x52e   : > { %4460 = vmatpush1.bf16.msra.mxu1 %v7312_v0  ;;  %v4826_v0 = vld [vmem:[%s10751_s15 + $0x48] sm:$0xff] }
 0x52f   : > { %4503 = vmatpush1.bf16.msra.mxu0 %v7315_v43  ;;  %4461 = vmatprep.subr.bf16.mxu1 %v7318_v34  ;;  %v4825_v43 = vld [vmem:[%s10751_s15 + $0x40] sm:$0xff]  ;;  %v4824_v34 = vld [vmem:[%s10751_s15 + $0x38] sm:$0xff] }
 0x530   : > { %4504 = vmatprep.subr.bf16.mxu0 %v10801_v45 }
 0x532   : > { %4462 = vmatpush1.bf16.msra.mxu1 %v7316_v3  ;;  %v4823_v3 = vld [vmem:[%s10751_s15 + $0x30] sm:$0xff] }
 0x533   : > { %4505 = vmatpush1.bf16.msra.mxu0 %v7319_v54  ;;  %4463 = vmatprep.subr.bf16.mxu1 %v7322_v57  ;;  %v4822_v54 = vld [vmem:[%s10751_s15 + $0x28] sm:$0xff]  ;;  %v4821_v57 = vld [vmem:[%s10751_s15 + $0x20] sm:$0xff] }
 0x534   : > { %4506 = vmatprep.subr.bf16.mxu0 %v10801_v45 }
 0x536   : > { %4464 = vmatpush1.bf16.msra.mxu1 %v7320_v60  ;;  %v4820_v60 = vld [vmem:[%s10751_s15 + $0x18] sm:$0xff] }
 0x537   : > { %4507 = vmatpush1.bf16.msra.mxu0 %v7323_v26  ;;  %4465 = vmatprep.subr.bf16.mxu1 %v7326_v63  ;;  %v4819_v26 = vld [vmem:[%s10751_s15 + $0x10] sm:$0xff]  ;;  %v4818_v63 = vld [vmem:[%s10751_s15 + $0x8] sm:$0xff] }
 0x538   : > { %4508 = vmatprep.subr.bf16.mxu0 %v10801_v45 }
 0x53a   : > { %4466 = vmatpush1.bf16.msra.mxu1 %v7324_v47  ;;  %v4817_v47 = vld [vmem:[%s10751_s15] sm:$0xff] }
 0x53b   : > { %4509 = vmatpush1.bf16.msra.mxu0 %v7327_v49  ;;  %4467 = vmatprep.subr.bf16.mxu1 %v7330_v51  ;;  %v4880_v49 = vld [vmem:[%s10751_s15 + $0x1f8] sm:$0xff]  ;;  %v4879_v51 = vld [vmem:[%s10751_s15 + $0x1f0] sm:$0xff] }
 0x53c   : > { %4510 = vmatprep.subr.bf16.mxu0 %v10801_v45 }
 0x53e   : > { %4468 = vmatpush1.bf16.msra.mxu1 %v7328_v13  ;;  %v4878_v13 = vld [vmem:[%s10751_s15 + $0x1e8] sm:$0xff] }
 0x53f   : > { %4511 = vmatpush1.bf16.msra.mxu0 %v7331_v55  ;;  %4469 = vmatprep.subr.bf16.mxu1 %v7334_v12  ;;  %v4877_v55 = vld [vmem:[%s10751_s15 + $0x1e0] sm:$0xff]  ;;  %v4876_v12 = vld [vmem:[%s10751_s15 + $0x1d8] sm:$0xff] }
 0x540   : > { %4512 = vmatprep.subr.bf16.mxu0 %v10801_v45 }
 0x542   : > { %4470 = vmatpush1.bf16.msra.mxu1 %v7332_v21  ;;  %v4875_v21 = vld [vmem:[%s10751_s15 + $0x1d0] sm:$0xff] }
 0x543   : > { %4513 = vmatpush1.bf16.msra.mxu0 %v7335_v33  ;;  %4471 = vmatprep.subr.bf16.mxu1 %v7338_v52  ;;  %v4874_v33 = vld [vmem:[%s10751_s15 + $0x1c8] sm:$0xff]  ;;  %v4873_v52 = vld [vmem:[%s10751_s15 + $0x1c0] sm:$0xff] }
 0x544   : > { %4514 = vmatprep.subr.bf16.mxu0 %v10801_v45 }
 0x546   : > { %4472 = vmatpush1.bf16.msra.mxu1 %v7336_v19  ;;  %v4872_v19 = vld [vmem:[%s10751_s15 + $0x1b8] sm:$0xff] }
 0x547   : > { %4515 = vmatpush1.bf16.msra.mxu0 %v7339_v48  ;;  %4481 = vmatprep.subr.bf16.mxu1 %v7342_v9  ;;  %v4871_v48 = vld [vmem:[%s10751_s15 + $0x1b0] sm:$0xff]  ;;  %v4870_v9 = vld [vmem:[%s10751_s15 + $0x1a8] sm:$0xff] }
 0x548   : > { %4524 = vmatprep.subr.bf16.mxu0 %v10801_v45 }
 0x54a   : > { %4482 = vmatpush2.bf16.msra.mxu1 %v7340_v62  ;;  %v4869_v62 = vld [vmem:[%s10751_s15 + $0x1a0] sm:$0xff] }
 0x54b   : > { %4525 = vmatpush2.bf16.msra.mxu0 %v7343_v41  ;;  %4483 = vmatprep.subr.bf16.mxu1 %v7346_v4  ;;  %v4868_v41 = vld [vmem:[%s10751_s15 + $0x198] sm:$0xff]  ;;  %v4867_v4 = vld [vmem:[%s10751_s15 + $0x190] sm:$0xff] }
 0x54c   : > { %4526 = vmatprep.subr.bf16.mxu0 %v10801_v45 }
 0x54e   : > { %4484 = vmatpush2.bf16.msra.mxu1 %v7344_v11  ;;  %v4896_v11 = vld [vmem:[%s10751_s15 + $0x278] sm:$0xff] }
 0x54f   : > { %4527 = vmatpush2.bf16.msra.mxu0 %v7347_v7  ;;  %4485 = vmatprep.subr.bf16.mxu1 %v7350_v40  ;;  %v4866_v7 = vld [vmem:[%s10751_s15 + $0x188] sm:$0xff]  ;;  %v4895_v40 = vld [vmem:[%s10751_s15 + $0x270] sm:$0xff] }
 0x550   : > { %4528 = vmatprep.subr.bf16.mxu0 %v10801_v45 }
 0x552   : > { %4486 = vmatpush2.bf16.msra.mxu1 %v7348_v2  ;;  %v4865_v2 = vld [vmem:[%s10751_s15 + $0x180] sm:$0xff] }
 0x553   : > { %4529 = vmatpush2.bf16.msra.mxu0 %v7351_v23  ;;  %4487 = vmatprep.subr.bf16.mxu1 %v7354_v27  ;;  %v4894_v23 = vld [vmem:[%s10751_s15 + $0x268] sm:$0xff]  ;;  %v4864_v27 = vld [vmem:[%s10751_s15 + $0x178] sm:$0xff] }
 0x554   : > { %4530 = vmatprep.subr.bf16.mxu0 %v10801_v45 }
 0x556   : > { %4488 = vmatpush2.bf16.msra.mxu1 %v7352_v36  ;;  %v4893_v36 = vld [vmem:[%s10751_s15 + $0x260] sm:$0xff] }
 0x557   : > { %4531 = vmatpush2.bf16.msra.mxu0 %v7355_v15  ;;  %4903 = vmatprep.subr.mxu1 %v4848_v61  ;;  %v4863_v15 = vld [vmem:[%s10751_s15 + $0x170] sm:$0xff]  ;;  %v4862_v61 = vld [vmem:[%s10751_s15 + $0x168] sm:$0xff] }
 0x558   : > { %4996 = vmatprep.subr.mxu0 %v4896_v11 }
 0x559   : > { %4490 = vmatmul.mubr.bf16.vlgmr.msra.gmra.mxu1 %v4259_v56 }
 0x55a   : > { %4533 = vmatmul.mubr.bf16.vlgmr.msra.gmra.mxu0 %v4259_v56  ;;  %4904 = vmatpush1.msra.mxu1 %v4847_v29  ;;  %v4892_v56 = vld [vmem:[%s10751_s15 + $0x258] sm:$0xff]  ;;  %v4891_v29 = vld [vmem:[%s10751_s15 + $0x250] sm:$0xff] }
 0x55b   : > { %5044 = vmatprep.mubr.f32.mxu0 %v7593_v58  ;;  %4905 = vmatprep.subr.mxu1 %v4846_v59  ;;  %v4861_v59 = vld [vmem:[%s10751_s15 + $0x160] sm:$0xff] }
 0x55c   : > { %4906 = vmatpush1.msra.mxu1 %v4845_v5  ;;  %4997 = vmatpush1.msra.mxu0 %v4895_v40  ;;  %v4890_v5 = vld [vmem:[%s10751_s15 + $0x248] sm:$0xff] }
 0x55d   : > { %4907 = vmatprep.subr.mxu1 %v4844_v24  ;;  %4998 = vmatprep.subr.mxu0 %v4894_v23  ;;  %v4860_v24 = vld [vmem:[%s10751_s15 + $0x158] sm:$0xff] }
 0x55e   : > { %4908 = vmatpush1.msra.mxu1 %v4843_v42  ;;  %4999 = vmatpush1.msra.mxu0 %v4893_v36  ;;  %v4889_v42 = vld [vmem:[%s10751_s15 + $0x240] sm:$0xff] }
 0x55f   : > { %4909 = vmatprep.subr.mxu1 %v4842_v6  ;;  %5000 = vmatprep.subr.mxu0 %v4892_v56  ;;  %v4859_v6 = vld [vmem:[%s10751_s15 + $0x150] sm:$0xff] }
 0x560   : > { %4910 = vmatpush1.msra.mxu1 %v4841_v46  ;;  %5001 = vmatpush1.msra.mxu0 %v4891_v29  ;;  %v4888_v46 = vld [vmem:[%s10751_s15 + $0x238] sm:$0xff] }
 0x561   : > { %4911 = vmatprep.subr.mxu1 %v4840_v44  ;;  %5002 = vmatprep.subr.mxu0 %v4890_v5  ;;  %v4858_v44 = vld [vmem:[%s10751_s15 + $0x148] sm:$0xff] }
 0x562   : > { %4912 = vmatpush1.msra.mxu1 %v4839_v53  ;;  %5003 = vmatpush1.msra.mxu0 %v4889_v42  ;;  %v4887_v53 = vld [vmem:[%s10751_s15 + $0x230] sm:$0xff] }
 0x563   : > { %4913 = vmatprep.subr.mxu1 %v4838_v32  ;;  %5004 = vmatprep.subr.mxu0 %v4888_v46  ;;  %v4857_v32 = vld [vmem:[%s10751_s15 + $0x140] sm:$0xff] }
 0x564   : > { %4914 = vmatpush1.msra.mxu1 %v4837_v16  ;;  %5005 = vmatpush1.msra.mxu0 %v4887_v53  ;;  %v4886_v16 = vld [vmem:[%s10751_s15 + $0x228] sm:$0xff] }
 0x565   : > { %4915 = vmatprep.subr.mxu1 %v4836_v30  ;;  %5006 = vmatprep.subr.mxu0 %v4886_v16  ;;  %v4885_v30 = vld [vmem:[%s10751_s15 + $0x220] sm:$0xff] }
 0x566   : > { %4916 = vmatpush1.msra.mxu1 %v4835_v18  ;;  %v4855_v18 = vld [vmem:[%s10751_s15 + $0x130] sm:$0xff]  ;;  %5007 = vmatpush1.msra.mxu0 %v4885_v30 }
 0x567   : > { %4917 = vmatprep.subr.mxu1 %v4834_v17  ;;  %v4884_v17 = vld [vmem:[%s10751_s15 + $0x218] sm:$0xff] }
 0x568   : > { %4918 = vmatpush1.msra.mxu1 %v4833_v37  ;;  %v4854_v37 = vld [vmem:[%s10751_s15 + $0x128] sm:$0xff]  ;;  %5008 = vmatprep.subr.mxu0 %v4884_v17 }
 0x569   : > { %4919 = vmatprep.subr.mxu1 %v4832_v8  ;;  %v4853_v8 = vld [vmem:[%s10751_s15 + $0x120] sm:$0xff] }
 0x56a   : > { %4920 = vmatpush1.msra.mxu1 %v4831_v39 }
 0x56b   : > { %4921 = vmatprep.subr.mxu1 %v4830_v31  ;;  %v4882_v31 = vld [vmem:[%s10751_s15 + $0x208] sm:$0xff] }
 0x56c   : > { %4922 = vmatpush1.msra.mxu1 %v4829_v10  ;;  %v4852_v10 = vld [vmem:[%s10751_s15 + $0x118] sm:$0xff] }
 0x56d   : > { %4923 = vmatprep.subr.mxu1 %v4828_v20  ;;  %v4881_v20 = vld [vmem:[%s10751_s15 + $0x200] sm:$0xff] }
 0x56e   : > { %4924 = vmatpush1.msra.mxu1 %v4827_v38  ;;  %v4851_v38 = vld [vmem:[%s10751_s15 + $0x110] sm:$0xff] }
 0x56f   : > { %4925 = vmatprep.subr.mxu1 %v4826_v0  ;;  %v5088_v0 = vld [vmem:[%s10752_s16 + $0xf8] sm:$0xff] }
 0x570   : > { %4926 = vmatpush1.msra.mxu1 %v4825_v43 }
 0x571   : > { %4927 = vmatprep.subr.mxu1 %v4824_v34  ;;  %v4850_v34 = vld [vmem:[%s10751_s15 + $0x108] sm:$0xff] }
 0x572   : > { %4928 = vmatpush1.msra.mxu1 %v4823_v3  ;;  %v4849_v3 = vld [vmem:[%s10751_s15 + $0x100] sm:$0xff] }
 0x573   : > { %4929 = vmatprep.subr.mxu1 %v4822_v54 }
 0x574   : > { %4930 = vmatpush1.msra.mxu1 %v4821_v57 }
 0x575   : > { %4931 = vmatprep.subr.mxu1 %v4820_v60  ;;  %v5136_v60 = vld [vmem:[%s10752_s16 + $0x278] sm:$0xff] }
 0x576   : > { %4932 = vmatpush1.msra.mxu1 %v4819_v26 }
 0x577   : > { %4933 = vmatprep.subr.mxu1 %v4818_v63 }
 0x578   : > { %4934 = vmatpush1.msra.mxu1 %v4817_v47 }
 0x579   : > { %4935 = vmatprep.subr.mxu1 %v4880_v49 }
 0x57a   : > { %4936 = vmatpush2.msra.mxu1 %v4879_v51 }
 0x57b   : > { %4937 = vmatprep.subr.mxu1 %v4878_v13 }
 0x57c   : > { %4938 = vmatpush2.msra.mxu1 %v4877_v55 }
 0x57d   : > { %4939 = vmatprep.subr.mxu1 %v4876_v12  ;;  %v4547_v12 = vld [vmem:[%s10747_s11] sm:$0x7] }
 0x57e   : > { %4940 = vmatpush2.msra.mxu1 %v4875_v21  ;;  %v4556_v11 = vrot.slane %v4547_v12, %v7968_v25 }
 0x57f   : > { %4941 = vmatprep.subr.mxu1 %v4874_v33 }
 0x580   : > { %4942 = vmatpush2.msra.mxu1 %v4873_v52  ;;  %v4552_v52 = vrot.slane %v4547_v12, %v7962_v22 }
 0x581   : > { %4943 = vmatprep.subr.mxu1 %v4872_v19 }
 0x582   : > { %4944 = vmatpush2.msra.mxu1 %v4871_v48 }
 0x583   : > { %4945 = vmatprep.subr.mxu1 %v4870_v9  ;;  %v4560_v9 = vrot.slane %v4547_v12, %v8767_v35 }
 0x584   : > { %4946 = vmatpush2.msra.mxu1 %v4869_v62 }
 0x585   : > { %4947 = vmatprep.subr.mxu1 %v4868_v41 }
 0x586   : > { %4948 = vmatpush2.msra.mxu1 %v4867_v4 }
 0x587   : > { %4949 = vmatprep.subr.mxu1 %v4866_v7 }
 0x588   : > { %4950 = vmatpush2.msra.mxu1 %v4865_v2 }
 0x589   : > { %4951 = vmatprep.subr.mxu1 %v4864_v27 }
 0x58a   : > { %4952 = vmatpush2.msra.mxu1 %v4863_v15 }
 0x58b   : > { %4953 = vmatprep.subr.mxu1 %v4862_v61 }
 0x58c   : > { %4954 = vmatpush2.msra.mxu1 %v4861_v59 }
 0x58d   : > { %4955 = vmatprep.subr.mxu1 %v4860_v24 }
 0x58e   : > { %4956 = vmatpush2.msra.mxu1 %v4859_v6 }
 0x58f   : > { %4957 = vmatprep.subr.mxu1 %v4858_v44 }
 0x590   : > { %4958 = vmatpush2.msra.mxu1 %v4857_v32 }
 0x5b9   : > { %v9872_v1 = vpop.f32.mrf.mxu0  ;;  %v3880_v26 = vpop.f32.mrf.mxu1 }
 0x5bb   : > { %v3925_v50 = vpop.f32.mrf.mxu0  ;;  %v3882_v63 = vpop.f32.mrf.mxu1 }
 0x5bc   : > { %v4856_v50 = vld [vmem:[%s10751_s15 + $0x138] sm:$0xff] }
 0x5bd   : > { %v9886_v28 = vpop.f32.mrf.mxu0  ;;  %4959 = vmatprep.subr.mxu1 %v4856_v50  ;;  %v3884_v47 = vpop.f32.mrf.mxu1 }
 0x5be   : > { %4960 = vmatpush2.msra.mxu1 %v4855_v18 }
 0x5bf   : > { %v3928_v14 = vpop.f32.mrf.mxu0  ;;  %4961 = vmatprep.subr.mxu1 %v4854_v37  ;;  %v3886_v49 = vpop.f32.mrf.mxu1 }
 0x5c0   : > { %v4883_v14 = vld [vmem:[%s10751_s15 + $0x210] sm:$0xff]  ;;  %4962 = vmatpush2.msra.mxu1 %v4853_v8 }
 0x5c1   : > { %5009 = vmatpush1.msra.mxu0 %v4883_v14  ;;  %4963 = vmatprep.subr.mxu1 %v4852_v10 }
 0x5c2   : > { %5010 = vmatprep.subr.mxu0 %v4882_v31  ;;  %4964 = vmatpush2.msra.mxu1 %v4851_v38 }
 0x5c3   : > { %5011 = vmatpush1.msra.mxu0 %v4881_v20  ;;  %4965 = vmatprep.subr.mxu1 %v4850_v34 }
 0x5c4   : > { %5137 = vmatprep.subr.mxu0 %v5088_v0  ;;  %4966 = vmatpush2.msra.mxu1 %v4849_v3 }
 0x5c5   : > { %5230 = vmatprep.subr.mxu1 %v5136_v60 }
 0x5e9   : > { %v4201_v39 = vpop.f32.mrf.mxu0  ;;  %v4158_v51 = vpop.f32.mrf.mxu1 }
 0x5ea   : > { %v4159_v33 = vadd.f32 %v4158_v51, %v3880_v26  ;;  %v4202_v19 = vadd.f32 %v4201_v39, %v9872_v1 }
 0x5eb   : > { %v4203_v43 = vpop.f32.mrf.mxu0  ;;  %v4160_v13 = vpop.f32.mrf.mxu1 }
 0x5ec   : > { %v4161_v62 = vadd.f32 %v4160_v13, %v3882_v63 }
 0x5ed   : > { %v4204_v54 = vpop.f32.mrf.mxu0  ;;  %v4162_v55 = vpop.f32.mrf.mxu1 }
 0x5ee   : > { %v4163_v2 = vadd.f32 %v4162_v55, %v3884_v47  ;;  %v4205_v1 = vadd.f32 %v4204_v54, %v9886_v28 }
 0x5ef   : > { %v4206_v57 = vpop.f32.mrf.mxu0  ;;  %v4164_v21 = vpop.f32.mrf.mxu1 }
 0x5f0   : > { %v4165_v10 = vadd.f32 %v4164_v21, %v3886_v49 }
 0x619   : > { %v4491_v48 = vpop.f32.mrf.mxu1 }
 0x61a   : > { %v4541_v41 = vadd.f32 %v4491_v48, %v4159_v33  ;;  %v4534_v4 = vpop.f32.mrf.mxu0 }
 0x61b   : > { %v4543_v7 = vadd.f32 %v4534_v4, %v4202_v19  ;;  %v4493_v40 = vpop.f32.mrf.mxu1 }
 0x61c   : > { %v10099_v23 = vadd.f32 %v4552_v52, %v4541_v41  ;;  %v4542_v27 = vadd.f32 %v4493_v40, %v4161_v62  ;;  %v4536_v36 = vpop.f32.mrf.mxu0 }
 0x61d   : > { %v10101_v15 = vadd.f32 %v4560_v9, %v4543_v7  ;;  %v4495_v56 = vpop.f32.mrf.mxu1 }
 0x61e   : > { %v10105_v61 = vmul.f32 0.70710677, %v10099_v23  ;;  %v10107_v29 = vadd.f32 %v4556_v11, %v4542_v27  ;;  %v4544_v59 = vadd.f32 %v4495_v56, %v4163_v2  ;;  %v4537_v5 = vpop.f32.mrf.mxu0 }
 0x61f   : > { %v10110_v24 = vmul.f32 0.70710677, %v10101_v15  ;;  %v4546_v46 = vadd.f32 %v4537_v5, %v4205_v1  ;;  %v4497_v31 = vpop.f32.mrf.mxu1 }
 0x620   : > { %v4582_v42 = vand.u32 2147483647, %v10105_v61  ;;  %v10114_v6 = vmul.f32 0.70710677, %v10107_v29  ;;  %v4539_v44 = vpop.f32.mrf.mxu0  ;;  %v10117_v28 = vadd.f32 %v4552_v52, %v4544_v59  ;;  %v4545_v43 = vadd.f32 %v4497_v31, %v4165_v10 }
 0x621   : > { %v4584_v53 = vand.u32 2147483647, %v10110_v24  ;;  %v10123_v37 = vadd.f32 %v4560_v9, %v4546_v46  ;;  %vm4716_vm13 = vcmp.lt.f32.partialorder %v10110_v24, 0.0  ;;  %vm4714_vm14 = vcmp.lt.f32.partialorder %v10105_v61, 0.0  ;;  %v4744_v24 = vld [vmem:[%s10748_s12] sm:$0x7] }
 0x622   : > { %v4588_v32 = vmul.f32 0.3275911, %v4582_v42  ;;  %v4583_v16 = vand.u32 2147483647, %v10114_v6  ;;  %v10121_v30 = vmul.f32 0.70710677, %v10117_v28  ;;  %v10130_v3 = vadd.f32 %v4556_v11, %v4545_v43 }
 0x623   : > { %v4590_v50 = vmul.f32 0.3275911, %v4584_v53  ;;  %v10127_v38 = vmul.f32 0.70710677, %v10123_v37  ;;  %v4678_v63 = vsub.f32 0.0, %v4582_v42  ;;  %v4680_v51 = vsub.f32 0.0, %v4584_v53 }
 0x624   : > { %v4594_v18 = vadd.f32 1.0, %v4588_v32  ;;  %v4589_v17 = vmul.f32 0.3275911, %v4583_v16  ;;  %v4585_v8 = vand.u32 2147483647, %v10121_v30  ;;  %v4679_v52 = vsub.f32 0.0, %v4583_v16 }
 0x625   : > { %v4596_v14 = vadd.f32 1.0, %v4590_v50  ;;  %v4587_v34 = vand.u32 2147483647, %v10127_v38  ;;  %v10133_v57 = vmul.f32 0.70710677, %v10130_v3  ;;  %v4684_v21 = vmul.f32 %v4678_v63, %v4582_v42 }
 0x626   : > { %7490 = vrcp.f32 %v4594_v18  ;;  %v4595_v39 = vadd.f32 1.0, %v4589_v17  ;;  %v4591_v20 = vmul.f32 0.3275911, %v4585_v8  ;;  %v4686_v62 = vmul.f32 %v4680_v51, %v4584_v53 }
 0x627   : > { %7492 = vrcp.f32 %v4596_v14  ;;  %v4593_v54 = vmul.f32 0.3275911, %v4587_v34  ;;  %v10136_v26 = vand.u32 2147483647, %v10133_v57  ;;  %v4681_v41 = vsub.f32 0.0, %v4585_v8 }
 0x628   : > { %v4597_v0 = vadd.f32 1.0, %v4591_v20  ;;  %7494 = vrcp.f32 %v4595_v39  ;;  %v4690_v40 = vmul.f32 1.442695, %v4684_v21  ;;  %v4685_v27 = vmul.f32 %v4679_v52, %v4583_v16 }
 0x629   : > { %v4599_v60 = vadd.f32 1.0, %v4593_v54  ;;  %v4592_v47 = vmul.f32 0.3275911, %v10136_v26  ;;  %v4694_v5 = vmul.f32 1.442695, %v4686_v62  ;;  %v4687_v42 = vmul.f32 %v4681_v41, %v4585_v8 }
 0x62a   : > { %7496 = vrcp.f32 %v4597_v0  ;;  %v4683_v32 = vsub.f32 0.0, %v4587_v34  ;;  %v4692_v17 = vmul.f32 1.442695, %v4685_v27  ;;  %vm4715_vm15 = vcmp.lt.f32.partialorder %v10114_v6, 0.0  ;;  %v4767_v6 = vld [vmem:[%s10749_s13] sm:$0x7] }
 0x62b   : > { %7498 = vrcp.f32 %v4599_v60  ;;  %v4598_v13 = vadd.f32 1.0, %v4592_v47  ;;  %v4696_v8 = vmul.f32 1.442695, %v4687_v42  ;;  %vm4717_vm0 = vcmp.lt.f32.partialorder %v10121_v30, 0.0 }
 0x62c   : > { %v4689_v54 = vmul.f32 %v4683_v32, %v4587_v34  ;;  %v4572_v61 = vmul.f32 0.5, %v10101_v15  ;;  %v4757_v30 = vrot.slane %v4744_v24, %v8767_v35  ;;  %vm4719_vm1 = vcmp.lt.f32.partialorder %v10127_v38, 0.0 }
 0x62d   : > { %7500 = vrcp.f32 %v4598_v13  ;;  %vm4718_vm2 = vcmp.lt.f32.partialorder %v10133_v57, 0.0 }
 0x62e   : > { %7502 = vpow2.f32 %v4690_v40 }
 0x62f   : > { %7504 = vpow2.f32 %v4694_v5 }
 0x630   : > { %7506 = vpow2.f32 %v4692_v17 }
 0x631   : > { %7508 = vpow2.f32 %v4696_v8 }
 0x633   : > { %v7491_v49 = vpop.eup %7490 }
 0x634   : > { %v7493_v55 = vpop.eup %7492  ;;  %v4606_v12 = vmul.f32 %v7491_v49, %v4594_v18 }
 0x635   : > { %v4608_v33 = vmul.f32 %v7493_v55, %v4596_v14  ;;  %v7495_v48 = vpop.eup %7494 }
 0x636   : > { %v4612_v19 = vsub.f32 2.0, %v4606_v12  ;;  %v4607_v11 = vmul.f32 %v7495_v48, %v4595_v39 }
 0x637   : > { %v4614_v9 = vsub.f32 2.0, %v4608_v33  ;;  %v7497_v7 = vpop.eup %7496 }
 0x638   : > { %v10139_v4 = vmul.f32 %v7491_v49, %v4612_v19  ;;  %v4613_v56 = vsub.f32 2.0, %v4607_v11  ;;  %v4609_v1 = vmul.f32 %v7497_v7, %v4597_v0  ;;  %v7499_v50 = vpop.eup %7498  ;;  %v4682_v49 = vsub.f32 0.0, %v10136_v26 }
 0x639   : > { %v10141_v2 = vmul.f32 %v7493_v55, %v4614_v9  ;;  %v4611_v31 = vmul.f32 %v7499_v50, %v4599_v60  ;;  %v4700_v9 = vmul.f32 1.442695, %v4689_v54 }
 0x63a   : > { %v4624_v36 = vmul.f32 1.0614054, %v10139_v4  ;;  %v10145_v44 = vmul.f32 %v7495_v48, %v4613_v56  ;;  %v4615_v53 = vsub.f32 2.0, %v4609_v1  ;;  %v7501_v51 = vpop.eup %7500 }
 0x63b   : > { %v4626_v59 = vmul.f32 1.0614054, %v10141_v2  ;;  %v4617_v47 = vsub.f32 2.0, %v4611_v31  ;;  %v4610_v52 = vmul.f32 %v7501_v51, %v4598_v13  ;;  %7510 = vpow2.f32 %v4700_v9 }
 0x63c   : > { %v4630_v46 = vadd.f32 -1.4531521, %v4624_v36  ;;  %v4625_v16 = vmul.f32 1.0614054, %v10145_v44  ;;  %v10149_v39 = vmul.f32 %v7497_v7, %v4615_v53  ;;  %v4688_v7 = vmul.f32 %v4682_v49, %v10136_v26 }
 0x63d   : > { %v4632_v18 = vadd.f32 -1.4531521, %v4626_v59  ;;  %v10157_v33 = vmul.f32 %v7499_v50, %v4617_v47  ;;  %v4616_v11 = vsub.f32 2.0, %v4610_v52  ;;  %v7503_v50 = vpop.eup %7502 }
 0x63e   : > { %v4636_v14 = vmul.f32 %v4630_v46, %v10139_v4  ;;  %v4631_v0 = vadd.f32 -1.4531521, %v4625_v16  ;;  %v4627_v43 = vmul.f32 1.0614054, %v10149_v39  ;;  %v4698_v32 = vmul.f32 1.442695, %v4688_v7  ;;  %v7505_v8 = vpop.eup %7504 }
 0x63f   : > { %v4638_v10 = vmul.f32 %v4632_v18, %v10141_v2  ;;  %v4629_v41 = vmul.f32 1.0614054, %v10157_v33  ;;  %v10165_v13 = vmul.f32 %v7501_v51, %v4616_v11 }
 0x640   : > { %v4642_v20 = vadd.f32 1.4214138, %v4636_v14  ;;  %v4637_v12 = vmul.f32 %v4631_v0, %v10145_v44  ;;  %v4633_v60 = vadd.f32 -1.4531521, %v4627_v43  ;;  %7512 = vpow2.f32 %v4698_v32 }
 0x641   : > { %v4644_v63 = vadd.f32 1.4214138, %v4638_v10  ;;  %v4635_v1 = vadd.f32 -1.4531521, %v4629_v41  ;;  %v4628_v26 = vmul.f32 1.0614054, %v10165_v13 }
 0x642   : > { %v4648_v55 = vmul.f32 %v4642_v20, %v10139_v4  ;;  %v4643_v48 = vadd.f32 1.4214138, %v4637_v12  ;;  %v4639_v34 = vmul.f32 %v4633_v60, %v10149_v39 }
 0x643   : > { %v4650_v21 = vmul.f32 %v4644_v63, %v10141_v2  ;;  %v4641_v53 = vmul.f32 %v4635_v1, %v10157_v33  ;;  %v4634_v10 = vadd.f32 -1.4531521, %v4628_v26 }
 0x644   : > { %v4654_v19 = vadd.f32 -0.28449672, %v4648_v55  ;;  %v4649_v27 = vmul.f32 %v4643_v48, %v10145_v44  ;;  %v4645_v36 = vadd.f32 1.4214138, %v4639_v34  ;;  %v7507_v55 = vpop.eup %7506 }
 0x645   : > { %v4656_v62 = vadd.f32 -0.28449672, %v4650_v21  ;;  %v4647_v31 = vadd.f32 1.4214138, %v4641_v53  ;;  %v4640_v47 = vmul.f32 %v4634_v10, %v10165_v13  ;;  %v7509_v21 = vpop.eup %7508 }
 0x646   : > { %v4660_v40 = vmul.f32 %v4654_v19, %v10139_v4  ;;  %v4655_v5 = vadd.f32 -0.28449672, %v4649_v27  ;;  %v4651_v42 = vmul.f32 %v4645_v36, %v10149_v39 }
 0x647   : > { %v4662_v56 = vmul.f32 %v4656_v62, %v10141_v2  ;;  %v4653_v63 = vmul.f32 %v4647_v31, %v10157_v33  ;;  %v4646_v60 = vadd.f32 1.4214138, %v4640_v47 }
 0x648   : > { %v4666_v59 = vadd.f32 0.2548296, %v4660_v40  ;;  %v4661_v17 = vmul.f32 %v4655_v5, %v10145_v44  ;;  %v4657_v14 = vadd.f32 -0.28449672, %v4651_v42 }
 0x649   : > { %v4668_v46 = vadd.f32 0.2548296, %v4662_v56  ;;  %v4652_v9 = vmul.f32 %v4646_v60, %v10165_v13  ;;  %v7511_v56 = vpop.eup %7510  ;;  %v4772_v60 = vrot.slane %v4767_v6, %v7962_v22 }
 0x64a   : > { %v4672_v18 = vmul.f32 %v4666_v59, %v10139_v4  ;;  %v4667_v0 = vadd.f32 0.2548296, %v4661_v17  ;;  %v4663_v43 = vmul.f32 %v4657_v14, %v10149_v39 }
 0x64b   : > { %v4674_v16 = vmul.f32 %v4668_v46, %v10141_v2  ;;  %v4659_v2 = vadd.f32 -0.28449672, %v4653_v63  ;;  %v4658_v40 = vadd.f32 -0.28449672, %v4652_v9 }
 0x64c   : > { %v4702_v20 = vmul.f32 %v7503_v50, %v4672_v18  ;;  %v4673_v4 = vmul.f32 %v4667_v0, %v10145_v44  ;;  %v4669_v51 = vadd.f32 0.2548296, %v4663_v43  ;;  %v4749_v0 = vrot.slane %v4744_v24, %v7962_v22 }
 0x64d   : > { %v4704_v54 = vmul.f32 %v7505_v8, %v4674_v16  ;;  %v4665_v34 = vmul.f32 %v4659_v2, %v10157_v33  ;;  %v4664_v1 = vmul.f32 %v4658_v40, %v10165_v13  ;;  %v7513_v16 = vpop.eup %7512  ;;  %v4570_v8 = vmul.f32 0.5, %v10099_v23 }
 0x64e   : > { %v4708_v49 = vsub.f32 1.0, %v4702_v20  ;;  %v4703_v52 = vmul.f32 %v7507_v55, %v4673_v4  ;;  %v4675_v19 = vmul.f32 %v4669_v51, %v10149_v39  ;;  %v4780_v43 = vrot.slane %v4767_v6, %v8767_v35 }
 0x64f   : > { %v4710_v12 = vsub.f32 1.0, %v4704_v54  ;;  %v4671_v7 = vadd.f32 0.2548296, %v4665_v34  ;;  %v4670_v26 = vadd.f32 0.2548296, %v4664_v1  ;;  %v4571_v54 = vmul.f32 0.5, %v10107_v29 }
 0x650   : > { %v4720_v62 = vsub.f32 0.0, %v4708_v49  ;;  %v4709_v41 = vsub.f32 1.0, %v4703_v52  ;;  %v4705_v11 = vmul.f32 %v7509_v21, %v4675_v19  ;;  %v4575_v23 = vmul.f32 0.5, %v10123_v37 }
 0x651   : > { %v4722_v48 = vsub.f32 0.0, %v4710_v12  ;;  %v4677_v39 = vmul.f32 %v4671_v7, %v10157_v33  ;;  %v4573_v33 = vmul.f32 0.5, %v10117_v28  ;;  %v4676_v14 = vmul.f32 %v4670_v26, %v10165_v13 }
 0x652   : > { %v4721_v27 = vsub.f32 0.0, %v4709_v41  ;;  %v4711_v36 = vsub.f32 1.0, %v4705_v11  ;;  %v4726_v59 = vsel %vm4714_vm14, %v4720_v62, %v4708_v49  ;;  %v4753_v49 = vrot.slane %v4744_v24, %v7968_v25 }
 0x653   : > { %v4728_v44 = vsel %vm4716_vm13, %v4722_v48, %v4710_v12  ;;  %v4707_v53 = vmul.f32 %v7511_v56, %v4677_v39  ;;  %v4732_v50 = vadd.f32 1.0, %v4726_v59  ;;  %v4706_v28 = vmul.f32 %v7513_v16, %v4676_v14  ;;  %v5086_v39 = vld [vmem:[%s10752_s16 + $0xe8] sm:$0xff]  ;;  %v5081_v14 = vld [vmem:[%s10752_s16 + $0xc0] sm:$0xff]  ;;  %v5132_v16 = vld [vmem:[%s10752_s16 + $0x258] sm:$0xff] }
 0x654   : > { %v4734_v5 = vadd.f32 1.0, %v4728_v44  ;;  %v4723_v42 = vsub.f32 0.0, %v4711_v36  ;;  %v4727_v46 = vsel %vm4715_vm15, %v4721_v27, %v4709_v41  ;;  %v4574_v29 = vmul.f32 0.5, %v10130_v3 }
 0x655   : > { %v4713_v17 = vsub.f32 1.0, %v4707_v53  ;;  %v4733_v10 = vadd.f32 1.0, %v4727_v46  ;;  %v4738_v63 = vmul.f32 %v4732_v50, %v4570_v8  ;;  %v4712_v47 = vsub.f32 1.0, %v4706_v28  ;;  %v5084_v46 = vld [vmem:[%s10752_s16 + $0xd8] sm:$0xff]  ;;  %v5083_v50 = vld [vmem:[%s10752_s16 + $0xd0] sm:$0xff]  ;;  %v5129_v28 = vld [vmem:[%s10752_s16 + $0x240] sm:$0xff] }
 0x656   : > { %v4729_v32 = vsel %vm4717_vm0, %v4723_v42, %v4711_v36  ;;  %v4740_v31 = vmul.f32 %v4734_v5, %v4572_v61  ;;  %v4776_v52 = vrot.slane %v4767_v6, %v7968_v25  ;;  %v5087_v25 = vld [vmem:[%s10752_s16 + $0xf0] sm:$0xff]  ;;  %v5085_v5 = vld [vmem:[%s10752_s16 + $0xe0] sm:$0xff]  ;;  %v5134_v6 = vld [vmem:[%s10752_s16 + $0x268] sm:$0xff] }
 0x657   : > { %v4735_v18 = vadd.f32 1.0, %v4729_v32  ;;  %v4725_v20 = vsub.f32 0.0, %v4713_v17  ;;  %v4739_v51 = vmul.f32 %v4733_v10, %v4571_v54  ;;  %v4724_v2 = vsub.f32 0.0, %v4712_v47  ;;  %v5135_v61 = vld [vmem:[%s10752_s16 + $0x270] sm:$0xff]  ;;  %v5076_v54 = vld [vmem:[%s10752_s16 + $0x98] sm:$0xff] }
 0x658   : > { %v4763_v4 = vmul.f32 %v4757_v30, %v4740_v31  ;;  %v4761_v35 = vmul.f32 %v4749_v0, %v4738_v63  ;;  %v5131_v10 = vld [vmem:[%s10752_s16 + $0x250] sm:$0xff] }
 0x659   : > { %v4741_v15 = vmul.f32 %v4735_v18, %v4573_v33  ;;  %v4731_v13 = vsel %vm4719_vm1, %v4725_v20, %v4713_v17  ;;  %v4730_v38 = vsel %vm4718_vm2, %v4724_v2, %v4712_v47  ;;  %v4762_v9 = vmul.f32 %v4753_v49, %v4739_v51  ;;  %v5082_v18 = vld [vmem:[%s10752_s16 + $0xc8] sm:$0xff]  ;;  %v5133_v17 = vld [vmem:[%s10752_s16 + $0x260] sm:$0xff]  ;;  %v5079_v8 = vld [vmem:[%s10752_s16 + $0xb0] sm:$0xff] }
 0x65a   : > { %v4737_v55 = vadd.f32 1.0, %v4731_v13  ;;  %v4786_v19 = vadd.f32 %v4780_v43, %v4763_v4  ;;  %v4736_v34 = vadd.f32 1.0, %v4730_v38  ;;  %v4784_v11 = vadd.f32 %v4772_v60, %v4761_v35  ;;  %v5078_v20 = vld [vmem:[%s10752_s16 + $0xa8] sm:$0xff]  ;;  %v5127_v63 = vld [vmem:[%s10752_s16 + $0x230] sm:$0xff]  ;;  %v5125_v4 = vld [vmem:[%s10752_s16 + $0x220] sm:$0xff] }
 0x65b   : > { %v4764_v12 = vmul.f32 %v4749_v0, %v4741_v15  ;;  %v4785_v40 = vadd.f32 %v4776_v52, %v4762_v9  ;;  %v5130_v15 = vld [vmem:[%s10752_s16 + $0x248] sm:$0xff]  ;;  %v5077_v0 = vld [vmem:[%s10752_s16 + $0xa0] sm:$0xff]  ;;  %v5075_v13 = vld [vmem:[%s10752_s16 + $0x90] sm:$0xff] }
 0x65c   : > { %v4743_v21 = vmul.f32 %v4737_v55, %v4575_v23  ;;  %v4742_v41 = vmul.f32 %v4736_v34, %v4574_v29  ;;  %v4802_v44 = vrot.slane %v4786_v19, 1  ;;  %v4796_v56 = vrot.slane %v4784_v11, 1  ;;  %v5126_v47 = vld [vmem:[%s10752_s16 + $0x228] sm:$0xff]  ;;  %v5073_v51 = vld [vmem:[%s10752_s16 + $0x80] sm:$0xff]  ;;  %v5124_v23 = vld [vmem:[%s10752_s16 + $0x218] sm:$0xff] }
 0x65d   : > { %v4787_v62 = vadd.f32 %v4772_v60, %v4764_v12  ;;  %v4799_v1 = vrot.slane %v4785_v40, 1  ;;  %v5072_v55 = vld [vmem:[%s10752_s16 + $0x78] sm:$0xff]  ;;  %v5123_v12 = vld [vmem:[%s10752_s16 + $0x210] sm:$0xff]  ;;  %v5122_v60 = vld [vmem:[%s10752_s16 + $0x208] sm:$0xff] }
 0x65e   : > { %v4766_v48 = vmul.f32 %v4757_v30, %v4743_v21  ;;  %v4765_v22 = vmul.f32 %v4753_v49, %v4742_v41  ;;  %v5080_v30 = vld [vmem:[%s10752_s16 + $0xb8] sm:$0xff]  ;;  %v5074_v49 = vld [vmem:[%s10752_s16 + $0x88] sm:$0xff]  ;;  %v5071_v2 = vld [vmem:[%s10752_s16 + $0x70] sm:$0xff] }
 0x65f   : > { %v4797_v27 = vrot.slane %v4787_v62, 1  ;;  %v5070_v21 = vld [vmem:[%s10752_s16 + $0x68] sm:$0xff]  ;;  %v5121_v35 = vld [vmem:[%s10752_s16 + $0x200] sm:$0xff]  ;;  %v5068_v38 = vld [vmem:[%s10752_s16 + $0x58] sm:$0xff] }
 0x660   : > { %v4789_v37 = vadd.f32 %v4780_v43, %v4766_v48  ;;  %v4788_v36 = vadd.f32 %v4776_v52, %v4765_v22  ;;  %v5128_v43 = vld [vmem:[%s10752_s16 + $0x238] sm:$0xff]  ;;  %v5069_v29 = vld [vmem:[%s10752_s16 + $0x60] sm:$0xff]  ;;  %v5067_v52 = vld [vmem:[%s10752_s16 + $0x50] sm:$0xff] }
 0x661   : > { %v4798_v42 = vsel %vm913_vm3, %v4796_v56, %v4797_v27  ;;  %v10258_v31 = vmax.f32 %v4787_v62, %v4797_v27  ;;  %v5065_v48 = vld [vmem:[%s10752_s16 + $0x40] sm:$0xff]  ;;  %v5064_v34 = vld [vmem:[%s10752_s16 + $0x38] sm:$0xff]  ;;  %v5063_v9 = vld [vmem:[%s10752_s16 + $0x30] sm:$0xff] }
 0x662   : > { %v4803_v7 = vrot.slane %v4789_v37, 1  ;;  %v4800_v59 = vrot.slane %v4788_v36, 1  ;;  %v10227_v26 = vmax.f32 %v4784_v11, %v4798_v42  ;;  %v5062_v62 = vld [vmem:[%s10752_s16 + $0x28] sm:$0xff]  ;;  %v5060_v41 = vld [vmem:[%s10752_s16 + $0x18] sm:$0xff]  ;;  %v5059_v11 = vld [vmem:[%s10752_s16 + $0x10] sm:$0xff] }
 0x663   : > { %v5120_v22 = vld [vmem:[%s10752_s16 + $0x1f8] sm:$0xff]  ;;  %v5118_v27 = vld [vmem:[%s10752_s16 + $0x1e8] sm:$0xff]  ;;  %v5113_v56 = vld [vmem:[%s10752_s16 + $0x1c0] sm:$0xff] }
 0x664   : > { %v4804_v57 = vsel %vm913_vm3, %v4802_v44, %v4803_v7  ;;  %v4801_v24 = vsel %vm913_vm3, %v4799_v1, %v4800_v59  ;;  %v10232_v33 = vmax.f32 %v4789_v37, %v4803_v7  ;;  %v10234_v32 = vmax.f32 %v4788_v36, %v4800_v59  ;;  %v5061_v37 = vld [vmem:[%s10752_s16 + $0x20] sm:$0xff]  ;;  %v5058_v44 = vld [vmem:[%s10752_s16 + $0x8] sm:$0xff]  ;;  %v5116_v36 = vld [vmem:[%s10752_s16 + $0x1d8] sm:$0xff] }
 0x665   : > { %v10208_v3 = vmax.f32 %v4786_v19, %v4804_v57  ;;  %v4812_v53 = vmax.f32 %v4785_v40, %v4801_v24  ;;  %v5066_v19 = vld [vmem:[%s10752_s16 + $0x48] sm:$0xff]  ;;  %v5057_v7 = vld [vmem:[%s10752_s16] sm:$0xff]  ;;  %v5119_v40 = vld [vmem:[%s10752_s16 + $0x1f0] sm:$0xff]  ;;  %vm5300_vm3 = vcmask 1040384  }
 0x666   : > { %v5117_v57 = vld [vmem:[%s10752_s16 + $0x1e0] sm:$0xff]  ;;  %v5111_v1 = vld [vmem:[%s10752_s16 + $0x1b0] sm:$0xff]  ;;  %v5110_v59 = vld [vmem:[%s10752_s16 + $0x1a8] sm:$0xff] }
 0x667   : > { %6786 = vmatmul.mubr.msk.f32.vlgmr.msra.gmra.mxu0 %vm3842_vm12, %v10208_v3  ;;  %4967 = vmatprep.mubr.f32.mxu1 %v4812_v53  ;;  %v5108_v42 = vld [vmem:[%s10752_s16 + $0x198] sm:$0xff]  ;;  %v5107_v24 = vld [vmem:[%s10752_s16 + $0x190] sm:$0xff] }
 0x668   : > { %5138 = vmatpush1.msra.mxu0 %v5087_v25  ;;  %5050 = vmatprep.mubr.f32.mxu0 %v7593_v58  ;;  %v5114_v25 = vld [vmem:[%s10752_s16 + $0x1c8] sm:$0xff] }
 0x669   : > { %5139 = vmatprep.subr.mxu0 %v5086_v39  ;;  %4968 = vmatmul.mubr.f32.vlgmr.msra.gmra.mxu1 %v10227_v26  ;;  %v5112_v39 = vld [vmem:[%s10752_s16 + $0x1b8] sm:$0xff] }
 0x66a   : > { %5140 = vmatpush1.msra.mxu0 %v5085_v5  ;;  %5231 = vmatpush1.msra.mxu1 %v5135_v61  ;;  %v5109_v5 = vld [vmem:[%s10752_s16 + $0x1a0] sm:$0xff]  ;;  %v5104_v61 = vld [vmem:[%s10752_s16 + $0x178] sm:$0xff] }
 0x66b   : > { %5141 = vmatprep.subr.mxu0 %v5084_v46  ;;  %6787 = vmatmul.mubr.msk.f32.gmra.mxu0 %vm3842_vm12, %v10232_v33  ;;  %v5106_v46 = vld [vmem:[%s10752_s16 + $0x188] sm:$0xff] }
 0x66c   : > { %4973 = vmatprep.mubr.f32.mxu1 %v10234_v32  ;;  %5142 = vmatpush1.msra.mxu0 %v5083_v50  ;;  %v5102_v50 = vld [vmem:[%s10752_s16 + $0x168] sm:$0xff] }
 0x66d   : > { %5232 = vmatprep.subr.mxu1 %v5134_v6  ;;  %5143 = vmatprep.subr.mxu0 %v5082_v18  ;;  %v5101_v6 = vld [vmem:[%s10752_s16 + $0x160] sm:$0xff]  ;;  %v5100_v18 = vld [vmem:[%s10752_s16 + $0x158] sm:$0xff] }
 0x66e   : > { %5201 = vmatprep.mubr.f32.mxu0 %v4812_v53  ;;  %5233 = vmatpush1.msra.mxu1 %v5133_v17  ;;  %v5105_v53 = vld [vmem:[%s10752_s16 + $0x180] sm:$0xff]  ;;  %v5099_v17 = vld [vmem:[%s10752_s16 + $0x150] sm:$0xff] }
 0x66f   : > { %5144 = vmatpush1.msra.mxu0 %v5081_v14  ;;  %5234 = vmatprep.subr.mxu1 %v5132_v16  ;;  %v5098_v14 = vld [vmem:[%s10752_s16 + $0x148] sm:$0xff]  ;;  %v5097_v16 = vld [vmem:[%s10752_s16 + $0x140] sm:$0xff] }
 0x670   : > { %4974 = vmatmul.mubr.f32.gmra.mxu1 %v10258_v31  ;;  %5145 = vmatprep.subr.mxu0 %v5080_v30  ;;  %v5096_v30 = vld [vmem:[%s10752_s16 + $0x138] sm:$0xff] }
 0x671   : > { %5235 = vmatpush1.msra.mxu1 %v5131_v10  ;;  %5146 = vmatpush1.msra.mxu0 %v5079_v8  ;;  %v5095_v10 = vld [vmem:[%s10752_s16 + $0x130] sm:$0xff]  ;;  %v5094_v8 = vld [vmem:[%s10752_s16 + $0x128] sm:$0xff] }
 0x672   : > { %5236 = vmatprep.subr.mxu1 %v5130_v15  ;;  %5147 = vmatprep.subr.mxu0 %v5078_v20  ;;  %v5093_v15 = vld [vmem:[%s10752_s16 + $0x120] sm:$0xff]  ;;  %v5092_v20 = vld [vmem:[%s10752_s16 + $0x118] sm:$0xff] }
 0x673   : > { %5237 = vmatpush1.msra.mxu1 %v5129_v28  ;;  %5148 = vmatpush1.msra.mxu0 %v5077_v0  ;;  %v5091_v28 = vld [vmem:[%s10752_s16 + $0x110] sm:$0xff]  ;;  %v5090_v0 = vld [vmem:[%s10752_s16 + $0x108] sm:$0xff] }
 0x674   : > { %5238 = vmatprep.subr.mxu1 %v5128_v43  ;;  %5149 = vmatprep.subr.mxu0 %v5076_v54  ;;  %v5089_v43 = vld [vmem:[%s10752_s16 + $0x100] sm:$0xff] }
 0x675   : > { %5239 = vmatpush1.msra.mxu1 %v5127_v63  ;;  %5150 = vmatpush1.msra.mxu0 %v5075_v13 }
 0x676   : > { %5240 = vmatprep.subr.mxu1 %v5126_v47  ;;  %5151 = vmatprep.subr.mxu0 %v5074_v49 }
 0x677   : > { %5241 = vmatpush1.msra.mxu1 %v5125_v4  ;;  %5152 = vmatpush1.msra.mxu0 %v5073_v51 }
 0x678   : > { %5242 = vmatprep.subr.mxu1 %v5124_v23  ;;  %5153 = vmatprep.subr.mxu0 %v5072_v55 }
 0x679   : > { %5243 = vmatpush1.msra.mxu1 %v5123_v12  ;;  %5154 = vmatpush1.msra.mxu0 %v5071_v2 }
 0x67a   : > { %5244 = vmatprep.subr.mxu1 %v5122_v60  ;;  %5155 = vmatprep.subr.mxu0 %v5070_v21 }
 0x67b   : > { %5245 = vmatpush1.msra.mxu1 %v5121_v35  ;;  %5278 = vmatprep.mubr.f32.mxu1 %v7593_v58 }
 0x67c   : > { %5156 = vmatpush1.msra.mxu0 %v5069_v29  ;;  %6788 = vmatmul.mubr.msk.f32.vlgmr.msra.gmra.mxu1 %vm3842_vm12, %v10208_v3  ;;  %v5115_v3 = vld [vmem:[%s10752_s16 + $0x1d0] sm:$0xff] }
 0x67d   : > { %5157 = vmatprep.subr.mxu0 %v5068_v38  ;;  %5284 = vmatprep.mubr.f32.mxu1 %v7593_v58 }
 0x67e   : > { %5158 = vmatpush1.msra.mxu0 %v5067_v52  ;;  %5660 = vmatprep.subr.bf16.mxu1 %v10801_v45 }
 0x67f   : > { %5159 = vmatprep.subr.mxu0 %v5066_v19 }
 0x680   : > { %5160 = vmatpush1.msra.mxu0 %v5065_v48  ;;  %6789 = vmatmul.mubr.msk.f32.gmra.mxu1 %vm3842_vm12, %v10232_v33  ;;  %v5103_v33 = vld [vmem:[%s10752_s16 + $0x170] sm:$0xff] }
 0x681   : > { %5161 = vmatprep.subr.mxu0 %v5064_v34 }
 0x682   : > { %5162 = vmatpush1.msra.mxu0 %v5063_v9 }
 0x683   : > { %5163 = vmatprep.subr.mxu0 %v5062_v62 }
 0x684   : > { %5164 = vmatpush1.msra.mxu0 %v5061_v37 }
 0x685   : > { %5165 = vmatprep.subr.mxu0 %v5060_v41 }
 0x686   : > { %5166 = vmatpush1.msra.mxu0 %v5059_v11 }
 0x687   : > { %5167 = vmatprep.subr.mxu0 %v5058_v44  ;;  %v5291_v44 = vld [vmem:[%s10750_s14] sm:$0x1f] }
 0x688   : > { %5168 = vmatpush1.msra.mxu0 %v5057_v7  ;;  %v7356_v7 = vld [vmem:[%s10753_s17 + $0x38] sm:$0xff]  }
 0x689   : > { %5169 = vmatprep.subr.mxu0 %v5120_v22  ;;  %5661 = vmatpush1.bf16.msra.mxu1 %v7356_v7  ;;  %v7357_v22 = vld [vmem:[%s10753_s17 + $0x30] sm:$0xff]  }
 0x68a   : > { %5170 = vmatpush2.msra.mxu0 %v5119_v40  ;;  %5662 = vmatprep.subr.bf16.mxu1 %v10801_v45  ;;  %v7358_v40 = vld [vmem:[%s10753_s17 + $0x88] sm:$0xff]  }
 0x68b   : > { %5171 = vmatprep.subr.mxu0 %v5118_v27  ;;  %v7359_v27 = vld [vmem:[%s10753_s17 + $0x28] sm:$0xff]  }
 0x68c   : > { %5172 = vmatpush2.msra.mxu0 %v5117_v57  ;;  %v7360_v57 = vld [vmem:[%s10753_s17 + $0x80] sm:$0xff]  }
 0x68d   : > { %5173 = vmatprep.subr.mxu0 %v5116_v36  ;;  %5663 = vmatpush1.bf16.msra.mxu1 %v7357_v22  ;;  %v7361_v36 = vld [vmem:[%s10753_s17 + $0x20] sm:$0xff]  }
 0x68e   : > { %5174 = vmatpush2.msra.mxu0 %v5115_v3  ;;  %5664 = vmatprep.subr.bf16.mxu1 %v10801_v45  ;;  %v7362_v3 = vld [vmem:[%s10753_s17 + $0x78] sm:$0xff]  }
 0x68f   : > { %5175 = vmatprep.subr.mxu0 %v5114_v25  ;;  %v7363_v25 = vld [vmem:[%s10753_s17 + $0x18] sm:$0xff]  }
 0x690   : > { %5176 = vmatpush2.msra.mxu0 %v5113_v56  ;;  %v7364_v56 = vld [vmem:[%s10753_s17 + $0x70] sm:$0xff]  }
 0x691   : > { %5177 = vmatprep.subr.mxu0 %v5112_v39  ;;  %5665 = vmatpush1.bf16.msra.mxu1 %v7359_v27  ;;  %v7365_v39 = vld [vmem:[%s10753_s17 + $0x10] sm:$0xff]  }
 0x692   : > { %5178 = vmatpush2.msra.mxu0 %v5111_v1  ;;  %5666 = vmatprep.subr.bf16.mxu1 %v10801_v45  ;;  %v7366_v1 = vld [vmem:[%s10753_s17 + $0x68] sm:$0xff]  }
 0x693   : > { %5179 = vmatprep.subr.mxu0 %v5110_v59  ;;  %v7367_v59 = vld [vmem:[%s10753_s17 + $0x8] sm:$0xff]  }
 0x694   : > { %5180 = vmatpush2.msra.mxu0 %v5109_v5  ;;  %v7368_v5 = vld [vmem:[%s10753_s17 + $0x60] sm:$0xff]  }
 0x695   : > { %5181 = vmatprep.subr.mxu0 %v5108_v42  ;;  %5667 = vmatpush1.bf16.msra.mxu1 %v7361_v36  ;;  %v7369_v42 = vld [vmem:[%s10753_s17] sm:$0xff]  }
 0x696   : > { %5182 = vmatpush2.msra.mxu0 %v5107_v24  ;;  %5668 = vmatprep.subr.bf16.mxu1 %v10801_v45  ;;  %v7370_v24 = vld [vmem:[%s10753_s17 + $0x58] sm:$0xff]  }
 0x697   : > { %5183 = vmatprep.subr.mxu0 %v5106_v46  ;;  %v7371_v46 = vld [vmem:[%s10753_s17 + $0x48] sm:$0xff]  }
 0x698   : > { %5184 = vmatpush2.msra.mxu0 %v5105_v53  ;;  %v7372_v53 = vld [vmem:[%s10753_s17 + $0x50] sm:$0xff]  }
 0x699   : > { %5185 = vmatprep.subr.mxu0 %v5104_v61  ;;  %5669 = vmatpush1.bf16.msra.mxu1 %v7363_v25  ;;  %v7373_v61 = vld [vmem:[%s10753_s17 + $0x40] sm:$0xff]  }
 0x69a   : > { %5186 = vmatpush2.msra.mxu0 %v5103_v33  ;;  %5670 = vmatprep.subr.bf16.mxu1 %v10801_v45  ;;  %v7374_v33 = vld [vmem:[%s10753_s17 + $0x98] sm:$0xff]  }
 0x69b   : > { %5187 = vmatprep.subr.mxu0 %v5102_v50  ;;  %v7375_v50 = vld [vmem:[%s10753_s17 + $0x90] sm:$0xff]  }
 0x69c   : > { %5188 = vmatpush2.msra.mxu0 %v5101_v6 }
 0x69d   : > { %5189 = vmatprep.subr.mxu0 %v5100_v18  ;;  %5671 = vmatpush1.bf16.msra.mxu1 %v7365_v39 }
 0x69e   : > { %5190 = vmatpush2.msra.mxu0 %v5099_v17  ;;  %5672 = vmatprep.subr.bf16.mxu1 %v10801_v45 }
 0x69f   : > { %5191 = vmatprep.subr.mxu0 %v5098_v14 }
 0x6a0   : > { %5192 = vmatpush2.msra.mxu0 %v5097_v16 }
 0x6a1   : > { %5193 = vmatprep.subr.mxu0 %v5096_v30  ;;  %5673 = vmatpush1.bf16.msra.mxu1 %v7367_v59 }
 0x6a2   : > { %5194 = vmatpush2.msra.mxu0 %v5095_v10  ;;  %5674 = vmatprep.subr.bf16.mxu1 %v10801_v45 }
 0x6a3   : > { %5195 = vmatprep.subr.mxu0 %v5094_v8 }
 0x6a4   : > { %5196 = vmatpush2.msra.mxu0 %v5093_v15 }
 0x6a5   : > { %5197 = vmatprep.subr.mxu0 %v5092_v20  ;;  %5675 = vmatpush1.bf16.msra.mxu1 %v7369_v42 }
 0x6a6   : > { %5198 = vmatpush2.msra.mxu0 %v5091_v28  ;;  %5688 = vmatprep.subr.bf16.mxu1 %v10801_v45 }
 0x6a7   : > { %5199 = vmatprep.subr.mxu0 %v5090_v0 }
 0x6a8   : > { %5200 = vmatpush2.msra.mxu0 %v5089_v43 }
 0x6a9   : > { %5202 = vmatmul.mubr.f32.vlgmr.msra.gmra.mxu0 %v10227_v26  ;;  %5689 = vmatpush2.bf16.msra.mxu1 %v7371_v46 }
 0x6aa   : > { %5207 = vmatprep.mubr.f32.mxu0 %v10234_v32  ;;  %5690 = vmatprep.subr.bf16.mxu1 %v10801_v45 }
 0x6ad   : > { %5208 = vmatmul.mubr.f32.gmra.mxu0 %v10258_v31  ;;  %5691 = vmatpush2.bf16.msra.mxu1 %v7373_v61 }
 0x6ae   : > { %5371 = vmatprep.mubr.f32.mxu0 %v7593_v58  ;;  %6940 = vmatprep.subr.bf16.mxu1 %v7593_v58 }
 0x727   : > { %v5046_v13 = vpop.f32.mrf.mxu0 }
 0x729   : > { %v4969_v54 = vpop.f32.mrf.mxu1  ;;  %v5048_v49 = vpop.f32.mrf.mxu0 }
 0x72a   : > { %v5047_v62 = vadd.f32 %v5046_v13, %v4969_v54 }
 0x72b   : > { %v4971_v63 = vpop.f32.mrf.mxu1  ;;  %v5052_v51 = vpop.f32.mrf.mxu0 }
 0x72c   : > { %v5049_v34 = vadd.f32 %v5048_v49, %v4971_v63 }
 0x72d   : > { %v5054_v55 = vpop.f32.mrf.mxu0 }
 0x730   : > { %v4975_v47 = vpop.f32.mrf.mxu1 }
 0x731   : > { %v5053_v19 = vadd.f32 %v5052_v51, %v4975_v47 }
 0x732   : > { %v4977_v4 = vpop.f32.mrf.mxu1 }
 0x733   : > { %v5055_v31 = vadd.f32 %v5054_v55, %v4977_v4 }
 0x73c   : > { %v5280_v23 = vpop.f32.mrf.mxu1 }
 0x73e   : > { %v5282_v12 = vpop.f32.mrf.mxu1 }
 0x740   : > { %v5286_v60 = vpop.f32.mrf.mxu1 }
 0x742   : > { %v5288_v35 = vpop.f32.mrf.mxu1 }
 0x769   : > { %v5203_v2 = vpop.f32.mrf.mxu0 }
 0x76a   : > { %v5281_v48 = vadd.f32 %v5280_v23, %v5203_v2 }
 0x76b   : > { %v5205_v21 = vpop.f32.mrf.mxu0 }
 0x76c   : > { %v5283_v38 = vadd.f32 %v5282_v12, %v5205_v21  ;;  %v5292_v11 = vmax.f32 %v5047_v62, %v5281_v48 }
 0x76d   : > { %v5209_v26 = vpop.f32.mrf.mxu0 }
 0x76e   : > { %v5287_v32 = vadd.f32 %v5286_v60, %v5209_v26  ;;  %v5293_v41 = vmax.f32 %v5049_v34, %v5283_v38 }
 0x76f   : > { %v5211_v29 = vpop.f32.mrf.mxu0 }
 0x770   : > { %v5289_v52 = vadd.f32 %v5288_v35, %v5211_v29  ;;  %v5294_v37 = vmax.f32 %v5053_v19, %v5287_v32 }
 0x772   : > { %v5295_v9 = vmax.f32 %v5055_v31, %v5289_v52 }
 0x774   : > { %6790 = vmatprep.subr.msk.mxu0 %vm5300_vm3, %v5295_v9 }
 0x775   : > { %6791 = vmatpush1.msk.msra.mxu0 %vm5300_vm3, %v5294_v37 }
 0x776   : > { %5337 = vmatprep.subr.mxu0 %v5293_v41 }
 0x777   : > { %5338 = vmatpush1.msra.mxu0 %v5292_v11 }
 0x778   : > { %6792 = vmatmul.mubr.msk.f32.vlgmr.msra.gmra.mxu0 %vm5296_vm4, %v5291_v44  ;;  %5558 = vmatprep.subr.bf16.mxu0 %v10801_v45 }
 0x779   : > { %5559 = vmatpush1.bf16.msra.mxu0 %v7358_v40 }
 0x77a   : > { %5560 = vmatprep.subr.bf16.mxu0 %v10801_v45 }
 0x77d   : > { %5561 = vmatpush1.bf16.msra.mxu0 %v7360_v57 }
 0x77e   : > { %5562 = vmatprep.subr.bf16.mxu0 %v10801_v45 }
 0x781   : > { %5563 = vmatpush1.bf16.msra.mxu0 %v7362_v3 }
 0x782   : > { %5564 = vmatprep.subr.bf16.mxu0 %v10801_v45 }
 0x785   : > { %5565 = vmatpush1.bf16.msra.mxu0 %v7364_v56 }
 0x786   : > { %5566 = vmatprep.subr.bf16.mxu0 %v10801_v45 }
 0x789   : > { %5567 = vmatpush1.bf16.msra.mxu0 %v7366_v1 }
 0x78a   : > { %5568 = vmatprep.subr.bf16.mxu0 %v10801_v45 }
 0x78d   : > { %5569 = vmatpush1.bf16.msra.mxu0 %v7368_v5 }
 0x78e   : > { %5570 = vmatprep.subr.bf16.mxu0 %v10801_v45 }
 0x791   : > { %5571 = vmatpush1.bf16.msra.mxu0 %v7370_v24 }
 0x792   : > { %5572 = vmatprep.subr.bf16.mxu0 %v10801_v45 }
 0x795   : > { %5573 = vmatpush1.bf16.msra.mxu0 %v7372_v53 }
 0x796   : > { %5586 = vmatprep.subr.bf16.mxu0 %v10801_v45 }
 0x799   : > { %5587 = vmatpush2.bf16.msra.mxu0 %v7374_v33 }
 0x79a   : > { %5588 = vmatprep.subr.bf16.mxu0 %v10801_v45 }
 0x79d   : > { %5589 = vmatpush2.bf16.msra.mxu0 %v7375_v50 }
 0x79e   : > { %5789 = vmatprep.subr.bf16.mxu0 %v10801_v45 }
 0x838   : > { %v5373_v6 = vpop.f32.mrf.mxu0 }
 0x839   : > { %v5380_v18 = vmul.f32 0.70710677, %v5373_v6  ;;  %v5378_v56 = vmul.f32 0.5, %v5373_v6 }
 0x83a   : > { %v5375_v17 = vpop.f32.mrf.mxu0 }
 0x83b   : > { %v5382_v14 = vand.u32 2147483647, %v5380_v18  ;;  %v5381_v16 = vmul.f32 0.70710677, %v5375_v17  ;;  %vm5426_vm5 = vcmp.lt.f32.partialorder %v5380_v18, 0.0  ;;  %v5379_v42 = vmul.f32 0.5, %v5375_v17 }
 0x83d   : > { %v5384_v30 = vmul.f32 0.3275911, %v5382_v14  ;;  %v5383_v10 = vand.u32 2147483647, %v5381_v16  ;;  %v5414_v28 = vsub.f32 0.0, %v5382_v14  ;;  %vm5427_vm6 = vcmp.lt.f32.partialorder %v5381_v16, 0.0 }
 0x83e   : > { %v7376_v16 = vld [vmem:[%s10753_s17 + $0xd8] sm:$0xff]  }
 0x83f   : > { %v5386_v8 = vadd.f32 1.0, %v5384_v30  ;;  %v5385_v15 = vmul.f32 0.3275911, %v5383_v10  ;;  %v5415_v54 = vsub.f32 0.0, %v5383_v10  ;;  %v5416_v47 = vmul.f32 %v5414_v28, %v5382_v14  ;;  %v7379_v28 = vld [vmem:[%s10753_s17 + $0xc0] sm:$0xff]  }
 0x841   : > { %7514 = vrcp.f32 %v5386_v8  ;;  %v5387_v20 = vadd.f32 1.0, %v5385_v15  ;;  %v5417_v23 = vmul.f32 %v5415_v54, %v5383_v10  ;;  %v5418_v12 = vmul.f32 1.442695, %v5416_v47  ;;  %v7377_v15 = vld [vmem:[%s10753_s17 + $0xd0] sm:$0xff]   ;;  %v7382_v54 = vld [vmem:[%s10753_s17 + $0xa8] sm:$0xff]   ;;  %v7385_v47 = vld [vmem:[%s10753_s17 + $0xe0] sm:$0xff]  }
 0x843   : > { %7516 = vrcp.f32 %v5387_v20  ;;  %v5420_v26 = vmul.f32 1.442695, %v5417_v23  ;;  %v7389_v23 = vld [vmem:[%s10755_s19 + $0x40] sm:$0xff]  }
 0x844   : > { %7518 = vpow2.f32 %v5418_v12  ;;  %v7391_v12 = vld [vmem:[%s10755_s19 + $0x30] sm:$0xff]  }
 0x845   : > { %7520 = vpow2.f32 %v5420_v26 }
 0x84e   : > { %v7515_v0 = vpop.eup %7514 }
 0x84f   : > { %v5390_v43 = vmul.f32 %v7515_v0, %v5386_v8 }
 0x850   : > { %v7517_v63 = vpop.eup %7516 }
 0x851   : > { %v5392_v13 = vsub.f32 2.0, %v5390_v43  ;;  %v5391_v49 = vmul.f32 %v7517_v63, %v5387_v20  ;;  %v7519_v11 = vpop.eup %7518  ;;  %v7378_v20 = vld [vmem:[%s10753_s17 + $0xc8] sm:$0xff]   ;;  %v7381_v43 = vld [vmem:[%s10753_s17 + $0xb0] sm:$0xff]  }
 0x852   : > { %v7521_v40 = vpop.eup %7520 }
 0x853   : > { %v5394_v4 = vmul.f32 %v7515_v0, %v5392_v13  ;;  %v5393_v51 = vsub.f32 2.0, %v5391_v49  ;;  %v7380_v0 = vld [vmem:[%s10753_s17 + $0xb8] sm:$0xff]   ;;  %v7384_v13 = vld [vmem:[%s10753_s17 + $0xe8] sm:$0xff]  }
 0x855   : > { %v5396_v55 = vmul.f32 1.0614054, %v5394_v4  ;;  %v5395_v2 = vmul.f32 %v7517_v63, %v5393_v51  ;;  %v7383_v63 = vld [vmem:[%s10753_s17 + $0xa0] sm:$0xff]   ;;  %v7387_v51 = vld [vmem:[%s10755_s19 + $0x50] sm:$0xff]  }
 0x857   : > { %v5398_v60 = vadd.f32 -1.4531521, %v5396_v55  ;;  %v5397_v21 = vmul.f32 1.0614054, %v5395_v2  ;;  %v7390_v55 = vld [vmem:[%s10755_s19 + $0x38] sm:$0xff]  }
 0x859   : > { %v5400_v35 = vmul.f32 %v5398_v60, %v5394_v4  ;;  %v5399_v32 = vadd.f32 -1.4531521, %v5397_v21 }
 0x85b   : > { %v5402_v29 = vadd.f32 1.4214138, %v5400_v35  ;;  %v5401_v31 = vmul.f32 %v5399_v32, %v5395_v2 }
 0x85d   : > { %v5404_v38 = vmul.f32 %v5402_v29, %v5394_v4  ;;  %v5403_v52 = vadd.f32 1.4214138, %v5401_v31 }
 0x85f   : > { %v5406_v19 = vadd.f32 -0.28449672, %v5404_v38  ;;  %v5405_v48 = vmul.f32 %v5403_v52, %v5395_v2 }
 0x861   : > { %v5408_v34 = vmul.f32 %v5406_v19, %v5394_v4  ;;  %v5407_v9 = vadd.f32 -0.28449672, %v5405_v48  ;;  %v6866_v19 = vld [vmem:[%s10754_s18] ss:$0 sm:$0xff] }
 0x863   : > { %v5410_v62 = vadd.f32 0.2548296, %v5408_v34  ;;  %v5409_v37 = vmul.f32 %v5407_v9, %v5395_v2 }
 0x865   : > { %v5412_v41 = vmul.f32 %v5410_v62, %v5394_v4  ;;  %v5411_v44 = vadd.f32 0.2548296, %v5409_v37  ;;  %v7386_v4 = vld [vmem:[%s10755_s19 + $0x58] sm:$0xff]  }
 0x867   : > { %v5422_v7 = vmul.f32 %v7519_v11, %v5412_v41  ;;  %v5413_v22 = vmul.f32 %v5411_v44, %v5395_v2 }
 0x869   : > { %v5424_v27 = vsub.f32 1.0, %v5422_v7  ;;  %v5423_v57 = vmul.f32 %v7521_v40, %v5413_v22 }
 0x86b   : > { %v5428_v36 = vsub.f32 0.0, %v5424_v27  ;;  %v5425_v3 = vsub.f32 1.0, %v5423_v57 }
 0x86d   : > { %v5430_v25 = vsel %vm5426_vm5, %v5428_v36, %v5424_v27  ;;  %v5429_v1 = vsub.f32 0.0, %v5425_v3 }
 0x86e   : > { %v5432_v39 = vadd.f32 1.0, %v5430_v25 }
 0x86f   : > { %v5431_v5 = vsel %vm5427_vm6, %v5429_v1, %v5425_v3 }
 0x870   : > { %v5434_v59 = vmul.f32 %v5432_v39, %v5378_v56  ;;  %v5433_v24 = vadd.f32 1.0, %v5431_v5 }
 0x872   : > { %v5436_v46 = vpack.c.bf16 %v5434_v59, %v5434_v59  ;;  %v5435_v53 = vmul.f32 %v5433_v24, %v5379_v42 }
 0x874   : > { %v5482_v61 = vshll.u32 %v5436_v46, 16  ;;  %v5437_v33 = vpack.c.bf16 %v5435_v53, %v5435_v53  ;;  %v5480_v6 = vshrl.u32 %v5436_v46, 16  ;;  %v5723_v49 = vrot.slane %v5436_v46, 1 }
 0x876   : > { %6834 = vmatprep.mubr.msk.bf16.mxu1 %vm5554_vm7, %v5437_v33  ;;  %v5489_v50 = vshll.u32 %v5437_v33, 16  ;;  %v5484_v18 = vrot.slane %v5482_v61, 1  ;;  %v5487_v14 = vshrl.u32 %v5437_v33, 16  ;;  %v5724_v8 = vrot.slane %v5437_v33, 1 }
 0x877   : > { %5693 = vmatmul.mubr.bf16.vlgmr.msra.gmra.mxu1 %v5436_v46 }
 0x878   : > { %v5491_v30 = vrot.slane %v5489_v50, 1  ;;  %v5485_v17 = vor.u32 %v5484_v18, %v5480_v6  ;;  %6941 = vmatpush3.bf16.msra.mxu1 %v7386_v4  ;;  %6952 = vmatprep.mubr.msk.bf16.mxu1 %vm7594_vm8, %v7593_v58  ;;  %v7400_v4 = vld [vmem:[%s10757_s21 + $0x10] sm:$0xff]  }
 0x879   : > { %6942 = vmatprep.subr.bf16.mxu1 %v7593_v58 }
 0x87a   : > { %v5492_v10 = vor.u32 %v5491_v30, %v5487_v14 }
 0x87c   : > { %6823 = vmatprep.mubr.msk.bf16.mxu0 %vm5554_vm7, %v5492_v10  ;;  %6943 = vmatpush3.bf16.msra.mxu1 %v7387_v51  ;;  %v7401_v51 = vld [vmem:[%s10757_s21 + $0x30] sm:$0xff]  }
 0x87d   : > { %5591 = vmatmul.mubr.bf16.vlgmr.msra.gmra.mxu0 %v5485_v17  ;;  %6944 = vmatprep.subr.bf16.mxu1 %v7593_v58 }
 0x87e   : > { %5790 = vmatpush1.bf16.msra.mxu0 %v7376_v16  ;;  %6865 = vmatprep.mubr.msk.bf16.mxu0 %vm5554_vm7, %v5724_v8 }
 0x87f   : > { %5791 = vmatprep.subr.bf16.mxu0 %v10801_v45 }
 0x882   : > { %5792 = vmatpush1.bf16.msra.mxu0 %v7377_v15 }
 0x883   : > { %5793 = vmatprep.subr.bf16.mxu0 %v10801_v45 }
 0x886   : > { %5794 = vmatpush1.bf16.msra.mxu0 %v7378_v20  ;;  %v7392_v20 = vld [vmem:[%s10755_s19 + $0x28] sm:$0xff]  }
 0x887   : > { %5795 = vmatprep.subr.bf16.mxu0 %v10801_v45 }
 0x88a   : > { %5796 = vmatpush1.bf16.msra.mxu0 %v7379_v28 }
 0x88b   : > { %5797 = vmatprep.subr.bf16.mxu0 %v10801_v45 }
 0x88e   : > { %5798 = vmatpush1.bf16.msra.mxu0 %v7380_v0  ;;  %v7393_v0 = vld [vmem:[%s10755_s19 + $0x20] sm:$0xff]  }
 0x88f   : > { %5799 = vmatprep.subr.bf16.mxu0 %v10801_v45 }
 0x892   : > { %5800 = vmatpush1.bf16.msra.mxu0 %v7381_v43  ;;  %v7394_v43 = vld [vmem:[%s10755_s19 + $0x18] sm:$0xff]  }
 0x893   : > { %5801 = vmatprep.subr.bf16.mxu0 %v10801_v45 }
 0x896   : > { %5802 = vmatpush1.bf16.msra.mxu0 %v7382_v54  ;;  %v7395_v54 = vld [vmem:[%s10755_s19 + $0x10] sm:$0xff]  }
 0x897   : > { %5803 = vmatprep.subr.bf16.mxu0 %v10801_v45 }
 0x89a   : > { %5804 = vmatpush1.bf16.msra.mxu0 %v7383_v63  ;;  %v7396_v63 = vld [vmem:[%s10755_s19 + $0x8] sm:$0xff]  }
 0x89b   : > { %5817 = vmatprep.subr.bf16.mxu0 %v10801_v45 }
 0x89e   : > { %5818 = vmatpush2.bf16.msra.mxu0 %v7384_v13  ;;  %v7397_v13 = vld [vmem:[%s10755_s19] sm:$0xff]  }
 0x89f   : > { %5819 = vmatprep.subr.bf16.mxu0 %v10801_v45  ;;  %v7388_v45 = vld [vmem:[%s10755_s19 + $0x48] sm:$0xff]  }
 0x8a0   : > { %6945 = vmatpush3.bf16.msra.mxu1 %v7388_v45  ;;  %v7402_v45 = vld [vmem:[%s10757_s21 + $0x8] sm:$0xff]  }
 0x8a1   : > { %6946 = vmatprep.subr.bf16.mxu1 %v7593_v58 }
 0x8a2   : > { %5820 = vmatpush2.bf16.msra.mxu0 %v7385_v47  ;;  %v7398_v47 = vld [vmem:[%s10757_s21 + $0x18] sm:$0xff]  }
 0x8a3   : > { %6972 = vmatprep.subr.bf16.mxu0 %v7593_v58 }
 0x8a4   : > { %6947 = vmatpush3.bf16.msra.mxu1 %v7389_v23  ;;  %v7403_v23 = vld [vmem:[%s10757_s21 + $0x28] sm:$0xff]  }
 0x8a5   : > { %5822 = vmatmul.mubr.bf16.vlgmr.msra.gmra.mxu0 %v5723_v49  ;;  %6948 = vmatprep.subr.bf16.mxu1 %v7593_v58  ;;  %v7399_v49 = vld [vmem:[%s10757_s21 + $0x38] sm:$0xff]  }
 0x8a6   : > { %6980 = vmatprep.mubr.msk.bf16.mxu0 %vm7594_vm8, %v7593_v58  ;;  %6973 = vmatpush3.bf16.msra.mxu0 %v7399_v49 }
 0x8a7   : > { %6974 = vmatprep.subr.bf16.mxu0 %v7593_v58 }
 0x8a8   : > { %6949 = vmatpush3.bf16.msra.mxu1 %v7390_v55  ;;  %v7404_v55 = vld [vmem:[%s10757_s21] sm:$0xff]  }
 0x8a9   : > { %6950 = vmatprep.subr.bf16.mxu1 %v7593_v58 }
 0x8aa   : > { %6975 = vmatpush3.bf16.msra.mxu0 %v7401_v51 }
 0x8ab   : > { %6976 = vmatprep.subr.bf16.mxu0 %v7593_v58 }
 0x8ac   : > { %6951 = vmatpush3.bf16.msra.mxu1 %v7391_v12  ;;  %v7405_v12 = vld [vmem:[%s10757_s21 + $0x20] sm:$0xff]  }
 0x8ad   : > { %6956 = vmatprep.subr.bf16.mxu1 %v7593_v58 }
 0x8ae   : > { %6977 = vmatpush3.bf16.msra.mxu0 %v7403_v23 }
 0x8af   : > { %6978 = vmatprep.subr.bf16.mxu0 %v7593_v58 }
 0x8b2   : > { %6979 = vmatpush3.bf16.msra.mxu0 %v7405_v12 }
 0x937   : > { %v5694_v2 = vpop.f32.mrf.mxu1 }
 0x939   : > { %v5696_v60 = vpop.f32.mrf.mxu1 }
 0x93b   : > { %v5697_v21 = vpop.f32.mrf.mxu1 }
 0x93d   : > { %v5592_v26 = vpop.f32.mrf.mxu0  ;;  %v5698_v35 = vpop.f32.mrf.mxu1 }
 0x93e   : > { %v5695_v38 = vadd.f32 %v5694_v2, %v5592_v26 }
 0x93f   : > { %v5594_v32 = vpop.f32.mrf.mxu0 }
 0x940   : > { %v6893_v32 = vld [vmem:[%s10756_s20] ss:$0 sm:$0xff] }
 0x941   : > { %v5595_v29 = vpop.f32.mrf.mxu0 }
 0x943   : > { %v5596_v31 = vpop.f32.mrf.mxu0 }
 0x965   : > { %v5823_v52 = vpop.f32.mrf.mxu0 }
 0x966   : > { %v5829_v48 = vadd.f32 %v5823_v52, %v5695_v38 }
 0x967   : > { %v5825_v34 = vpop.f32.mrf.mxu0 }
 0x968   : > { %v5837_v9 = vadd.f32 %v6866_v19, %v5829_v48 }
 0x969   : > { %v5826_v62 = vpop.f32.mrf.mxu0 }
 0x96a   : > { %v5839_v37 = vmul.f32 0.70710677, %v5837_v9  ;;  %v5838_v30 = vmul.f32 0.5, %v5837_v9 }
 0x96b   : > { %v5827_v41 = vpop.f32.mrf.mxu0 }
 0x96c   : > { %v5840_v11 = vand.u32 2147483647, %v5839_v37  ;;  %vm5862_vm9 = vcmp.lt.f32.partialorder %v5839_v37, 0.0  ;;  %v6220_v37 = vld [vmem:[%s10758_s22] sm:$0x1] }
 0x96e   : > { %v5841_v44 = vmul.f32 0.3275911, %v5840_v11  ;;  %v5856_v22 = vsub.f32 0.0, %v5840_v11 }
 0x970   : > { %v5842_v7 = vadd.f32 1.0, %v5841_v44  ;;  %v5857_v36 = vmul.f32 %v5856_v22, %v5840_v11 }
 0x972   : > { %7522 = vrcp.f32 %v5842_v7  ;;  %v5858_v56 = vmul.f32 1.442695, %v5857_v36 }
 0x974   : > { %7524 = vpow2.f32 %v5858_v56 }
 0x97f   : > { %v7523_v40 = vpop.eup %7522 }
 0x980   : > { %v5844_v27 = vmul.f32 %v7523_v40, %v5842_v7 }
 0x981   : > { %v7525_v61 = vpop.eup %7524 }
 0x982   : > { %v5845_v57 = vsub.f32 2.0, %v5844_v27 }
 0x984   : > { %v5846_v3 = vmul.f32 %v7523_v40, %v5845_v57 }
 0x986   : > { %v5847_v25 = vmul.f32 1.0614054, %v5846_v3 }
 0x988   : > { %v5848_v39 = vadd.f32 -1.4531521, %v5847_v25 }
 0x98a   : > { %v5849_v1 = vmul.f32 %v5848_v39, %v5846_v3 }
 0x98c   : > { %v5850_v59 = vadd.f32 1.4214138, %v5849_v1 }
 0x98e   : > { %v5851_v5 = vmul.f32 %v5850_v59, %v5846_v3 }
 0x990   : > { %v5852_v42 = vadd.f32 -0.28449672, %v5851_v5 }
 0x992   : > { %v5853_v24 = vmul.f32 %v5852_v42, %v5846_v3 }
 0x994   : > { %v5854_v46 = vadd.f32 0.2548296, %v5853_v24 }
 0x996   : > { %v5855_v53 = vmul.f32 %v5854_v46, %v5846_v3 }
 0x998   : > { %v5860_v33 = vmul.f32 %v7525_v61, %v5855_v53 }
 0x99a   : > { %v5861_v50 = vsub.f32 1.0, %v5860_v33 }
 0x99c   : > { %v5863_v18 = vsub.f32 0.0, %v5861_v50 }
 0x99e   : > { %v5864_v14 = vsel %vm5862_vm9, %v5863_v18, %v5861_v50 }
 0x99f   : > { %v5865_v6 = vadd.f32 1.0, %v5864_v14 }
 0x9a1   : > { %v5866_v10 = vmul.f32 %v5865_v6, %v5838_v30 }
 0x9a3   : > { %v5867_v16 = vpack.c.bf16 %v5866_v10, %v5866_v10 }
 0x9a5   : > { %v5896_v17 = vshll.u32 %v5867_v16, 16  ;;  %v5894_v8 = vshrl.u32 %v5867_v16, 16 }
 0x9a7   : > { %v5898_v15 = vrot.slane %v5896_v17, 1 }
 0x9a9   : > { %v5899_v28 = vor.u32 %v5898_v15, %v5894_v8 }
 0x9ab   : > { %6953 = vmatmul.mubr.msk.bf16.vlgmr.msra.gmra.mxu1 %vm5936_vm10, %v5899_v28 }
 0x9ac   : > { %6957 = vmatpush3.bf16.msra.mxu1 %v7392_v20  ;;  %6968 = vmatprep.mubr.msk.bf16.mxu1 %vm7594_vm8, %v7593_v58 }
 0x9ad   : > { %6958 = vmatprep.subr.bf16.mxu1 %v7593_v58 }
 0x9b0   : > { %6959 = vmatpush3.bf16.msra.mxu1 %v7393_v0 }
 0x9b1   : > { %6960 = vmatprep.subr.bf16.mxu1 %v7593_v58 }
 0x9b4   : > { %6961 = vmatpush3.bf16.msra.mxu1 %v7394_v43 }
 0x9b5   : > { %6962 = vmatprep.subr.bf16.mxu1 %v7593_v58 }
 0x9b8   : > { %6963 = vmatpush3.bf16.msra.mxu1 %v7395_v54 }
 0x9b9   : > { %6964 = vmatprep.subr.bf16.mxu1 %v7593_v58 }
 0x9bc   : > { %6965 = vmatpush3.bf16.msra.mxu1 %v7396_v63 }
 0x9bd   : > { %6966 = vmatprep.subr.bf16.mxu1 %v7593_v58 }
 0x9c0   : > { %6967 = vmatpush3.bf16.msra.mxu1 %v7397_v13 }
 0x9c1   : > { %6984 = vmatprep.subr.bf16.mxu1 %v7593_v58 }
 0x9c3   : > { %6969 = vmatmul.mubr.msk.bf16.vlgmr.msra.gmra.mxu1 %vm5936_vm10, %v5867_v16 }
 0x9c4   : > { %6992 = vmatprep.mubr.msk.bf16.mxu1 %vm7594_vm8, %v7593_v58  ;;  %6985 = vmatpush3.bf16.msra.mxu1 %v7398_v47 }
 0x9c5   : > { %6986 = vmatprep.subr.bf16.mxu1 %v7593_v58 }
 0x9c8   : > { %6987 = vmatpush3.bf16.msra.mxu1 %v7400_v4 }
 0x9c9   : > { %6988 = vmatprep.subr.bf16.mxu1 %v7593_v58 }
 0x9cc   : > { %6989 = vmatpush3.bf16.msra.mxu1 %v7402_v45 }
 0x9cd   : > { %6990 = vmatprep.subr.bf16.mxu1 %v7593_v58 }
 0x9d0   : > { %6991 = vmatpush3.bf16.msra.mxu1 %v7404_v55 }
 0xa6b   : > { %v5974_v2 = vpop.f32.mrf.mxu1 }
 0xa6d   : > { %v6954_v60 = vpop.f32.mrf.mxu1 }
 0xa6f   : > { %v5977_v21 = vpop.f32.mrf.mxu1 }
 0xa71   : > { %v6955_v26 = vpop.f32.mrf.mxu1 }
 0xa83   : > { %v6052_v35 = vpop.f32.mrf.mxu1 }
 0xa84   : > { %v6053_v29 = vadd.f32 %v6052_v35, %v5974_v2 }
 0xa85   : > { %v6970_v31 = vpop.f32.mrf.mxu1 }
 0xa86   : > { %v6065_v38 = vadd.f32 %v6893_v32, %v6053_v29 }
 0xa87   : > { %v6055_v52 = vpop.f32.mrf.mxu1 }
 0xa88   : > { %v6066_v58 = vpack.c.bf16 %v6065_v38, %v6065_v38 }
 0xa89   : > { %v6971_v19 = vpop.f32.mrf.mxu1 }
 0xa8a   : > { %v6085_v48 = vshrl.u32 %v6066_v58, 16  ;;  %6993 = vmatmul.mubr.msk.bf16.vlgmr.msra.gmra.mxu1 %vm3842_vm12, %v6066_v58 }
 0xa8c   : > { %6981 = vmatmul.mubr.msk.bf16.vlgmr.msra.gmra.mxu0 %vm3842_vm12, %v6085_v48 }
 0xb4a   : > { %v6214_v34 = vpop.f32.mrf.mxu1 }
 0xb4c   : > { %v6148_v9 = vpop.f32.mrf.mxu0  ;;  %v6994_v62 = vpop.f32.mrf.mxu1 }
 0xb4d   : > { %v6215_v41 = vadd.f32 %v6214_v34, %v6148_v9 }
 0xb4e   : > { %v6982_v11 = vpop.f32.mrf.mxu0  ;;  %v6217_v44 = vpop.f32.mrf.mxu1 }
 0xb4f   : > { %v6221_v7 = vadd.f32 %v6220_v37, %v6215_v41 }
 0xb50   : > { %v6151_v22 = vpop.f32.mrf.mxu0  ;;  %v6995_v40 = vpop.f32.mrf.mxu1 }
 0xb51   : > { %v6223_v27 = vsel %vm6222_vm11, %v6221_v7, -inf }
 0xb52   : > { %6224 = vmax.xlane.f32.xlu0 %v6223_v27  ;;  %v6983_v57 = vpop.f32.mrf.mxu0 }
 0xbdb   : > { %v6225_v36 = vpop.xlane.xlu0 %6224 }
 0xbdc   : > { %v6226_v3 = vsub.f32 %v6221_v7, %v6225_v36 }
 0xbde   : > { %v6227_v25 = vmul.f32 1.442695, %v6226_v3 }
 0xbe0   : > { %7526 = vpow2.f32 %v6227_v25 }
 0xbed   : > { %v7527_v56 = vpop.eup %7526 }
 0xbee   : > { %v6229_v39 = vsel %vm6222_vm11, %v7527_v56, 0.0 }
 0xbef   : > { %6230 = vadd.xlane.f32.xlu0 %v6229_v39 }
 0xc78   : > { %v6231_v1 = vpop.xlane.xlu0 %6230 }
 0xc79   : > { %7528 = vlog2.f32 %v6231_v1 }
 0xc86   : > { %v7529_v59 = vpop.eup %7528 }
 0xc87   : > { %v6233_v5 = vmul.f32 0.6931472, %v7529_v59 }
 0xc89   : > { %v6234_v42 = vsub.f32 %v6226_v3, %v6233_v5 }
 0xc8b   : > { %6235 = vst.msk [vmem:[%s702_s2] sm:$0x1] %vm6222_vm11, %v6234_v42 }
 0xc8c   : > { %7543 = shalt.err (!%p7540_p3)
}
 0xc8d   : > { %s7544_s3 = scalar_lea.hbm %s6247_s24, 16  ;;  %s7548_s2 = scalar_lea.hbm %s10804_s1, 32 }
 0xc8e   : > { %p7545_p4 = scmp.ne.s32.totalorder %s6247_s24, %s7544_s3  ;;  %p7549_p9 = scmp.lt.s32.totalorder %s6247_s24, %s10804_s1 }
 0xc8f   : > { %p7550_p10 = scmp.lt.s32.totalorder %s7548_s2, %s7544_s3 }
 0xc90   : > { %p7546_p7 = pnand %p7545_p4, %p7754_p5 }
 0xc91   : > { %p7551_p11 = por %p7550_p10, %p7549_p9 }
 0xc92   : > { %p7547_p8 = pneg %p7546_p7 }
 0xc94   : > { %p7552_p12 = pnand %p7551_p11, %p7547_p8 }
 0xc96   : > { %7555 = shalt.err (!%p7552_p12)
}
 0xc97   : > { %6996 = dma.vmem_to_hbm [thread:$0]  (%p7754_p5), %s6250_s6, 16, %s6247_s24, %s6237_s4  }
 0xc98 PF: > { %s10805_s8 = sld [smem:[#allocation7_spill]] }
 0xc99   : > { %s10806_s0 = sld [smem:[#allocation5_spill]] }
 0xc9e   : > { %p7002_p13 = scmp.ge.s32.totalorder %s10805_s8, 2 }
 0xc9f   : > { %s6261_s5 = sand.u32 1, %s10806_s0  }
 0xca0   : > { %p6999_p0 = pnand %p7002_p13, %p7758_p6  ;;  %s6262_s23 = scalar_lea.sflag [#allocation3], %s6261_s5 }
 0xca2   : > { %p7000_p1 = pneg %p6999_p0 }
 0xca4   : > { %7573 = dma.done.wait (%p7000_p1), %s6262_s23, 16  }
 0xca5   : > { %7575 = vsyncadd (%p7000_p1), %s6262_s23, 4294967280  ;;  %s10808_s25 = sld [smem:[#allocation8_spill]]  ;;  %s10811_s4 = smov %s7582_s30 }
 0xca6   : > { %s10809_s9 = sld [smem:[#allocation6_spill]] }
 0xca7   : > { %s10810_s24 = sld [smem:[#allocation9_spill]] }
 0xcab   : > { %p33_p2 = scmp.ge.s32.totalorder %s10808_s25, 4  }
 0xcac   : > { %s10812_s30 = smov %s10809_s9 }
 0xcad   :  { %35 = sbr.rel (!%p33_p2) target bundleno = 15 (0xf), region = 157 }
 0xcb2   :  { %6266 = vsyncpa [#allocation3], 1 }
 0xcb3   :  { %6268 = vsyncpa [#allocation3 + $0x1], 1 }

</bundles_post_ra>
